<compile_context>
chip_gen: v7x
topology: tpu7x:2x2x1
jax: 0.10.0
libtpu: 0.0.40
codegen_flags: <defaults>
</compile_context>

<pallas_src>
import jax
import jax.numpy as jnp
from jax import lax
from jax.experimental import pallas as pl
from jax.experimental.pallas import tpu as pltpu

LANE = 128
_HI = lax.Precision.HIGHEST


def _round_up(n, m):
    return ((n + m - 1) // m) * m


def _pick_tb(batch):
    """Batch tile: big enough (256-512) to amortize per-grid-step overhead,
    while keeping >= 2 grid steps so both v7x TensorCores get work."""
    for c in (512, 256, 128, 64, 32, 16, 8):
        if batch % c == 0 and batch // c >= 2:
            return c
    for c in (1024, 512, 256, 128, 64, 32, 16, 8):
        if batch % c == 0:
            return c
    return batch


# ---------------------------------------------------------------------------
# Kernel: L residual blocks fused; weights resident in VMEM across the batch
# grid (constant index maps). Weights arrive pre-masked, pre-transposed to
# (in, out); only the hidden width is zero-padded to a lane-dense multiple of
# 128 — the residual stream, context and output stay at their true widths.
# ---------------------------------------------------------------------------
def _make_kernel(precision):
    def kernel(x_ref, ctx_ref, w0_ref, w1_ref, wc_ref, b0_ref, b1_ref, bc_ref,
               o_ref, gate_ref):
        n_blocks = w0_ref.shape[0]
        feat = x_ref.shape[1]                 # true feature width (residual)
        cdt = w0_ref.dtype                    # matmul operand dtype (bf16/f32)

        # ---- context path: hoisted off the serial per-block chain ----------
        # One wide matmul (N = L*feat) + one EUP tanh for all L gates; the
        # gates land in VMEM scratch so the block loop only reads them.
        ctx = ctx_ref[...].astype(cdt)
        c_all = (jnp.dot(ctx, wc_ref[...], preferred_element_type=jnp.float32,
                         precision=precision) + bc_ref[...])
        # sigmoid(c) = 0.5*tanh(c/2)+0.5  (EUP tanh; no VPU divide/overflow)
        gate_all = 0.5 * jnp.tanh(0.5 * c_all) + 0.5
        for li in range(n_blocks):            # static scatter into scratch
            gate_ref[li] = gate_all[:, li * feat:(li + 1) * feat]

        # ---- residual blocks: f32 residual stream, f32 elementwise ---------
        def body(l, x):
            h = jnp.maximum(x, 0.0).astype(cdt)
            h = jnp.dot(h, w0_ref[l], preferred_element_type=jnp.float32,
                        precision=precision) + b0_ref[l]
            h = jnp.maximum(h, 0.0).astype(cdt)
            h = jnp.dot(h, w1_ref[l], preferred_element_type=jnp.float32,
                        precision=precision) + b1_ref[l]
            return x + h * gate_ref[l]

        o_ref[...] = lax.fori_loop(0, n_blocks, body, x_ref[...],
                                   unroll=(n_blocks <= 8))
    return kernel


# ---------------------------------------------------------------------------
# One-time host-side parameter packing: fold masks into weights, transpose to
# (in, out), zero-pad the hidden width to a multiple of 128, stack the L
# blocks, and fuse all L context layers into one wide matrix.
# ---------------------------------------------------------------------------
def pack_flow_params(blocks, *, compute_dtype=jnp.bfloat16):
    """bf16 operands are the default fast path (v6e/v7x MXU); pass
    compute_dtype=jnp.float32 for the exact (HIGHEST-precision) check path.

    NOTE: all padded weight rows/cols and padded b0 lanes are ZERO by
    construction, so padded hidden lanes stay exactly 0 through relu/matmul
    and never leak into the (unpadded) residual stream. Keep any future
    re-packing zero-padded.
    """
    feat = blocks[0]["w0"].shape[0]
    ctx_feat = blocks[0]["wc"].shape[1]
    fh = _round_up(feat, LANE)            # lane-dense padded hidden width

    # hidden layer 0: (out, in) -> (in=F, out=Fh), zero-padded output cols
    w0 = jnp.stack([jnp.pad((p["w0"] * p["mask0"]).T, ((0, 0), (0, fh - feat)))
                    for p in blocks])                                 # (L,F,Fh)
    # hidden layer 1: (out, in) -> (in=Fh, out=F), zero-padded input rows
    w1 = jnp.stack([jnp.pad((p["w1"] * p["mask1"]).T, ((0, fh - feat), (0, 0)))
                    for p in blocks])                                 # (L,Fh,F)
    b0 = jnp.stack([jnp.pad(p["b0"], (0, fh - feat))[None, :]
                    for p in blocks])                                 # (L,1,Fh)
    b1 = jnp.stack([p["b1"][None, :] for p in blocks])                # (L,1,F)
    # context layers fused: one wide (C, L*F) matmul hoisted in the kernel
    wc = jnp.concatenate([p["wc"].T for p in blocks], axis=1)         # (C,L*F)
    bc = jnp.concatenate([p["bc"] for p in blocks])[None, :]          # (1,L*F)
    return dict(
        w0=w0.astype(compute_dtype), w1=w1.astype(compute_dtype),
        wc=wc.astype(compute_dtype),
        b0=b0.astype(jnp.float32), b1=b1.astype(jnp.float32),
        bc=bc.astype(jnp.float32),
        F=feat, C=ctx_feat, Fh=fh, L=len(blocks),
        compute_dtype=compute_dtype)


def masked_residual_flow(x, context, packed, *, tb=None):
    """x: [B, F] f32, context: [B, C] f32 (both UNPADDED — no host pad/slice).
    packed: output of pack_flow_params. Returns [B, F] f32."""
    B, feat = x.shape
    assert feat == packed["F"] and context.shape[1] == packed["C"]
    fh, L, C = packed["Fh"], packed["L"], packed["C"]
    if tb is None:
        tb = _pick_tb(B)
    assert B % tb == 0

    cdt = packed["compute_dtype"]
    precision = (lax.Precision.HIGHEST if cdt == jnp.float32
                 else lax.Precision.DEFAULT)

    weight_bytes = sum(int(packed[k].size) * packed[k].dtype.itemsize
                       for k in ("w0", "w1", "wc", "b0", "b1", "bc"))
    # Resident weights have constant index maps (fetched once); double
    # buffering them only wastes VMEM. Single-buffer + explicit VMEM limit only
    # when the stacked weights are big enough to matter (v7x: 64 MiB VMEM).
    big_weights = weight_bytes > (8 << 20)
    resident_kwargs = dict(pipeline_mode=pl.Buffered(1)) if big_weights else {}
    act_bytes = 2 * tb * 4 * (2 * feat + C) + L * tb * feat * 4
    est = (1 if big_weights else 2) * weight_bytes + act_bytes + (4 << 20)
    vmem_limit = int(est) if est > (32 << 20) else None

    def resident(shape):
        # full block, constant index map -> fetched once, stays in VMEM
        return pl.BlockSpec(shape, lambda i: (0,) * len(shape),
                            **resident_kwargs)

    out = pl.pallas_call(
        _make_kernel(precision),
        out_shape=jax.ShapeDtypeStruct((B, feat), jnp.float32),
        grid_spec=pltpu.PrefetchScalarGridSpec(
            num_scalar_prefetch=0,
            grid=(B // tb,),
            in_specs=[
                pl.BlockSpec((tb, feat), lambda i: (i, 0)),   # x (unpadded)
                pl.BlockSpec((tb, C), lambda i: (i, 0)),      # context (unpadded)
                resident((L, feat, fh)),                      # stacked (W0*m0)^T
                resident((L, fh, feat)),                      # stacked (W1*m1)^T
                resident((C, L * feat)),                      # fused Wc^T
                resident((L, 1, fh)),                         # b0 (padded, zeros)
                resident((L, 1, feat)),                       # b1
                resident((1, L * feat)),                      # fused bc
            ],
            out_specs=pl.BlockSpec((tb, feat), lambda i: (i, 0)),
            scratch_shapes=[pltpu.VMEM((L, tb, feat), jnp.float32)],  # gates
        ),
        compiler_params=pltpu.CompilerParams(
            dimension_semantics=("parallel",),
            vmem_limit_bytes=vmem_limit),
    )(x, context, packed["w0"], packed["w1"], packed["wc"],
      packed["b0"], packed["b1"], packed["bc"])
    return out


def masked_residual_block(x, context, params, *, tb=None,
                          compute_dtype=jnp.bfloat16):
    """Single MaskedResidualBlock forward (= flow with one block)."""
    return masked_residual_flow(
        x, context, pack_flow_params([params], compute_dtype=compute_dtype),
        tb=tb)


# ---------------------------------------------------------------------------
# Parameter / mask construction (mirrors MaskedLinear._get_mask_and_degrees
# for the non-output, non-random-mask case used inside MaskedResidualBlock).
# ---------------------------------------------------------------------------
def _hidden_degrees(out_features, autoregressive_features):
    max_ = max(1, autoregressive_features - 1)
    min_ = min(1, autoregressive_features - 1)
    return jnp.arange(out_features) % max_ + min_


def make_params(key, features, context_features, autoregressive_features,
                in_degrees):
    deg0 = _hidden_degrees(features, autoregressive_features)
    mask0 = (deg0[:, None] >= in_degrees[None, :]).astype(jnp.float32)  # [out,in]
    deg1 = _hidden_degrees(features, autoregressive_features)
    mask1 = (deg1[:, None] >= deg0[None, :]).astype(jnp.float32)
    # residual-block validity check (same as the PyTorch RuntimeError guard)
    assert bool(jnp.all(deg1 >= in_degrees))

    k = 1.0 / jnp.sqrt(features)
    kc = 1.0 / jnp.sqrt(context_features)
    keys = jax.random.split(key, 6)
    params = dict(
        w0=jax.random.uniform(keys[0], (features, features), jnp.float32, -k, k),
        b0=jax.random.uniform(keys[1], (features,), jnp.float32, -k, k),
        # zero_initialization=True: last masked linear ~ U(-1e-3, 1e-3)
        w1=jax.random.uniform(keys[2], (features, features), jnp.float32,
                              -1e-3, 1e-3),
        b1=jax.random.uniform(keys[3], (features,), jnp.float32, -1e-3, 1e-3),
        wc=jax.random.uniform(keys[4], (features, context_features),
                              jnp.float32, -kc, kc),
        bc=jax.random.uniform(keys[5], (features,), jnp.float32, -kc, kc),
        mask0=mask0,
        mask1=mask1,
    )
    return params, deg1


# ---------------------------------------------------------------------------
# Pure-JAX reference (HIGHEST-precision matmuls to match the f32 kernel path).
# ---------------------------------------------------------------------------
def reference_block(x, context, p):
    h = jnp.maximum(x, 0.0)
    h = jnp.dot(h, (p["w0"] * p["mask0"]).T, precision=_HI) + p["b0"]
    h = jnp.maximum(h, 0.0)
    h = jnp.dot(h, (p["w1"] * p["mask1"]).T, precision=_HI) + p["b1"]
    c = jnp.dot(context, p["wc"].T, precision=_HI) + p["bc"]
    return x + h * jax.nn.sigmoid(c)


def reference_flow(x, context, blocks):
    for p in blocks:
        x = reference_block(x, context, p)
    return x


if __name__ == "__main__":
    B = 512                  # -> tb=256: 2 "parallel" grid steps (v7x: 2 TCs)
    FEATURES = 32            # hidden features of each residual block
    CONTEXT = 16             # context_features
    AF = 4                   # autoregressive_features
    L = 4                    # number of fused residual blocks

    in_degrees = _hidden_degrees(FEATURES, AF)
    key = jax.random.PRNGKey(0)
    kx, kc, kp = jax.random.split(key, 3)
    x = jax.random.normal(kx, (B, FEATURES), dtype=jnp.float32)
    context = jax.random.normal(kc, (B, CONTEXT), dtype=jnp.float32)

    blocks = []
    for bk in jax.random.split(kp, L):
        p, _ = make_params(bk, FEATURES, CONTEXT, AF, in_degrees)
        blocks.append(p)

    ref = reference_flow(x, context, blocks)

    # Default fast path: bf16 MXU operands, f32 accumulate + f32 residual.
    packed = pack_flow_params(blocks)
    out = jax.block_until_ready(masked_residual_flow(x, context, packed))
    assert out.shape == (B, FEATURES)
    assert jnp.allclose(out, ref, atol=2e-2, rtol=2e-2), "bf16 mismatch"

    # Exact-check path: f32 operands with explicit Precision.HIGHEST.
    packed_f32 = pack_flow_params(blocks, compute_dtype=jnp.float32)
    out_f32 = jax.block_until_ready(masked_residual_flow(x, context, packed_f32))
    assert out_f32.shape == (B, FEATURES)
    assert jnp.allclose(out_f32, ref, atol=1e-4, rtol=1e-4), "f32 mismatch"

    print("KERNEL_OK")
</pallas_src>

<mosaic_0001>
module attributes {stable_mosaic.version = 11 : i64} {
  func.func @kernel(%arg0: i32, %arg1: memref<256x32xf32, #tpu.memory_space<vmem>>, %arg2: memref<256x16xf32, #tpu.memory_space<vmem>>, %arg3: memref<4x32x128xbf16, #tpu.memory_space<vmem>>, %arg4: memref<4x128x32xbf16, #tpu.memory_space<vmem>>, %arg5: memref<16x128xbf16, #tpu.memory_space<vmem>>, %arg6: memref<4x1x128xf32, #tpu.memory_space<vmem>>, %arg7: memref<4x1x32xf32, #tpu.memory_space<vmem>>, %arg8: memref<1x128xf32, #tpu.memory_space<vmem>>, %arg9: memref<256x32xf32, #tpu.memory_space<vmem>>, %arg10: memref<4x256x32xf32, #tpu.memory_space<vmem>>) attributes {dimension_semantics = [#tpu.dimension_semantics<parallel>], iteration_bounds = array<i64: 2>, scalar_prefetch = 0 : i64, scratch_operands = 1 : i64, tpu.core_type = #tpu.core_type<tc>, window_params = [{transform_indices = @transform_0, window_bounds = array<i64: 256, 32>}, {transform_indices = @transform_1, window_bounds = array<i64: 256, 16>}, {pipeline_mode = #tpu.pipeline_mode<synchronous>, transform_indices = @transform_2, window_bounds = array<i64: 4, 32, 128>}, {pipeline_mode = #tpu.pipeline_mode<synchronous>, transform_indices = @transform_3, window_bounds = array<i64: 4, 128, 32>}, {pipeline_mode = #tpu.pipeline_mode<synchronous>, transform_indices = @transform_4, window_bounds = array<i64: 16, 128>}, {pipeline_mode = #tpu.pipeline_mode<synchronous>, transform_indices = @transform_5, window_bounds = array<i64: 4, 1, 128>}, {pipeline_mode = #tpu.pipeline_mode<synchronous>, transform_indices = @transform_6, window_bounds = array<i64: 4, 1, 32>}, {pipeline_mode = #tpu.pipeline_mode<synchronous>, transform_indices = @transform_7, window_bounds = array<i64: 1, 128>}, {transform_indices = @transform_8, window_bounds = array<i64: 256, 32>}]} {
    %c0 = arith.constant 0 : index
    %c0_0 = arith.constant 0 : index
    %0 = vector.load %arg2[%c0, %c0_0] : memref<256x16xf32, #tpu.memory_space<vmem>>, vector<256x16xf32>
    %1 = arith.truncf %0 : vector<256x16xf32> to vector<256x16xbf16>
    %c0_1 = arith.constant 0 : index
    %c0_2 = arith.constant 0 : index
    %2 = vector.load %arg5[%c0_1, %c0_2] : memref<16x128xbf16, #tpu.memory_space<vmem>>, vector<16x128xbf16>
    %cst = arith.constant dense<0.000000e+00> : vector<256x128xf32>
    %3 = tpu.matmul %1, %2, %cst {dimension_numbers = #tpu.dot_dimension_numbers<[1], [0], [0], [1], [0, 0, 1, 1], [], []>} : vector<256x16xbf16>, vector<16x128xbf16>, vector<256x128xf32> -> vector<256x128xf32>
    %c0_3 = arith.constant 0 : index
    %c0_4 = arith.constant 0 : index
    %4 = vector.load %arg8[%c0_3, %c0_4] : memref<1x128xf32, #tpu.memory_space<vmem>>, vector<1x128xf32>
    %5 = vector.broadcast %4 : vector<1x128xf32> to vector<256x128xf32>
    %6 = arith.addf %3, %5 : vector<256x128xf32>
    %cst_5 = arith.constant 5.000000e-01 : f32
    %7 = vector.broadcast %cst_5 : f32 to vector<256x128xf32>
    %8 = arith.mulf %7, %6 : vector<256x128xf32>
    %9 = math.tanh %8 : vector<256x128xf32>
    %cst_6 = arith.constant 5.000000e-01 : f32
    %10 = vector.broadcast %cst_6 : f32 to vector<256x128xf32>
    %11 = arith.mulf %10, %9 : vector<256x128xf32>
    %cst_7 = arith.constant 5.000000e-01 : f32
    %12 = vector.broadcast %cst_7 : f32 to vector<256x128xf32>
    %13 = arith.addf %11, %12 : vector<256x128xf32>
    %14 = vector.extract_strided_slice %13 {offsets = [0, 0], sizes = [256, 32], strides = [1, 1]} : vector<256x128xf32> to vector<256x32xf32>
    %c0_8 = arith.constant 0 : index
    %c0_9 = arith.constant 0 : index
    %c0_10 = arith.constant 0 : index
    %15 = vector.load %arg10[%c0_8, %c0_9, %c0_10] : memref<4x256x32xf32, #tpu.memory_space<vmem>>, vector<1x256x32xf32>
    %16 = vector.shape_cast %15 : vector<1x256x32xf32> to vector<256x32xf32>
    %17 = vector.shape_cast %14 : vector<256x32xf32> to vector<1x256x32xf32>
    tpu.vector_store %arg10[%c0_8, %c0_9, %c0_10], %17 {strides = array<i32>} : memref<4x256x32xf32, #tpu.memory_space<vmem>>, vector<1x256x32xf32>,
    %18 = vector.extract_strided_slice %13 {offsets = [0, 32], sizes = [256, 32], strides = [1, 1]} : vector<256x128xf32> to vector<256x32xf32>
    %c1 = arith.constant 1 : index
    %c0_11 = arith.constant 0 : index
    %c0_12 = arith.constant 0 : index
    %19 = vector.load %arg10[%c1, %c0_11, %c0_12] : memref<4x256x32xf32, #tpu.memory_space<vmem>>, vector<1x256x32xf32>
    %20 = vector.shape_cast %19 : vector<1x256x32xf32> to vector<256x32xf32>
    %21 = vector.shape_cast %18 : vector<256x32xf32> to vector<1x256x32xf32>
    tpu.vector_store %arg10[%c1, %c0_11, %c0_12], %21 {strides = array<i32>} : memref<4x256x32xf32, #tpu.memory_space<vmem>>, vector<1x256x32xf32>,
    %22 = vector.extract_strided_slice %13 {offsets = [0, 64], sizes = [256, 32], strides = [1, 1]} : vector<256x128xf32> to vector<256x32xf32>
    %c2 = arith.constant 2 : index
    %c0_13 = arith.constant 0 : index
    %c0_14 = arith.constant 0 : index
    %23 = vector.load %arg10[%c2, %c0_13, %c0_14] : memref<4x256x32xf32, #tpu.memory_space<vmem>>, vector<1x256x32xf32>
    %24 = vector.shape_cast %23 : vector<1x256x32xf32> to vector<256x32xf32>
    %25 = vector.shape_cast %22 : vector<256x32xf32> to vector<1x256x32xf32>
    tpu.vector_store %arg10[%c2, %c0_13, %c0_14], %25 {strides = array<i32>} : memref<4x256x32xf32, #tpu.memory_space<vmem>>, vector<1x256x32xf32>,
    %26 = vector.extract_strided_slice %13 {offsets = [0, 96], sizes = [256, 32], strides = [1, 1]} : vector<256x128xf32> to vector<256x32xf32>
    %c3 = arith.constant 3 : index
    %c0_15 = arith.constant 0 : index
    %c0_16 = arith.constant 0 : index
    %27 = vector.load %arg10[%c3, %c0_15, %c0_16] : memref<4x256x32xf32, #tpu.memory_space<vmem>>, vector<1x256x32xf32>
    %28 = vector.shape_cast %27 : vector<1x256x32xf32> to vector<256x32xf32>
    %29 = vector.shape_cast %26 : vector<256x32xf32> to vector<1x256x32xf32>
    tpu.vector_store %arg10[%c3, %c0_15, %c0_16], %29 {strides = array<i32>} : memref<4x256x32xf32, #tpu.memory_space<vmem>>, vector<1x256x32xf32>,
    %c0_17 = arith.constant 0 : index
    %c0_18 = arith.constant 0 : index
    %30 = vector.load %arg1[%c0_17, %c0_18] : memref<256x32xf32, #tpu.memory_space<vmem>>, vector<256x32xf32>
    %c0_i32 = arith.constant 0 : i32
    %cst_19 = arith.constant 0.000000e+00 : f32
    %31 = vector.broadcast %cst_19 : f32 to vector<256x32xf32>
    %32 = arith.maximumf %30, %31 : vector<256x32xf32>
    %33 = arith.truncf %32 : vector<256x32xf32> to vector<256x32xbf16>
    %34 = arith.index_cast %c0_i32 : i32 to index
    %c0_20 = arith.constant 0 : index
    %c0_21 = arith.constant 0 : index
    %35 = vector.load %arg3[%34, %c0_20, %c0_21] : memref<4x32x128xbf16, #tpu.memory_space<vmem>>, vector<1x32x128xbf16>
    %36 = vector.shape_cast %35 : vector<1x32x128xbf16> to vector<32x128xbf16>
    %cst_22 = arith.constant dense<0.000000e+00> : vector<256x128xf32>
    %37 = tpu.matmul %33, %36, %cst_22 {dimension_numbers = #tpu.dot_dimension_numbers<[1], [0], [0], [1], [0, 0, 1, 1], [], []>} : vector<256x32xbf16>, vector<32x128xbf16>, vector<256x128xf32> -> vector<256x128xf32>
    %38 = arith.index_cast %c0_i32 : i32 to index
    %c0_23 = arith.constant 0 : index
    %c0_24 = arith.constant 0 : index
    %39 = vector.load %arg6[%38, %c0_23, %c0_24] : memref<4x1x128xf32, #tpu.memory_space<vmem>>, vector<1x1x128xf32>
    %40 = vector.shape_cast %39 : vector<1x1x128xf32> to vector<1x128xf32>
    %41 = vector.broadcast %40 : vector<1x128xf32> to vector<256x128xf32>
    %42 = arith.addf %37, %41 : vector<256x128xf32>
    %cst_25 = arith.constant 0.000000e+00 : f32
    %43 = vector.broadcast %cst_25 : f32 to vector<256x128xf32>
    %44 = arith.maximumf %42, %43 : vector<256x128xf32>
    %45 = arith.truncf %44 : vector<256x128xf32> to vector<256x128xbf16>
    %46 = arith.index_cast %c0_i32 : i32 to index
    %c0_26 = arith.constant 0 : index
    %c0_27 = arith.constant 0 : index
    %47 = vector.load %arg4[%46, %c0_26, %c0_27] : memref<4x128x32xbf16, #tpu.memory_space<vmem>>, vector<1x128x32xbf16>
    %48 = vector.shape_cast %47 : vector<1x128x32xbf16> to vector<128x32xbf16>
    %cst_28 = arith.constant dense<0.000000e+00> : vector<256x32xf32>
    %49 = tpu.matmul %45, %48, %cst_28 {dimension_numbers = #tpu.dot_dimension_numbers<[1], [0], [0], [1], [0, 0, 1, 1], [], []>} : vector<256x128xbf16>, vector<128x32xbf16>, vector<256x32xf32> -> vector<256x32xf32>
    %50 = arith.index_cast %c0_i32 : i32 to index
    %c0_29 = arith.constant 0 : index
    %c0_30 = arith.constant 0 : index
    %51 = vector.load %arg7[%50, %c0_29, %c0_30] : memref<4x1x32xf32, #tpu.memory_space<vmem>>, vector<1x1x32xf32>
    %52 = vector.shape_cast %51 : vector<1x1x32xf32> to vector<1x32xf32>
    %53 = vector.broadcast %52 : vector<1x32xf32> to vector<256x32xf32>
    %54 = arith.addf %49, %53 : vector<256x32xf32>
    %55 = arith.index_cast %c0_i32 : i32 to index
    %c0_31 = arith.constant 0 : index
    %c0_32 = arith.constant 0 : index
    %56 = vector.load %arg10[%55, %c0_31, %c0_32] : memref<4x256x32xf32, #tpu.memory_space<vmem>>, vector<1x256x32xf32>
    %57 = vector.shape_cast %56 : vector<1x256x32xf32> to vector<256x32xf32>
    %58 = arith.mulf %54, %57 : vector<256x32xf32>
    %59 = arith.addf %30, %58 : vector<256x32xf32>
    %c1_i32 = arith.constant 1 : i32
    %cst_33 = arith.constant 0.000000e+00 : f32
    %60 = vector.broadcast %cst_33 : f32 to vector<256x32xf32>
    %61 = arith.maximumf %59, %60 : vector<256x32xf32>
    %62 = arith.truncf %61 : vector<256x32xf32> to vector<256x32xbf16>
    %63 = arith.index_cast %c1_i32 : i32 to index
    %c0_34 = arith.constant 0 : index
    %c0_35 = arith.constant 0 : index
    %64 = vector.load %arg3[%63, %c0_34, %c0_35] : memref<4x32x128xbf16, #tpu.memory_space<vmem>>, vector<1x32x128xbf16>
    %65 = vector.shape_cast %64 : vector<1x32x128xbf16> to vector<32x128xbf16>
    %cst_36 = arith.constant dense<0.000000e+00> : vector<256x128xf32>
    %66 = tpu.matmul %62, %65, %cst_36 {dimension_numbers = #tpu.dot_dimension_numbers<[1], [0], [0], [1], [0, 0, 1, 1], [], []>} : vector<256x32xbf16>, vector<32x128xbf16>, vector<256x128xf32> -> vector<256x128xf32>
    %67 = arith.index_cast %c1_i32 : i32 to index
    %c0_37 = arith.constant 0 : index
    %c0_38 = arith.constant 0 : index
    %68 = vector.load %arg6[%67, %c0_37, %c0_38] : memref<4x1x128xf32, #tpu.memory_space<vmem>>, vector<1x1x128xf32>
    %69 = vector.shape_cast %68 : vector<1x1x128xf32> to vector<1x128xf32>
    %70 = vector.broadcast %69 : vector<1x128xf32> to vector<256x128xf32>
    %71 = arith.addf %66, %70 : vector<256x128xf32>
    %cst_39 = arith.constant 0.000000e+00 : f32
    %72 = vector.broadcast %cst_39 : f32 to vector<256x128xf32>
    %73 = arith.maximumf %71, %72 : vector<256x128xf32>
    %74 = arith.truncf %73 : vector<256x128xf32> to vector<256x128xbf16>
    %75 = arith.index_cast %c1_i32 : i32 to index
    %c0_40 = arith.constant 0 : index
    %c0_41 = arith.constant 0 : index
    %76 = vector.load %arg4[%75, %c0_40, %c0_41] : memref<4x128x32xbf16, #tpu.memory_space<vmem>>, vector<1x128x32xbf16>
    %77 = vector.shape_cast %76 : vector<1x128x32xbf16> to vector<128x32xbf16>
    %cst_42 = arith.constant dense<0.000000e+00> : vector<256x32xf32>
    %78 = tpu.matmul %74, %77, %cst_42 {dimension_numbers = #tpu.dot_dimension_numbers<[1], [0], [0], [1], [0, 0, 1, 1], [], []>} : vector<256x128xbf16>, vector<128x32xbf16>, vector<256x32xf32> -> vector<256x32xf32>
    %79 = arith.index_cast %c1_i32 : i32 to index
    %c0_43 = arith.constant 0 : index
    %c0_44 = arith.constant 0 : index
    %80 = vector.load %arg7[%79, %c0_43, %c0_44] : memref<4x1x32xf32, #tpu.memory_space<vmem>>, vector<1x1x32xf32>
    %81 = vector.shape_cast %80 : vector<1x1x32xf32> to vector<1x32xf32>
    %82 = vector.broadcast %81 : vector<1x32xf32> to vector<256x32xf32>
    %83 = arith.addf %78, %82 : vector<256x32xf32>
    %84 = arith.index_cast %c1_i32 : i32 to index
    %c0_45 = arith.constant 0 : index
    %c0_46 = arith.constant 0 : index
    %85 = vector.load %arg10[%84, %c0_45, %c0_46] : memref<4x256x32xf32, #tpu.memory_space<vmem>>, vector<1x256x32xf32>
    %86 = vector.shape_cast %85 : vector<1x256x32xf32> to vector<256x32xf32>
    %87 = arith.mulf %83, %86 : vector<256x32xf32>
    %88 = arith.addf %59, %87 : vector<256x32xf32>
    %c2_i32 = arith.constant 2 : i32
    %cst_47 = arith.constant 0.000000e+00 : f32
    %89 = vector.broadcast %cst_47 : f32 to vector<256x32xf32>
    %90 = arith.maximumf %88, %89 : vector<256x32xf32>
    %91 = arith.truncf %90 : vector<256x32xf32> to vector<256x32xbf16>
    %92 = arith.index_cast %c2_i32 : i32 to index
    %c0_48 = arith.constant 0 : index
    %c0_49 = arith.constant 0 : index
    %93 = vector.load %arg3[%92, %c0_48, %c0_49] : memref<4x32x128xbf16, #tpu.memory_space<vmem>>, vector<1x32x128xbf16>
    %94 = vector.shape_cast %93 : vector<1x32x128xbf16> to vector<32x128xbf16>
    %cst_50 = arith.constant dense<0.000000e+00> : vector<256x128xf32>
    %95 = tpu.matmul %91, %94, %cst_50 {dimension_numbers = #tpu.dot_dimension_numbers<[1], [0], [0], [1], [0, 0, 1, 1], [], []>} : vector<256x32xbf16>, vector<32x128xbf16>, vector<256x128xf32> -> vector<256x128xf32>
    %96 = arith.index_cast %c2_i32 : i32 to index
    %c0_51 = arith.constant 0 : index
    %c0_52 = arith.constant 0 : index
    %97 = vector.load %arg6[%96, %c0_51, %c0_52] : memref<4x1x128xf32, #tpu.memory_space<vmem>>, vector<1x1x128xf32>
    %98 = vector.shape_cast %97 : vector<1x1x128xf32> to vector<1x128xf32>
    %99 = vector.broadcast %98 : vector<1x128xf32> to vector<256x128xf32>
    %100 = arith.addf %95, %99 : vector<256x128xf32>
    %cst_53 = arith.constant 0.000000e+00 : f32
    %101 = vector.broadcast %cst_53 : f32 to vector<256x128xf32>
    %102 = arith.maximumf %100, %101 : vector<256x128xf32>
    %103 = arith.truncf %102 : vector<256x128xf32> to vector<256x128xbf16>
    %104 = arith.index_cast %c2_i32 : i32 to index
    %c0_54 = arith.constant 0 : index
    %c0_55 = arith.constant 0 : index
    %105 = vector.load %arg4[%104, %c0_54, %c0_55] : memref<4x128x32xbf16, #tpu.memory_space<vmem>>, vector<1x128x32xbf16>
    %106 = vector.shape_cast %105 : vector<1x128x32xbf16> to vector<128x32xbf16>
    %cst_56 = arith.constant dense<0.000000e+00> : vector<256x32xf32>
    %107 = tpu.matmul %103, %106, %cst_56 {dimension_numbers = #tpu.dot_dimension_numbers<[1], [0], [0], [1], [0, 0, 1, 1], [], []>} : vector<256x128xbf16>, vector<128x32xbf16>, vector<256x32xf32> -> vector<256x32xf32>
    %108 = arith.index_cast %c2_i32 : i32 to index
    %c0_57 = arith.constant 0 : index
    %c0_58 = arith.constant 0 : index
    %109 = vector.load %arg7[%108, %c0_57, %c0_58] : memref<4x1x32xf32, #tpu.memory_space<vmem>>, vector<1x1x32xf32>
    %110 = vector.shape_cast %109 : vector<1x1x32xf32> to vector<1x32xf32>
    %111 = vector.broadcast %110 : vector<1x32xf32> to vector<256x32xf32>
    %112 = arith.addf %107, %111 : vector<256x32xf32>
    %113 = arith.index_cast %c2_i32 : i32 to index
    %c0_59 = arith.constant 0 : index
    %c0_60 = arith.constant 0 : index
    %114 = vector.load %arg10[%113, %c0_59, %c0_60] : memref<4x256x32xf32, #tpu.memory_space<vmem>>, vector<1x256x32xf32>
    %115 = vector.shape_cast %114 : vector<1x256x32xf32> to vector<256x32xf32>
    %116 = arith.mulf %112, %115 : vector<256x32xf32>
    %117 = arith.addf %88, %116 : vector<256x32xf32>
    %c3_i32 = arith.constant 3 : i32
    %cst_61 = arith.constant 0.000000e+00 : f32
    %118 = vector.broadcast %cst_61 : f32 to vector<256x32xf32>
    %119 = arith.maximumf %117, %118 : vector<256x32xf32>
    %120 = arith.truncf %119 : vector<256x32xf32> to vector<256x32xbf16>
    %121 = arith.index_cast %c3_i32 : i32 to index
    %c0_62 = arith.constant 0 : index
    %c0_63 = arith.constant 0 : index
    %122 = vector.load %arg3[%121, %c0_62, %c0_63] : memref<4x32x128xbf16, #tpu.memory_space<vmem>>, vector<1x32x128xbf16>
    %123 = vector.shape_cast %122 : vector<1x32x128xbf16> to vector<32x128xbf16>
    %cst_64 = arith.constant dense<0.000000e+00> : vector<256x128xf32>
    %124 = tpu.matmul %120, %123, %cst_64 {dimension_numbers = #tpu.dot_dimension_numbers<[1], [0], [0], [1], [0, 0, 1, 1], [], []>} : vector<256x32xbf16>, vector<32x128xbf16>, vector<256x128xf32> -> vector<256x128xf32>
    %125 = arith.index_cast %c3_i32 : i32 to index
    %c0_65 = arith.constant 0 : index
    %c0_66 = arith.constant 0 : index
    %126 = vector.load %arg6[%125, %c0_65, %c0_66] : memref<4x1x128xf32, #tpu.memory_space<vmem>>, vector<1x1x128xf32>
    %127 = vector.shape_cast %126 : vector<1x1x128xf32> to vector<1x128xf32>
    %128 = vector.broadcast %127 : vector<1x128xf32> to vector<256x128xf32>
    %129 = arith.addf %124, %128 : vector<256x128xf32>
    %cst_67 = arith.constant 0.000000e+00 : f32
    %130 = vector.broadcast %cst_67 : f32 to vector<256x128xf32>
    %131 = arith.maximumf %129, %130 : vector<256x128xf32>
    %132 = arith.truncf %131 : vector<256x128xf32> to vector<256x128xbf16>
    %133 = arith.index_cast %c3_i32 : i32 to index
    %c0_68 = arith.constant 0 : index
    %c0_69 = arith.constant 0 : index
    %134 = vector.load %arg4[%133, %c0_68, %c0_69] : memref<4x128x32xbf16, #tpu.memory_space<vmem>>, vector<1x128x32xbf16>
    %135 = vector.shape_cast %134 : vector<1x128x32xbf16> to vector<128x32xbf16>
    %cst_70 = arith.constant dense<0.000000e+00> : vector<256x32xf32>
    %136 = tpu.matmul %132, %135, %cst_70 {dimension_numbers = #tpu.dot_dimension_numbers<[1], [0], [0], [1], [0, 0, 1, 1], [], []>} : vector<256x128xbf16>, vector<128x32xbf16>, vector<256x32xf32> -> vector<256x32xf32>
    %137 = arith.index_cast %c3_i32 : i32 to index
    %c0_71 = arith.constant 0 : index
    %c0_72 = arith.constant 0 : index
    %138 = vector.load %arg7[%137, %c0_71, %c0_72] : memref<4x1x32xf32, #tpu.memory_space<vmem>>, vector<1x1x32xf32>
    %139 = vector.shape_cast %138 : vector<1x1x32xf32> to vector<1x32xf32>
    %140 = vector.broadcast %139 : vector<1x32xf32> to vector<256x32xf32>
    %141 = arith.addf %136, %140 : vector<256x32xf32>
    %142 = arith.index_cast %c3_i32 : i32 to index
    %c0_73 = arith.constant 0 : index
    %c0_74 = arith.constant 0 : index
    %143 = vector.load %arg10[%142, %c0_73, %c0_74] : memref<4x256x32xf32, #tpu.memory_space<vmem>>, vector<1x256x32xf32>
    %144 = vector.shape_cast %143 : vector<1x256x32xf32> to vector<256x32xf32>
    %145 = arith.mulf %141, %144 : vector<256x32xf32>
    %146 = arith.addf %117, %145 : vector<256x32xf32>
    %c4_i32 = arith.constant 4 : i32
    %c0_75 = arith.constant 0 : index
    %c0_76 = arith.constant 0 : index
    %147 = vector.load %arg9[%c0_75, %c0_76] : memref<256x32xf32, #tpu.memory_space<vmem>>, vector<256x32xf32>
    tpu.vector_store %arg9[%c0_75, %c0_76], %146 {strides = array<i32>} : memref<256x32xf32, #tpu.memory_space<vmem>>, vector<256x32xf32>,
    return
  }
  func.func @transform_0(%arg0: i32) -> (i32, i32) {
    %c0_i32 = arith.constant 0 : i32
    %c0_i32_0 = arith.constant 0 : i32
    return %arg0, %c0_i32 : i32, i32
  }
  func.func @transform_1(%arg0: i32) -> (i32, i32) {
    %c0_i32 = arith.constant 0 : i32
    %c0_i32_0 = arith.constant 0 : i32
    return %arg0, %c0_i32 : i32, i32
  }
  func.func @transform_2(%arg0: i32) -> (i32, i32, i32) {
    %c0_i32 = arith.constant 0 : i32
    %c0_i32_0 = arith.constant 0 : i32
    %c0_i32_1 = arith.constant 0 : i32
    %c0_i32_2 = arith.constant 0 : i32
    return %c0_i32, %c0_i32_0, %c0_i32_1 : i32, i32, i32
  }
  func.func @transform_3(%arg0: i32) -> (i32, i32, i32) {
    %c0_i32 = arith.constant 0 : i32
    %c0_i32_0 = arith.constant 0 : i32
    %c0_i32_1 = arith.constant 0 : i32
    %c0_i32_2 = arith.constant 0 : i32
    return %c0_i32, %c0_i32_0, %c0_i32_1 : i32, i32, i32
  }
  func.func @transform_4(%arg0: i32) -> (i32, i32) {
    %c0_i32 = arith.constant 0 : i32
    %c0_i32_0 = arith.constant 0 : i32
    %c0_i32_1 = arith.constant 0 : i32
    return %c0_i32, %c0_i32_0 : i32, i32
  }
  func.func @transform_5(%arg0: i32) -> (i32, i32, i32) {
    %c0_i32 = arith.constant 0 : i32
    %c0_i32_0 = arith.constant 0 : i32
    %c0_i32_1 = arith.constant 0 : i32
    %c0_i32_2 = arith.constant 0 : i32
    return %c0_i32, %c0_i32_0, %c0_i32_1 : i32, i32, i32
  }
  func.func @transform_6(%arg0: i32) -> (i32, i32, i32) {
    %c0_i32 = arith.constant 0 : i32
    %c0_i32_0 = arith.constant 0 : i32
    %c0_i32_1 = arith.constant 0 : i32
    %c0_i32_2 = arith.constant 0 : i32
    return %c0_i32, %c0_i32_0, %c0_i32_1 : i32, i32, i32
  }
  func.func @transform_7(%arg0: i32) -> (i32, i32) {
    %c0_i32 = arith.constant 0 : i32
    %c0_i32_0 = arith.constant 0 : i32
    %c0_i32_1 = arith.constant 0 : i32
    return %c0_i32, %c0_i32_0 : i32, i32
  }
  func.func @transform_8(%arg0: i32) -> (i32, i32) {
    %c0_i32 = arith.constant 0 : i32
    %c0_i32_0 = arith.constant 0 : i32
    return %arg0, %c0_i32 : i32, i32
  }
}

</mosaic_0001>

<bundles_post_ra>
// kernel: tpu_custom_call.1
= control target key start
LH: loop header
LB: loop body
LE: loop exit
PB: predicated region body
PF: predicated region fallthrough
CT: control target
= control target key end

     0   :  { %s4923_s27 = smov 0   ;;  %s6450_s0 = inlined_call_operand.vmem [shape: f32[512,32], index: 0, kind: input, shape index: {}]   ;;  %s6451_s1 = inlined_call_operand.vmem [shape: f32[512,16], index: 1, kind: input, shape index: {}]   ;;  %s6452_s2 = inlined_call_operand.vmem [shape: bf16[4,32,128], index: 2, kind: input, shape index: {}]   ;;  %s6453_s3 = inlined_call_operand.vmem [shape: bf16[4,128,32], index: 3, kind: input, shape index: {}]   ;;  %s6454_s4 = inlined_call_operand.vmem [shape: bf16[16,128], index: 4, kind: input, shape index: {}]   ;;  %s6455_s5 = inlined_call_operand.vmem [shape: f32[4,1,128], index: 5, kind: input, shape index: {}]   ;;  %s6456_s6 = inlined_call_operand.vmem [shape: f32[4,1,32], index: 6, kind: input, shape index: {}]   ;;  %s6457_s7 = inlined_call_operand.vmem [shape: f32[1,128], index: 7, kind: input, shape index: {}]   ;;  %s6458_s8 = inlined_call_operand.vmem [shape: f32[512,32], index: 8, kind: output, shape index: {}]  }
   0x1 LB: > { %s3953_s28 = sadd.s32 4294967295, %s4873_s27   ;;  %p3957_p0 = scmp.ge.s32.totalorder %s4873_s27, 1  ;;  %s4873_s27 = sphi %s4923_s27, %s18_s27  }
   0x2   : > { %p274_p1 = scmp.lt.s32.totalorder %s4873_s27, 3 }
   0x4   : > { %p275_p2 = pnand %p3957_p0, %p274_p1 }
   0x5   : > { %v4730_v0 = vld [vmem:[%s6454_s4] sm:$0xff] (!%p275_p2)   ;;  %s3958_s9 = sshll.u32 (!%p275_p2), %s3953_s28, 5  ;;  %vm395_vm0 = vcmask (!%p275_p2), 130048   ;;  %v4732_v9 = vld [vmem:[%s6452_s2 + $0x8] sm:$0xff] (!%p275_p2)   ;;  %vm733_vm1 = vcmask (!%p275_p2), 261120   ;;  %s4875_s19 = smov (!%p275_p2), 96  }
   0x6   : > { %278 = sbr.rel (%p275_p2) target bundleno = 1901 (0x76d), region = 52  ;;  %p314_p3 = scmp.lt.s32.totalorder (!%p275_p2), %s3958_s9, 63  ;;  %4717 = vmatprep.subr.bf16.mxu1 (!%p275_p2), %v4730_v0  ;;  %4347 = vmatprep.subr.bf16.mxu0 (!%p275_p2), %v4730_v0  ;;  %v4731_v1 = vld [vmem:[%s6452_s2] sm:$0xff] (!%p275_p2)  }
   0x7   : > { %4718 = vmatpush3.bf16.msra.mxu1 (!%p275_p2), %v4730_v0  ;;  %4348 = vmatpush3.bf16.msra.mxu0 (!%p275_p2), %v4730_v0  ;;  %s4876_s25 = smov (!%p275_p2), 64   ;;  %s4877_s29 = smov (!%p275_p2), 32  }
   0x8   : > { %4381 = vmatprep.subr.bf16.mxu1 (!%p275_p2), %v4731_v1 }
   0xd   : > { %s6460_s9 = smov (!%p314_p3, %s3958_s9), 63 }
   0xe   : > { %s4937_s12 = sshll.u32 %s6460_s9, 3 }
   0xf   : > { %s4943_s15 = scalar_lea.vmem %s6451_s1, %s4937_s12  ;;  %s4984_s20 = scalar_lea.vmem %s6450_s0, %s4937_s12 }
  0x10   : > { %v332_v2 = vld [vmem:[%s4943_s15] sm:$0xff]  ;;  %v333_v3 = vld [vmem:[%s4943_s15 + $0x8] sm:$0xff]  ;;  %v334_v7 = vld [vmem:[%s4943_s15 + $0x10] sm:$0xff]  ;;  %s6320_s22 = scalar_lea.vmem %s6458_s8, %s4937_s12 }
  0x11   : > { %v348_v4 = vld [vmem:[%s4943_s15 + $0x80] sm:$0xff]  ;;  %v364_v5 = vpack.c.bf16 %v333_v3, %v332_v2  ;;  %v349_v6 = vld [vmem:[%s4943_s15 + $0x88] sm:$0xff]  ;;  %v335_v8 = vld [vmem:[%s4943_s15 + $0x18] sm:$0xff] }
  0x12   : > { %v372_v10 = vpack.c.bf16 %v349_v6, %v348_v4  ;;  %v365_v11 = vpack.c.bf16 %v335_v8, %v334_v7  ;;  %v350_v12 = vld [vmem:[%s4943_s15 + $0x90] sm:$0xff]  ;;  %v351_v13 = vld [vmem:[%s4943_s15 + $0x98] sm:$0xff]  ;;  %v336_v14 = vld [vmem:[%s4943_s15 + $0x20] sm:$0xff] }
  0x13   : > { %4349 = vmatprep.mubr.msk.bf16.mxu0 %vm395_vm0, %v364_v5  ;;  %v373_v15 = vpack.c.bf16 %v351_v13, %v350_v12  ;;  %v337_v16 = vld [vmem:[%s4943_s15 + $0x28] sm:$0xff]  ;;  %v352_v17 = vld [vmem:[%s4943_s15 + $0xa0] sm:$0xff]  ;;  %v338_v21 = vld [vmem:[%s4943_s15 + $0x30] sm:$0xff] }
  0x14   : > { %v353_v18 = vld [vmem:[%s4943_s15 + $0xa8] sm:$0xff]  ;;  %4365 = vmatprep.mubr.msk.bf16.mxu1 %vm395_vm0, %v372_v10  ;;  %4350 = vmatmul.mubr.msk.bf16.vlgmr.msra.gmra.mrb[0].mxu0 %vm395_vm0, %v365_v11  ;;  %v366_v19 = vpack.c.bf16 %v337_v16, %v336_v14  ;;  %v339_v22 = vld [vmem:[%s4943_s15 + $0x38] sm:$0xff]  ;;  %v354_v23 = vld [vmem:[%s4943_s15 + $0xb0] sm:$0xff] }
  0x15   : > { %v374_v20 = vpack.c.bf16 %v353_v18, %v352_v17  ;;  %4366 = vmatmul.mubr.msk.bf16.vlgmr.msra.gmra.mrb[0].mxu1 %vm395_vm0, %v373_v15  ;;  %v355_v24 = vld [vmem:[%s4943_s15 + $0xb8] sm:$0xff]  ;;  %v340_v25 = vld [vmem:[%s4943_s15 + $0x40] sm:$0xff]  ;;  %v341_v26 = vld [vmem:[%s4943_s15 + $0x48] sm:$0xff]  ;;  %v367_v29 = vpack.c.bf16 %v339_v22, %v338_v21 }
  0x16   : > { %4382 = vmatpush3.bf16.msra.mxu1 %v4731_v1  ;;  %4353 = vmatprep.mubr.msk.bf16.mxu0 %vm395_vm0, %v366_v19  ;;  %v356_v27 = vld [vmem:[%s4943_s15 + $0xc0] sm:$0xff]  ;;  %v357_v28 = vld [vmem:[%s4943_s15 + $0xc8] sm:$0xff]  ;;  %v375_v30 = vpack.c.bf16 %v355_v24, %v354_v23  ;;  %v368_v31 = vpack.c.bf16 %v341_v26, %v340_v25  ;;  %v342_v33 = vld [vmem:[%s4943_s15 + $0x50] sm:$0xff] }
  0x17   : > { %4369 = vmatprep.mubr.msk.bf16.mxu1 %vm395_vm0, %v374_v20  ;;  %4383 = vmatprep.subr.bf16.mxu1 %v4732_v9  ;;  %v376_v32 = vpack.c.bf16 %v357_v28, %v356_v27  ;;  %v343_v34 = vld [vmem:[%s4943_s15 + $0x58] sm:$0xff]  ;;  %v358_v35 = vld [vmem:[%s4943_s15 + $0xd0] sm:$0xff]  ;;  %v344_v37 = vld [vmem:[%s4943_s15 + $0x60] sm:$0xff] }
  0x18   : > { %v359_v36 = vld [vmem:[%s4943_s15 + $0xd8] sm:$0xff]  ;;  %v345_v38 = vld [vmem:[%s4943_s15 + $0x68] sm:$0xff]  ;;  %v360_v39 = vld [vmem:[%s4943_s15 + $0xe0] sm:$0xff]  ;;  %v369_v41 = vpack.c.bf16 %v343_v34, %v342_v33 }
  0x19   : > { %v361_v40 = vld [vmem:[%s4943_s15 + $0xe8] sm:$0xff]  ;;  %v377_v42 = vpack.c.bf16 %v359_v36, %v358_v35  ;;  %v370_v43 = vpack.c.bf16 %v345_v38, %v344_v37  ;;  %v1185_v44 = vld [vmem:[%s4984_s20] sm:$0xff]  ;;  %v1187_v47 = vld [vmem:[%s4984_s20 + $0x10] sm:$0xff] }
  0x1a   : > { %4384 = vmatpush3.bf16.msra.mxu1 %v4732_v9  ;;  %v1186_v45 = vld [vmem:[%s4984_s20 + $0x8] sm:$0xff]  ;;  %v378_v46 = vpack.c.bf16 %v361_v40, %v360_v39  ;;  %v1188_v48 = vld [vmem:[%s4984_s20 + $0x18] sm:$0xff]  ;;  %v1189_v49 = vld [vmem:[%s4984_s20 + $0x20] sm:$0xff]  ;;  %v1217_v59 = vmax.f32 %v1185_v44, 0.0  ;;  %v1219_v61 = vmax.f32 %v1187_v47, 0.0 }
  0x1b   : > { %v346_v50 = vld [vmem:[%s4943_s15 + $0x70] sm:$0xff]  ;;  %v347_v51 = vld [vmem:[%s4943_s15 + $0x78] sm:$0xff]  ;;  %v1190_v52 = vld [vmem:[%s4984_s20 + $0x28] sm:$0xff]  ;;  %v1218_v60 = vmax.f32 %v1186_v45, 0.0  ;;  %v1220_v62 = vmax.f32 %v1188_v48, 0.0  ;;  %v1221_v63 = vmax.f32 %v1189_v49, 0.0 }
  0x1c   : > { %4354 = vmatmul.mubr.msk.bf16.gmra.mrb[4].mxu0 %vm395_vm0, %v367_v29  ;;  %v1191_v53 = vld [vmem:[%s4984_s20 + $0x30] sm:$0xff]  ;;  %v1192_v54 = vld [vmem:[%s4984_s20 + $0x38] sm:$0xff]  ;;  %v1193_v57 = vld [vmem:[%s4984_s20 + $0x40] sm:$0xff]  ;;  %v1222_v0 = vmax.f32 %v1190_v52, 0.0  ;;  %v371_v5 = vpack.c.bf16 %v347_v51, %v346_v50 }
  0x1d   : > { %4370 = vmatmul.mubr.msk.bf16.gmra.mrb[4].mxu1 %vm395_vm0, %v375_v30  ;;  %4357 = vmatprep.mubr.msk.bf16.mxu0 %vm395_vm0, %v368_v31  ;;  %v362_v55 = vld [vmem:[%s4943_s15 + $0xf0] sm:$0xff]  ;;  %v363_v56 = vld [vmem:[%s4943_s15 + $0xf8] sm:$0xff]  ;;  %v1194_v58 = vld [vmem:[%s4984_s20 + $0x48] sm:$0xff]  ;;  %v1223_v1 = vmax.f32 %v1191_v53, 0.0  ;;  %v1224_v2 = vmax.f32 %v1192_v54, 0.0  ;;  %v1225_v3 = vmax.f32 %v1193_v57, 0.0  ;;  %v1249_v7 = vpack.c.bf16 %v1218_v60, %v1217_v59 }
  0x1e   : > { %4373 = vmatprep.mubr.msk.bf16.mxu1 %vm395_vm0, %v376_v32  ;;  %v1226_v4 = vmax.f32 %v1194_v58, 0.0  ;;  %v379_v6 = vpack.c.bf16 %v363_v56, %v362_v55  ;;  %v1250_v8 = vpack.c.bf16 %v1220_v62, %v1219_v61  ;;  %v1251_v9 = vpack.c.bf16 %v1222_v0, %v1221_v63  ;;  %v1195_v10 = vld [vmem:[%s4984_s20 + $0x50] sm:$0xff]  ;;  %v1196_v11 = vld [vmem:[%s4984_s20 + $0x58] sm:$0xff]  ;;  %v1197_v13 = vld [vmem:[%s4984_s20 + $0x60] sm:$0xff] }
  0x1f   : > { %v1252_v12 = vpack.c.bf16 %v1224_v2, %v1223_v1  ;;  %v1198_v14 = vld [vmem:[%s4984_s20 + $0x68] sm:$0xff]  ;;  %v1227_v16 = vmax.f32 %v1195_v10, 0.0  ;;  %v1228_v17 = vmax.f32 %v1196_v11, 0.0  ;;  %v1229_v18 = vmax.f32 %v1197_v13, 0.0  ;;  %v1199_v22 = vld [vmem:[%s4984_s20 + $0x70] sm:$0xff]  ;;  %v1200_v23 = vld [vmem:[%s4984_s20 + $0x78] sm:$0xff] }
  0x20   : > { %v1253_v15 = vpack.c.bf16 %v1226_v4, %v1225_v3  ;;  %v1230_v19 = vmax.f32 %v1198_v14, 0.0  ;;  %v1201_v24 = vld [vmem:[%s4984_s20 + $0x80] sm:$0xff]  ;;  %v1202_v25 = vld [vmem:[%s4984_s20 + $0x88] sm:$0xff]  ;;  %v1231_v26 = vmax.f32 %v1199_v22, 0.0  ;;  %v1232_v27 = vmax.f32 %v1200_v23, 0.0  ;;  %v1203_v32 = vld [vmem:[%s4984_s20 + $0x90] sm:$0xff] }
  0x21   : > { %v1254_v20 = vpack.c.bf16 %v1228_v17, %v1227_v16  ;;  %v1233_v28 = vmax.f32 %v1201_v24, 0.0  ;;  %v1234_v29 = vmax.f32 %v1202_v25, 0.0  ;;  %v1204_v33 = vld [vmem:[%s4984_s20 + $0x98] sm:$0xff]  ;;  %v1205_v34 = vld [vmem:[%s4984_s20 + $0xa0] sm:$0xff]  ;;  %v1206_v35 = vld [vmem:[%s4984_s20 + $0xa8] sm:$0xff]  ;;  %v1235_v36 = vmax.f32 %v1203_v32, 0.0 }
  0x22   : > { %v1255_v21 = vpack.c.bf16 %v1230_v19, %v1229_v18  ;;  %v1256_v30 = vpack.c.bf16 %v1232_v27, %v1231_v26  ;;  %v1236_v37 = vmax.f32 %v1204_v33, 0.0  ;;  %v1237_v38 = vmax.f32 %v1205_v34, 0.0  ;;  %v1209_v44 = vld [vmem:[%s4984_s20 + $0xc0] sm:$0xff]  ;;  %v1210_v45 = vld [vmem:[%s4984_s20 + $0xc8] sm:$0xff]  ;;  %v1211_v52 = vld [vmem:[%s4984_s20 + $0xd0] sm:$0xff] }
  0x23   : > { %v1257_v31 = vpack.c.bf16 %v1234_v29, %v1233_v28  ;;  %v1238_v39 = vmax.f32 %v1206_v35, 0.0  ;;  %v1241_v48 = vmax.f32 %v1209_v44, 0.0  ;;  %v1242_v49 = vmax.f32 %v1210_v45, 0.0  ;;  %v1212_v53 = vld [vmem:[%s4984_s20 + $0xd8] sm:$0xff]  ;;  %v1213_v54 = vld [vmem:[%s4984_s20 + $0xe0] sm:$0xff]  ;;  %v1214_v55 = vld [vmem:[%s4984_s20 + $0xe8] sm:$0xff] }
  0x24   : > { %4358 = vmatmul.mubr.msk.bf16.gmra.mrb[8].mxu0 %vm395_vm0, %v369_v41  ;;  %v1258_v40 = vpack.c.bf16 %v1236_v37, %v1235_v36  ;;  %v1243_v56 = vmax.f32 %v1211_v52, 0.0  ;;  %v1244_v57 = vmax.f32 %v1212_v53, 0.0  ;;  %v1245_v58 = vmax.f32 %v1213_v54, 0.0  ;;  %v1215_v62 = vld [vmem:[%s4984_s20 + $0xf0] sm:$0xff]  ;;  %v1216_v63 = vld [vmem:[%s4984_s20 + $0xf8] sm:$0xff]  ;;  %v4733_v3 = vld [vmem:[%s6453_s3] sm:$0xff]  }
  0x25   : > { %4374 = vmatmul.mubr.msk.bf16.gmra.mrb[8].mxu1 %vm395_vm0, %v377_v42  ;;  %4361 = vmatprep.mubr.msk.bf16.mxu0 %vm395_vm0, %v370_v43  ;;  %v1259_v41 = vpack.c.bf16 %v1238_v39, %v1237_v38  ;;  %v1207_v42 = vld [vmem:[%s4984_s20 + $0xb0] sm:$0xff]  ;;  %v1208_v43 = vld [vmem:[%s4984_s20 + $0xb8] sm:$0xff]  ;;  %v1261_v51 = vpack.c.bf16 %v1242_v49, %v1241_v48  ;;  %v1246_v59 = vmax.f32 %v1214_v55, 0.0  ;;  %v1247_v0 = vmax.f32 %v1215_v62, 0.0  ;;  %v4734_v4 = vld [vmem:[%s6453_s3 + $0x8] sm:$0xff]  }
  0x26   : > { %4377 = vmatprep.mubr.msk.bf16.mxu1 %vm395_vm0, %v378_v46  ;;  %v1239_v46 = vmax.f32 %v1207_v42, 0.0  ;;  %v1240_v47 = vmax.f32 %v1208_v43, 0.0  ;;  %v1262_v60 = vpack.c.bf16 %v1244_v57, %v1243_v56  ;;  %v1248_v1 = vmax.f32 %v1216_v63, 0.0  ;;  %4417 = vmatprep.subr.bf16.mxu0 %v4733_v3  ;;  %v4740_v10 = vld [vmem:[%s6453_s3 + $0x38] sm:$0xff]   ;;  %v5077_v11 = vld [vmem:[%s6457_s7] ss:$0 sm:$0xff] }
  0x27   : > { %v1263_v61 = vpack.c.bf16 %v1246_v59, %v1245_v58  ;;  %4418 = vmatpush3.bf16.msra.mxu0 %v4733_v3 }
  0x28   : > { %v1260_v50 = vpack.c.bf16 %v1240_v47, %v1239_v46  ;;  %v1264_v2 = vpack.c.bf16 %v1248_v1, %v1247_v0  ;;  %4419 = vmatprep.subr.bf16.mxu0 %v4734_v4 }
  0x2b   : > { %4420 = vmatpush3.bf16.msra.mxu0 %v4734_v4 }
  0x2c   : > { %4362 = vmatmul.mubr.msk.bf16.gmra.mrb[12].mxu0 %vm395_vm0, %v371_v5  ;;  %v4735_v5 = vld [vmem:[%s6453_s3 + $0x10] sm:$0xff]  }
  0x2d   : > { %4378 = vmatmul.mubr.msk.bf16.gmra.mrb[12].mxu1 %vm395_vm0, %v379_v6  ;;  %4421 = vmatprep.subr.bf16.mxu0 %v4735_v5  ;;  %v4736_v6 = vld [vmem:[%s6453_s3 + $0x18] sm:$0xff]  }
  0x2e   : > { %4385 = vmatprep.mubr.msk.bf16.mxu1 %vm733_vm1, %v1249_v7  ;;  %v4737_v7 = vld [vmem:[%s6453_s3 + $0x20] sm:$0xff]  }
  0x2f   : > { %4422 = vmatpush3.bf16.msra.mxu0 %v4735_v5 }
  0x30   : > { %4423 = vmatprep.subr.bf16.mxu0 %v4736_v6 }
  0x33   : > { %4424 = vmatpush3.bf16.msra.mxu0 %v4736_v6 }
  0x34   : > { %4425 = vmatprep.subr.bf16.mxu0 %v4737_v7 }
  0x35   : > { %4386 = vmatmul.mubr.msk.bf16.vlgmr.msra.gmra.mrb[16].mxu1 %vm733_vm1, %v1250_v8  ;;  %v4738_v8 = vld [vmem:[%s6453_s3 + $0x28] sm:$0xff]  }
  0x36   : > { %4389 = vmatprep.mubr.msk.bf16.mxu1 %vm733_vm1, %v1251_v9  ;;  %v4739_v9 = vld [vmem:[%s6453_s3 + $0x30] sm:$0xff]  }
  0x37   : > { %4426 = vmatpush3.bf16.msra.mxu0 %v4737_v7 }
  0x38   : > { %4427 = vmatprep.subr.bf16.mxu0 %v4738_v8 }
  0x3b   : > { %4428 = vmatpush3.bf16.msra.mxu0 %v4738_v8 }
  0x3c   : > { %4429 = vmatprep.subr.bf16.mxu0 %v4739_v9 }
  0x3d   : > { %4390 = vmatmul.mubr.msk.bf16.gmra.mrb[20].mxu1 %vm733_vm1, %v1252_v12 }
  0x3e   : > { %4393 = vmatprep.mubr.msk.bf16.mxu1 %vm733_vm1, %v1253_v15 }
  0x3f   : > { %4430 = vmatpush3.bf16.msra.mxu0 %v4739_v9 }
  0x40   : > { %4431 = vmatprep.subr.bf16.mxu0 %v4740_v10 }
  0x43   : > { %4432 = vmatpush3.bf16.msra.mxu0 %v4740_v10 }
  0x45   : > { %4394 = vmatmul.mubr.msk.bf16.gmra.mrb[24].mxu1 %vm733_vm1, %v1254_v20 }
  0x46   : > { %4397 = vmatprep.mubr.msk.bf16.mxu1 %vm733_vm1, %v1255_v21 }
  0x4d   : > { %4398 = vmatmul.mubr.msk.bf16.gmra.mrb[28].mxu1 %vm733_vm1, %v1256_v30 }
  0x4e   : > { %4401 = vmatprep.mubr.msk.bf16.mxu1 %vm733_vm1, %v1257_v31 }
  0x55   : > { %4402 = vmatmul.mubr.msk.bf16.gmra.mrb[32].mxu1 %vm733_vm1, %v1258_v40 }
  0x56   : > { %4405 = vmatprep.mubr.msk.bf16.mxu1 %vm733_vm1, %v1259_v41 }
  0x5d   : > { %4406 = vmatmul.mubr.msk.bf16.gmra.mrb[36].mxu1 %vm733_vm1, %v1260_v50 }
  0x5e   : > { %4409 = vmatprep.mubr.msk.bf16.mxu1 %vm733_vm1, %v1261_v51 }
  0x65   : > { %4410 = vmatmul.mubr.msk.bf16.gmra.mrb[40].mxu1 %vm733_vm1, %v1262_v60 }
  0x66   : > { %4413 = vmatprep.mubr.msk.bf16.mxu1 %vm733_vm1, %v1263_v61 }
  0x6d   : > { %4414 = vmatmul.mubr.msk.bf16.gmra.mrb[44].mxu1 %vm733_vm1, %v1264_v2 }
  0xe7   : > { %v4351_v12 = vpop.f32.mrb[0].mxu0 }
  0xe8   : > { %v487_v13 = vadd.f32 %v4351_v12, %v5077_v11  ;;  %v4367_v14 = vpop.f32.mrb[0].mxu1  ;;  %v478_v15 = vpop.f32.mrb[1].mxu0 }
  0xe9   : > { %v551_v16 = vadd.f32 %v4367_v14, %v5077_v11  ;;  %v479_v17 = vadd.f32 %v5077_v11, %v478_v15  ;;  %v542_v18 = vpop.f32.mrb[1].mxu1  ;;  %v4352_v19 = vpop.f32.mrb[2].mxu0 }
  0xea   : > { %v607_v20 = vmul.f32 0.5, %v487_v13  ;;  %v543_v21 = vadd.f32 %v5077_v11, %v542_v18  ;;  %v4368_v22 = vpop.f32.mrb[2].mxu1  ;;  %v490_v23 = vadd.f32 %v4352_v19, %v5077_v11  ;;  %v481_v24 = vpop.f32.mrb[3].mxu0 }
  0xeb   : > { %v623_v25 = vmul.f32 0.5, %v551_v16  ;;  %v605_v26 = vmul.f32 0.5, %v479_v17  ;;  %v554_v27 = vadd.f32 %v4368_v22, %v5077_v11  ;;  %v545_v28 = vpop.f32.mrb[3].mxu1  ;;  %v482_v29 = vadd.f32 %v5077_v11, %v481_v24 }
  0xec   : > { %4771 = vtanh.f32 %v607_v20  ;;  %v621_v30 = vmul.f32 0.5, %v543_v21  ;;  %v546_v31 = vadd.f32 %v5077_v11, %v545_v28  ;;  %v608_v34 = vmul.f32 0.5, %v490_v23 }
  0xed   : > { %4773 = vtanh.f32 %v623_v25  ;;  %v624_v32 = vmul.f32 0.5, %v554_v27  ;;  %v606_v35 = vmul.f32 0.5, %v482_v29 }
  0xee   : > { %4775 = vtanh.f32 %v605_v26  ;;  %v622_v33 = vmul.f32 0.5, %v546_v31 }
  0xef   : > { %4777 = vtanh.f32 %v621_v30  ;;  %v4355_v36 = vpop.f32.mrb[4].mxu0 }
  0xf0   : > { %4779 = vtanh.f32 %v624_v32  ;;  %v503_v37 = vadd.f32 %v4355_v36, %v5077_v11  ;;  %v4371_v38 = vpop.f32.mrb[4].mxu1  ;;  %v494_v39 = vpop.f32.mrb[5].mxu0 }
  0xf1   : > { %4781 = vtanh.f32 %v622_v33  ;;  %v567_v40 = vadd.f32 %v4371_v38, %v5077_v11  ;;  %v495_v41 = vadd.f32 %v5077_v11, %v494_v39  ;;  %v558_v42 = vpop.f32.mrb[5].mxu1  ;;  %v4356_v43 = vpop.f32.mrb[6].mxu0 }
  0xf2   : > { %4783 = vtanh.f32 %v608_v34  ;;  %v611_v44 = vmul.f32 0.5, %v503_v37  ;;  %v559_v45 = vadd.f32 %v5077_v11, %v558_v42  ;;  %v506_v46 = vadd.f32 %v4356_v43, %v5077_v11  ;;  %v4372_v47 = vpop.f32.mrb[6].mxu1  ;;  %v497_v48 = vpop.f32.mrb[7].mxu0 }
  0xf3   : > { %4785 = vtanh.f32 %v606_v35  ;;  %v627_v49 = vmul.f32 0.5, %v567_v40  ;;  %v609_v50 = vmul.f32 0.5, %v495_v41  ;;  %v570_v51 = vadd.f32 %v4372_v47, %v5077_v11  ;;  %v561_v52 = vpop.f32.mrb[7].mxu1 }
  0xf4   : > { %4787 = vtanh.f32 %v611_v44  ;;  %v625_v53 = vmul.f32 0.5, %v559_v45  ;;  %v612_v54 = vmul.f32 0.5, %v506_v46  ;;  %v498_v55 = vadd.f32 %v5077_v11, %v497_v48 }
  0xf5   : > { %4789 = vtanh.f32 %v627_v49  ;;  %v628_v56 = vmul.f32 0.5, %v570_v51  ;;  %v562_v57 = vadd.f32 %v5077_v11, %v561_v52 }
  0xf6   : > { %v4772_v58 = vpop.eup %4771  ;;  %4791 = vtanh.f32 %v609_v50  ;;  %v610_v59 = vmul.f32 0.5, %v498_v55 }
  0xf7   : > { %v4774_v60 = vpop.eup %4773  ;;  %v671_v61 = vmul.f32 0.5, %v4772_v58  ;;  %4793 = vtanh.f32 %v625_v53  ;;  %v626_v62 = vmul.f32 0.5, %v562_v57  ;;  %v4359_v63 = vpop.f32.mrb[8].mxu0 }
  0xf8   : > { %v4776_v0 = vpop.eup %4775  ;;  %v687_v1 = vmul.f32 0.5, %v4774_v60  ;;  %4795 = vtanh.f32 %v612_v54  ;;  %v519_v2 = vadd.f32 %v4359_v63, %v5077_v11  ;;  %v4375_v3 = vpop.f32.mrb[8].mxu1 }
  0xf9   : > { %v510_v4 = vpop.f32.mrb[9].mxu0  ;;  %v4778_v5 = vpop.eup %4777  ;;  %v5096_v6 = vadd.f32 0.5, %v671_v61  ;;  %v669_v7 = vmul.f32 0.5, %v4776_v0  ;;  %4797 = vtanh.f32 %v628_v56  ;;  %v583_v8 = vadd.f32 %v4375_v3, %v5077_v11 }
  0xfa   : > { %v574_v9 = vpop.f32.mrb[9].mxu1  ;;  %v4360_v10 = vpop.f32.mrb[10].mxu0  ;;  %v5099_v13 = vadd.f32 0.5, %v687_v1  ;;  %v685_v14 = vmul.f32 0.5, %v4778_v5  ;;  %4799 = vtanh.f32 %v610_v59  ;;  %v615_v15 = vmul.f32 0.5, %v519_v2 }
  0xfb   : > { %v4780_v12 = vpop.eup %4779  ;;  %v4376_v16 = vpop.f32.mrb[10].mxu1  ;;  %736 = vst.msk [vmem:[#allocation2 + $0x10] sm:$0xff] %vm733_vm1, %v5096_v6  ;;  %v5103_v19 = vadd.f32 0.5, %v669_v7  ;;  %4801 = vtanh.f32 %v626_v62  ;;  %v631_v21 = vmul.f32 0.5, %v583_v8  ;;  %802 = vrot.lane.b32.xlu1 %v5096_v6, %s4875_s19  ;;  %v511_v26 = vadd.f32 %v5077_v11, %v510_v4 }
  0xfc   : > { %v513_v17 = vpop.f32.mrb[11].mxu0  ;;  %v4782_v18 = vpop.eup %4781  ;;  %v688_v20 = vmul.f32 0.5, %v4780_v12  ;;  %752 = vst.msk [vmem:[#allocation2 + $0x90] sm:$0xff] %vm733_vm1, %v5099_v13  ;;  %v5109_v24 = vadd.f32 0.5, %v685_v14  ;;  %4803 = vtanh.f32 %v615_v15  ;;  %v575_v30 = vadd.f32 %v5077_v11, %v574_v9 }
  0xfd   : > { %v577_v22 = vpop.f32.mrb[11].mxu1  ;;  %v4784_v23 = vpop.eup %4783  ;;  %v686_v25 = vmul.f32 0.5, %v4782_v18  ;;  %734 = vst.msk [vmem:[#allocation2] sm:$0xff] %vm733_vm1, %v5103_v19  ;;  %4805 = vtanh.f32 %v631_v21  ;;  %798 = vrot.lane.b32.xlu0 %v5103_v19, %s4875_s19  ;;  %v613_v34 = vmul.f32 0.5, %v511_v26  ;;  %v522_v35 = vadd.f32 %v4360_v10, %v5077_v11 }
  0xfe   : > { %v4786_v27 = vpop.eup %4785  ;;  %v5114_v28 = vadd.f32 0.5, %v688_v20  ;;  %v672_v29 = vmul.f32 0.5, %v4784_v23  ;;  %750 = vst.msk [vmem:[#allocation2 + $0x80] sm:$0xff] %vm733_vm1, %v5109_v24  ;;  %v629_v39 = vmul.f32 0.5, %v575_v30  ;;  %v586_v40 = vadd.f32 %v4376_v16, %v5077_v11 }
  0xff   : > { %v4788_v31 = vpop.eup %4787  ;;  %v5121_v32 = vadd.f32 0.5, %v686_v25  ;;  %v670_v33 = vmul.f32 0.5, %v4786_v27  ;;  %v4363_v41 = vpop.f32.mrb[12].mxu0  ;;  %4807 = vtanh.f32 %v613_v34  ;;  %v616_v45 = vmul.f32 0.5, %v522_v35 }
 0x100   : > { %v4790_v36 = vpop.eup %4789  ;;  %753 = vst.msk [vmem:[#allocation2 + $0x98] sm:$0xff] %vm733_vm1, %v5114_v28  ;;  %v5126_v37 = vadd.f32 0.5, %v672_v29  ;;  %v675_v38 = vmul.f32 0.5, %v4788_v31  ;;  %v4379_v46 = vpop.f32.mrb[12].mxu1  ;;  %4809 = vtanh.f32 %v629_v39  ;;  %v632_v51 = vmul.f32 0.5, %v586_v40 }
 0x101   : > { %v4792_v42 = vpop.eup %4791  ;;  %751 = vst.msk [vmem:[#allocation2 + $0x88] sm:$0xff] %vm733_vm1, %v5121_v32  ;;  %v5131_v43 = vadd.f32 0.5, %v670_v33  ;;  %v691_v44 = vmul.f32 0.5, %v4790_v36  ;;  %v526_v47 = vpop.f32.mrb[13].mxu0  ;;  %4811 = vtanh.f32 %v616_v45  ;;  %v514_v57 = vadd.f32 %v5077_v11, %v513_v17 }
 0x102   : > { %v4794_v48 = vpop.eup %4793  ;;  %737 = vst.msk [vmem:[#allocation2 + $0x18] sm:$0xff] %vm733_vm1, %v5126_v37  ;;  %v5135_v49 = vadd.f32 0.5, %v675_v38  ;;  %v673_v50 = vmul.f32 0.5, %v4792_v42  ;;  %v590_v52 = vpop.f32.mrb[13].mxu1  ;;  %804 = vrot.lane.b32.xlu1 %v5126_v37, %s4875_s19  ;;  %4813 = vtanh.f32 %v632_v51  ;;  %v578_v63 = vadd.f32 %v5077_v11, %v577_v22 }
 0x103   : > { %v4364_v53 = vpop.f32.mrb[14].mxu0  ;;  %v4796_v54 = vpop.eup %4795  ;;  %735 = vst.msk [vmem:[#allocation2 + $0x8] sm:$0xff] %vm733_vm1, %v5131_v43  ;;  %v5141_v55 = vadd.f32 0.5, %v691_v44  ;;  %v689_v56 = vmul.f32 0.5, %v4794_v48  ;;  %800 = vrot.lane.b32.xlu0 %v5131_v43, %s4875_s19  ;;  %v614_v4 = vmul.f32 0.5, %v514_v57  ;;  %v535_v5 = vadd.f32 %v4363_v41, %v5077_v11 }
 0x104   : > { %v4380_v58 = vpop.f32.mrb[14].mxu1  ;;  %v529_v59 = vpop.f32.mrb[15].mxu0  ;;  %740 = vst.msk [vmem:[#allocation2 + $0x30] sm:$0xff] %vm733_vm1, %v5135_v49  ;;  %v5148_v61 = vadd.f32 0.5, %v673_v50  ;;  %v676_v62 = vmul.f32 0.5, %v4796_v54  ;;  %v630_v10 = vmul.f32 0.5, %v578_v63  ;;  %v599_v12 = vadd.f32 %v4379_v46, %v5077_v11 }
 0x105   : > { %v4798_v60 = vpop.eup %4797  ;;  %v593_v0 = vpop.f32.mrb[15].mxu1  ;;  %756 = vst.msk [vmem:[#allocation2 + $0xb0] sm:$0xff] %vm733_vm1, %v5141_v55  ;;  %v5153_v2 = vadd.f32 0.5, %v689_v56  ;;  %4815 = vtanh.f32 %v614_v4  ;;  %v619_v17 = vmul.f32 0.5, %v535_v5  ;;  %v527_v26 = vadd.f32 %v5077_v11, %v526_v47  ;;  %v5198_v47 = vld [vmem:[%s6455_s5] ss:$0 sm:$0xff] }
 0x106   : > { %v4800_v1 = vpop.eup %4799  ;;  %v692_v3 = vmul.f32 0.5, %v4798_v60  ;;  %738 = vst.msk [vmem:[#allocation2 + $0x20] sm:$0xff] %vm733_vm1, %v5148_v61  ;;  %v5158_v8 = vadd.f32 0.5, %v676_v62  ;;  %4817 = vtanh.f32 %v630_v10  ;;  %v635_v22 = vmul.f32 0.5, %v599_v12 }
 0x107   : > { %v4802_v7 = vpop.eup %4801  ;;  %v674_v9 = vmul.f32 0.5, %v4800_v1  ;;  %754 = vst.msk [vmem:[#allocation2 + $0xa0] sm:$0xff] %vm733_vm1, %v5153_v2  ;;  %806 = vrot.lane.b32.xlu0 %v5148_v61, %s4875_s19  ;;  %4819 = vtanh.f32 %v619_v17  ;;  %v591_v30 = vadd.f32 %v5077_v11, %v590_v52  ;;  %v538_v31 = vadd.f32 %v4364_v53, %v5077_v11 }
 0x108   : > { %v4804_v14 = vpop.eup %4803  ;;  %v5163_v15 = vadd.f32 0.5, %v692_v3  ;;  %v690_v16 = vmul.f32 0.5, %v4802_v7  ;;  %741 = vst.msk [vmem:[#allocation2 + $0x38] sm:$0xff] %vm733_vm1, %v5158_v8  ;;  %v4387_v27 = vpop.f32.mrb[16].mxu1  ;;  %4821 = vtanh.f32 %v635_v22  ;;  %v617_v36 = vmul.f32 0.5, %v527_v26 }
 0x109   : > { %v4806_v18 = vpop.eup %4805  ;;  %v5169_v20 = vadd.f32 0.5, %v674_v9  ;;  %v679_v21 = vmul.f32 0.5, %v4804_v14  ;;  %v1370_v33 = vpop.f32.mrb[17].mxu1  ;;  %v602_v38 = vadd.f32 %v4380_v58, %v5077_v11  ;;  %v594_v39 = vadd.f32 %v5077_v11, %v593_v0 }
 0x10a   : > { %757 = vst.msk [vmem:[#allocation2 + $0xb8] sm:$0xff] %vm733_vm1, %v5163_v15  ;;  %v5173_v23 = vadd.f32 0.5, %v690_v16  ;;  %v695_v25 = vmul.f32 0.5, %v4806_v18  ;;  %v4808_v34 = vpop.eup %4807  ;;  %v4388_v40 = vpop.f32.mrb[18].mxu1  ;;  %v633_v44 = vmul.f32 0.5, %v591_v30  ;;  %v620_v45 = vmul.f32 0.5, %v538_v31 }
 0x10b   : > { %739 = vst.msk [vmem:[#allocation2 + $0x28] sm:$0xff] %vm733_vm1, %v5169_v20  ;;  %v5178_v29 = vadd.f32 0.5, %v679_v21  ;;  %808 = vrot.lane.b32.xlu1 %v5169_v20, %s4875_s19  ;;  %810 = vrot.lane.b32.xlu0 %v5135_v49, %s4875_s19  ;;  %v4810_v41 = vpop.eup %4809  ;;  %v677_v42 = vmul.f32 0.5, %v4808_v34  ;;  %v530_v46 = vadd.f32 %v5077_v11, %v529_v59  ;;  %v1373_v48 = vpop.f32.mrb[19].mxu1  ;;  %4823 = vtanh.f32 %v617_v36 }
 0x10c   : > { %755 = vst.msk [vmem:[#allocation2 + $0xa8] sm:$0xff] %vm733_vm1, %v5173_v23  ;;  %v5186_v35 = vadd.f32 0.5, %v695_v25  ;;  %v4812_v50 = vpop.eup %4811  ;;  %v693_v51 = vmul.f32 0.5, %v4810_v41  ;;  %v636_v52 = vmul.f32 0.5, %v602_v38  ;;  %v634_v53 = vmul.f32 0.5, %v594_v39 }
 0x10d   : > { %744 = vst.msk [vmem:[#allocation2 + $0x50] sm:$0xff] %vm733_vm1, %v5178_v29  ;;  %v4814_v54 = vpop.eup %4813  ;;  %v5202_v56 = vadd.f32 0.5, %v677_v42  ;;  %v680_v57 = vmul.f32 0.5, %v4812_v50  ;;  %4825 = vtanh.f32 %v633_v44  ;;  %v618_v11 = vmul.f32 0.5, %v530_v46 }
 0x10e   : > { %760 = vst.msk [vmem:[#allocation2 + $0xd0] sm:$0xff] %vm733_vm1, %v5186_v35  ;;  %v5206_v58 = vadd.f32 0.5, %v693_v51  ;;  %v696_v59 = vmul.f32 0.5, %v4814_v54  ;;  %4827 = vtanh.f32 %v620_v45  ;;  %v1379_v60 = vadd.f32 %v4387_v27, %v5198_v47 }
 0x10f   : > { %812 = vrot.lane.b32.xlu1 %v5158_v8, %s4875_s19  ;;  %742 = vst.msk [vmem:[#allocation2 + $0x40] sm:$0xff] %vm733_vm1, %v5202_v56  ;;  %v5211_v62 = vadd.f32 0.5, %v680_v57  ;;  %4829 = vtanh.f32 %v636_v52  ;;  %v1371_v63 = vadd.f32 %v5198_v47, %v1370_v33  ;;  %v1382_v0 = vadd.f32 %v4388_v40, %v5198_v47  ;;  %814 = vrot.lane.b32.xlu0 %v5202_v56, %s4875_s19  ;;  %v4816_v1 = vpop.eup %4815 }
 0x110   : > { %758 = vst.msk [vmem:[#allocation2 + $0xc0] sm:$0xff] %vm733_vm1, %v5206_v58  ;;  %v5219_v3 = vadd.f32 0.5, %v696_v59  ;;  %4831 = vtanh.f32 %v634_v53  ;;  %v1499_v4 = vmax.f32 %v1379_v60, 0.0  ;;  %v1374_v5 = vadd.f32 %v5198_v47, %v1373_v48  ;;  %v4391_v7 = vpop.f32.mrb[20].mxu1  ;;  %v4818_v9 = vpop.eup %4817 }
 0x111   : > { %745 = vst.msk [vmem:[#allocation2 + $0x58] sm:$0xff] %vm733_vm1, %v5211_v62  ;;  %v678_v10 = vmul.f32 0.5, %v4816_v1  ;;  %4833 = vtanh.f32 %v618_v11  ;;  %v1497_v12 = vmax.f32 %v1371_v63, 0.0  ;;  %v1500_v14 = vmax.f32 %v1382_v0, 0.0  ;;  %v1386_v16 = vpop.f32.mrb[21].mxu1  ;;  %v4820_v17 = vpop.eup %4819 }
 0x112   : > { %761 = vst.msk [vmem:[#allocation2 + $0xd8] sm:$0xff] %vm733_vm1, %v5219_v3  ;;  %v694_v18 = vmul.f32 0.5, %v4818_v9  ;;  %v1498_v21 = vmax.f32 %v1374_v5, 0.0  ;;  %v1395_v22 = vadd.f32 %v4391_v7, %v5198_v47  ;;  %v1387_v25 = vadd.f32 %v5198_v47, %v1386_v16  ;;  %v4392_v26 = vpop.f32.mrb[22].mxu1  ;;  %v4822_v27 = vpop.eup %4821 }
 0x113   : > { %v5228_v30 = vadd.f32 0.5, %v678_v10  ;;  %v683_v31 = vmul.f32 0.5, %v4820_v17  ;;  %v1530_v33 = vpack.c.bf16 %v1500_v14, %v1499_v4  ;;  %818 = vrot.lane.b32.xlu0 %v5178_v29, %s4875_s19  ;;  %v1398_v34 = vadd.f32 %v4392_v26, %v5198_v47  ;;  %v1389_v36 = vpop.f32.mrb[23].mxu1 }
 0x114   : > { %v5233_v38 = vadd.f32 0.5, %v694_v18  ;;  %v699_v39 = vmul.f32 0.5, %v4822_v27  ;;  %v1529_v40 = vpack.c.bf16 %v1498_v21, %v1497_v12  ;;  %v1503_v42 = vmax.f32 %v1395_v22, 0.0 }
 0x115   : > { %743 = vst.msk [vmem:[#allocation2 + $0x48] sm:$0xff] %vm733_vm1, %v5228_v30  ;;  %v5237_v41 = vadd.f32 0.5, %v683_v31  ;;  %816 = vrot.lane.b32.xlu1 %v5228_v30, %s4875_s19  ;;  %v1504_v44 = vmax.f32 %v1398_v34, 0.0  ;;  %v1390_v45 = vadd.f32 %v5198_v47, %v1389_v36  ;;  %v4824_v46 = vpop.eup %4823  ;;  %v1501_v52 = vmax.f32 %v1387_v25, 0.0 }
 0x116   : > { %759 = vst.msk [vmem:[#allocation2 + $0xc8] sm:$0xff] %vm733_vm1, %v5233_v38  ;;  %v5244_v48 = vadd.f32 0.5, %v699_v39  ;;  %4433 = vmatprep.mubr.bf16.mxu0 %v1529_v40  ;;  %v681_v51 = vmul.f32 0.5, %v4824_v46 }
 0x117   : > { %v4826_v50 = vpop.eup %4825  ;;  %748 = vst.msk [vmem:[#allocation2 + $0x70] sm:$0xff] %vm733_vm1, %v5237_v41  ;;  %v1532_v53 = vpack.c.bf16 %v1504_v44, %v1503_v42  ;;  %v1502_v54 = vmax.f32 %v1390_v45, 0.0  ;;  %4434 = vmatmul.mubr.bf16.vlgmr.msra.gmra.mrb[16].mxu0 %v1530_v33 }
 0x118   : > { %v4828_v57 = vpop.eup %4827  ;;  %764 = vst.msk [vmem:[#allocation2 + $0xf0] sm:$0xff] %vm733_vm1, %v5244_v48  ;;  %v697_v11 = vmul.f32 0.5, %v4826_v50  ;;  %v4395_v59 = vpop.f32.mrb[24].mxu1  ;;  %v5250_v63 = vadd.f32 0.5, %v681_v51 }
 0x119   : > { %v4830_v60 = vpop.eup %4829  ;;  %v684_v0 = vmul.f32 0.5, %v4828_v57  ;;  %820 = vrot.lane.b32.xlu1 %v5211_v62, %s4875_s19  ;;  %v1531_v1 = vpack.c.bf16 %v1502_v54, %v1501_v52  ;;  %v1411_v4 = vadd.f32 %v4395_v59, %v5198_v47  ;;  %v1402_v5 = vpop.f32.mrb[25].mxu1 }
 0x11a   : > { %v4832_v7 = vpop.eup %4831  ;;  %v5255_v9 = vadd.f32 0.5, %v697_v11  ;;  %v700_v10 = vmul.f32 0.5, %v4830_v60  ;;  %v1403_v12 = vadd.f32 %v5198_v47, %v1402_v5  ;;  %v4396_v14 = vpop.f32.mrb[26].mxu1  ;;  %746 = vst.msk [vmem:[#allocation2 + $0x60] sm:$0xff] %vm733_vm1, %v5250_v63  ;;  %822 = vrot.lane.b32.xlu0 %v5250_v63, %s4875_s19 }
 0x11b   : > { %v4834_v16 = vpop.eup %4833  ;;  %v5260_v17 = vadd.f32 0.5, %v684_v0  ;;  %v698_v18 = vmul.f32 0.5, %v4832_v7  ;;  %v1414_v21 = vadd.f32 %v4396_v14, %v5198_v47  ;;  %4437 = vmatprep.mubr.bf16.mxu0 %v1531_v1  ;;  %v1405_v22 = vpop.f32.mrb[27].mxu1  ;;  %v1507_v33 = vmax.f32 %v1411_v4, 0.0 }
 0x11c   : > { %762 = vst.msk [vmem:[#allocation2 + $0xe0] sm:$0xff] %vm733_vm1, %v5255_v9  ;;  %v5267_v25 = vadd.f32 0.5, %v700_v10  ;;  %v682_v26 = vmul.f32 0.5, %v4834_v16  ;;  %v1406_v27 = vadd.f32 %v5198_v47, %v1405_v22  ;;  %v1505_v39 = vmax.f32 %v1403_v12, 0.0 }
 0x11d   : > { %749 = vst.msk [vmem:[#allocation2 + $0x78] sm:$0xff] %vm733_vm1, %v5260_v17  ;;  %v5272_v31 = vadd.f32 0.5, %v698_v18  ;;  %v1508_v34 = vmax.f32 %v1414_v21, 0.0 }
 0x11e   : > { %765 = vst.msk [vmem:[#allocation2 + $0xf8] sm:$0xff] %vm733_vm1, %v5267_v25  ;;  %v5276_v36 = vadd.f32 0.5, %v682_v26  ;;  %v1506_v40 = vmax.f32 %v1406_v27, 0.0  ;;  %826 = vrot.lane.b32.xlu0 %v5237_v41, %s4875_s19 }
 0x11f   : > { %763 = vst.msk [vmem:[#allocation2 + $0xe8] sm:$0xff] %vm733_vm1, %v5272_v31  ;;  %v1534_v42 = vpack.c.bf16 %v1508_v34, %v1507_v33  ;;  %4438 = vmatmul.mubr.bf16.gmra.mrb[20].mxu0 %v1532_v53 }
 0x120   : > { %747 = vst.msk [vmem:[#allocation2 + $0x68] sm:$0xff] %vm733_vm1, %v5276_v36  ;;  %824 = vrot.lane.b32.xlu1 %v5276_v36, %s4875_s19  ;;  %v1533_v44 = vpack.c.bf16 %v1506_v40, %v1505_v39  ;;  %v4399_v45 = vpop.f32.mrb[28].mxu1 }
 0x121   : > { %v1427_v46 = vadd.f32 %v4399_v45, %v5198_v47  ;;  %v1418_v50 = vpop.f32.mrb[29].mxu1 }
 0x122   : > { %v1419_v51 = vadd.f32 %v5198_v47, %v1418_v50  ;;  %v4400_v52 = vpop.f32.mrb[30].mxu1  ;;  %4441 = vmatprep.mubr.bf16.mxu0 %v1533_v44  ;;  %830 = vrot.lane.b32.xlu0 %v5109_v24, %s4875_s19 }
 0x123   : > { %v1430_v53 = vadd.f32 %v4400_v52, %v5198_v47  ;;  %v1421_v54 = vpop.f32.mrb[31].mxu1  ;;  %v1511_v11 = vmax.f32 %v1427_v46, 0.0 }
 0x124   : > { %828 = vrot.lane.b32.xlu1 %v5260_v17, %s4875_s19  ;;  %v1422_v57 = vadd.f32 %v5198_v47, %v1421_v54  ;;  %v1509_v60 = vmax.f32 %v1419_v51, 0.0 }
 0x125   : > { %v1512_v59 = vmax.f32 %v1430_v53, 0.0 }
 0x126   : > { %v1510_v0 = vmax.f32 %v1422_v57, 0.0  ;;  %834 = vrot.lane.b32.xlu0 %v5099_v13, %s4875_s19 }
 0x127   : > { %v1536_v1 = vpack.c.bf16 %v1512_v59, %v1511_v11  ;;  %4442 = vmatmul.mubr.bf16.gmra.mrb[24].mxu0 %v1534_v42 }
 0x128   : > { %832 = vrot.lane.b32.xlu1 %v5121_v32, %s4875_s19  ;;  %v1535_v4 = vpack.c.bf16 %v1510_v0, %v1509_v60  ;;  %v4403_v5 = vpop.f32.mrb[32].mxu1 }
 0x129   : > { %v1443_v7 = vadd.f32 %v4403_v5, %v5198_v47  ;;  %v1434_v10 = vpop.f32.mrb[33].mxu1 }
 0x12a   : > { %v1435_v12 = vadd.f32 %v5198_v47, %v1434_v10  ;;  %v4404_v14 = vpop.f32.mrb[34].mxu1  ;;  %4445 = vmatprep.mubr.bf16.mxu0 %v1535_v4  ;;  %838 = vrot.lane.b32.xlu0 %v5153_v2, %s4875_s19 }
 0x12b   : > { %v1446_v16 = vadd.f32 %v4404_v14, %v5198_v47  ;;  %v1437_v18 = vpop.f32.mrb[35].mxu1  ;;  %v1515_v22 = vmax.f32 %v1443_v7, 0.0 }
 0x12c   : > { %836 = vrot.lane.b32.xlu1 %v5114_v28, %s4875_s19  ;;  %v1438_v21 = vadd.f32 %v5198_v47, %v1437_v18  ;;  %v1513_v27 = vmax.f32 %v1435_v12, 0.0 }
 0x12d   : > { %v1516_v26 = vmax.f32 %v1446_v16, 0.0  ;;  %v4741_v16 = vld [vmem:[%s6452_s2 + $0x10] sm:$0xff]  }
 0x12e   : > { %v1514_v33 = vmax.f32 %v1438_v21, 0.0  ;;  %842 = vrot.lane.b32.xlu0 %v5141_v55, %s4875_s19  ;;  %4465 = vmatprep.subr.bf16.mxu1 %v4741_v16 }
 0x12f   : > { %v1538_v34 = vpack.c.bf16 %v1516_v26, %v1515_v22  ;;  %4446 = vmatmul.mubr.bf16.gmra.mrb[28].mxu0 %v1536_v1  ;;  %4466 = vmatpush3.bf16.msra.mxu1 %v4741_v16 }
 0x130   : > { %840 = vrot.lane.b32.xlu1 %v5173_v23, %s4875_s19  ;;  %v1537_v39 = vpack.c.bf16 %v1514_v33, %v1513_v27  ;;  %v4407_v40 = vpop.f32.mrb[36].mxu1 }
 0x131   : > { %v1459_v42 = vadd.f32 %v4407_v40, %v5198_v47  ;;  %v1450_v44 = vpop.f32.mrb[37].mxu1 }
 0x132   : > { %v1451_v45 = vadd.f32 %v5198_v47, %v1450_v44  ;;  %v4408_v46 = vpop.f32.mrb[38].mxu1  ;;  %4449 = vmatprep.mubr.bf16.mxu0 %v1537_v39  ;;  %846 = vrot.lane.b32.xlu0 %v5206_v58, %s4875_s19 }
 0x133   : > { %v1462_v50 = vadd.f32 %v4408_v46, %v5198_v47  ;;  %v1453_v51 = vpop.f32.mrb[39].mxu1  ;;  %v1519_v53 = vmax.f32 %v1459_v42, 0.0 }
 0x134   : > { %844 = vrot.lane.b32.xlu1 %v5163_v15, %s4875_s19  ;;  %v1454_v52 = vadd.f32 %v5198_v47, %v1453_v51  ;;  %v1517_v57 = vmax.f32 %v1451_v45, 0.0 }
 0x135   : > { %v1520_v54 = vmax.f32 %v1462_v50, 0.0 }
 0x136   : > { %v1518_v11 = vmax.f32 %v1454_v52, 0.0  ;;  %850 = vrot.lane.b32.xlu0 %v5186_v35, %s4875_s19 }
 0x137   : > { %v1540_v59 = vpack.c.bf16 %v1520_v54, %v1519_v53  ;;  %4450 = vmatmul.mubr.bf16.gmra.mrb[32].mxu0 %v1538_v34 }
 0x138   : > { %848 = vrot.lane.b32.xlu1 %v5233_v38, %s4875_s19  ;;  %v1539_v60 = vpack.c.bf16 %v1518_v11, %v1517_v57  ;;  %v4411_v0 = vpop.f32.mrb[40].mxu1 }
 0x139   : > { %v1475_v1 = vadd.f32 %v4411_v0, %v5198_v47  ;;  %v1466_v4 = vpop.f32.mrb[41].mxu1 }
 0x13a   : > { %v1467_v5 = vadd.f32 %v5198_v47, %v1466_v4  ;;  %v4412_v7 = vpop.f32.mrb[42].mxu1  ;;  %4453 = vmatprep.mubr.bf16.mxu0 %v1539_v60  ;;  %854 = vrot.lane.b32.xlu0 %v5255_v9, %s4875_s19 }
 0x13b   : > { %v1478_v10 = vadd.f32 %v4412_v7, %v5198_v47  ;;  %v1469_v12 = vpop.f32.mrb[43].mxu1  ;;  %v1523_v18 = vmax.f32 %v1475_v1, 0.0 }
 0x13c   : > { %852 = vrot.lane.b32.xlu1 %v5219_v3, %s4875_s19  ;;  %v1470_v14 = vadd.f32 %v5198_v47, %v1469_v12  ;;  %v1521_v22 = vmax.f32 %v1467_v5, 0.0 }
 0x13d   : > { %v1524_v21 = vmax.f32 %v1478_v10, 0.0 }
 0x13e   : > { %v1522_v26 = vmax.f32 %v1470_v14, 0.0  ;;  %858 = vrot.lane.b32.xlu0 %v5244_v48, %s4875_s19 }
 0x13f   : > { %v1542_v27 = vpack.c.bf16 %v1524_v21, %v1523_v18  ;;  %4454 = vmatmul.mubr.bf16.gmra.mrb[36].mxu0 %v1540_v59 }
 0x140   : > { %856 = vrot.lane.b32.xlu1 %v5272_v31, %s4875_s19  ;;  %v1541_v33 = vpack.c.bf16 %v1522_v26, %v1521_v22  ;;  %v4415_v34 = vpop.f32.mrb[44].mxu1 }
 0x141   : > { %v1491_v39 = vadd.f32 %v4415_v34, %v5198_v47  ;;  %v1482_v40 = vpop.f32.mrb[45].mxu1 }
 0x142   : > { %v1483_v42 = vadd.f32 %v5198_v47, %v1482_v40  ;;  %v4416_v44 = vpop.f32.mrb[46].mxu1  ;;  %4457 = vmatprep.mubr.bf16.mxu0 %v1541_v33  ;;  %927 = vrot.lane.b32.xlu0 %v5103_v19, %s4876_s25 }
 0x143   : > { %v1494_v45 = vadd.f32 %v4416_v44, %v5198_v47  ;;  %v1485_v46 = vpop.f32.mrb[47].mxu1  ;;  %v1527_v51 = vmax.f32 %v1491_v39, 0.0 }
 0x144   : > { %860 = vrot.lane.b32.xlu1 %v5267_v25, %s4875_s19  ;;  %v1486_v50 = vadd.f32 %v5198_v47, %v1485_v46  ;;  %v1525_v53 = vmax.f32 %v1483_v42, 0.0  ;;  %v4742_v47 = vld [vmem:[%s6452_s2 + $0x18] sm:$0xff]  }
 0x145   : > { %v1528_v52 = vmax.f32 %v1494_v45, 0.0  ;;  %4467 = vmatprep.subr.bf16.mxu1 %v4742_v47 }
 0x146   : > { %v1526_v54 = vmax.f32 %v1486_v50, 0.0  ;;  %931 = vrot.lane.b32.xlu0 %v5096_v6, %s4876_s25  ;;  %4468 = vmatpush3.bf16.msra.mxu1 %v4742_v47 }
 0x147   : > { %v1544_v57 = vpack.c.bf16 %v1528_v52, %v1527_v51  ;;  %4458 = vmatmul.mubr.bf16.gmra.mrb[40].mxu0 %v1542_v27 }
 0x148   : > { %929 = vrot.lane.b32.xlu1 %v5131_v43, %s4876_s25  ;;  %v1543_v11 = vpack.c.bf16 %v1526_v54, %v1525_v53 }
 0x14a   : > { %4461 = vmatprep.mubr.bf16.mxu0 %v1543_v11  ;;  %935 = vrot.lane.b32.xlu0 %v5148_v61, %s4876_s25 }
 0x14c   : > { %933 = vrot.lane.b32.xlu1 %v5126_v37, %s4876_s25 }
 0x14e   : > { %939 = vrot.lane.b32.xlu0 %v5135_v49, %s4876_s25 }
 0x14f   : > { %4462 = vmatmul.mubr.bf16.gmra.mrb[44].mxu0 %v1544_v57 }
 0x150   : > { %937 = vrot.lane.b32.xlu1 %v5169_v20, %s4876_s25 }
 0x152   : > { %943 = vrot.lane.b32.xlu0 %v5202_v56, %s4876_s25 }
 0x154   : > { %941 = vrot.lane.b32.xlu1 %v5158_v8, %s4876_s25 }
 0x156   : > { %947 = vrot.lane.b32.xlu0 %v5178_v29, %s4876_s25 }
 0x158   : > { %945 = vrot.lane.b32.xlu1 %v5228_v30, %s4876_s25 }
 0x15a   : > { %951 = vrot.lane.b32.xlu0 %v5250_v63, %s4876_s25 }
 0x15c   : > { %949 = vrot.lane.b32.xlu1 %v5211_v62, %s4876_s25 }
 0x15e   : > { %955 = vrot.lane.b32.xlu0 %v5237_v41, %s4876_s25 }
 0x160   : > { %953 = vrot.lane.b32.xlu1 %v5276_v36, %s4876_s25 }
 0x162   : > { %959 = vrot.lane.b32.xlu0 %v5109_v24, %s4876_s25 }
 0x164   : > { %957 = vrot.lane.b32.xlu1 %v5260_v17, %s4876_s25 }
 0x166   : > { %963 = vrot.lane.b32.xlu0 %v5099_v13, %s4876_s25 }
 0x168   : > { %961 = vrot.lane.b32.xlu1 %v5121_v32, %s4876_s25 }
 0x16a   : > { %967 = vrot.lane.b32.xlu0 %v5153_v2, %s4876_s25 }
 0x16c   : > { %965 = vrot.lane.b32.xlu1 %v5114_v28, %s4876_s25 }
 0x16d   : > { %v803_v59 = vpop.permute.xlu1 %802 }
 0x16e   : > { %897 = vst.msk [vmem:[#allocation2 + $0x110] sm:$0xff] %vm733_vm1, %v803_v59  ;;  %971 = vrot.lane.b32.xlu0 %v5141_v55, %s4876_s25  ;;  %v5555_v59 = vld [vmem:[%s6456_s6] ss:$0 sm:$0xff] }
 0x16f   : > { %v799_v60 = vpop.permute.xlu0 %798 }
 0x170   : > { %969 = vrot.lane.b32.xlu1 %v5173_v23, %s4876_s25  ;;  %895 = vst.msk [vmem:[#allocation2 + $0x100] sm:$0xff] %vm733_vm1, %v799_v60 }
 0x172   : > { %975 = vrot.lane.b32.xlu0 %v5206_v58, %s4876_s25 }
 0x174   : > { %v805_v0 = vpop.permute.xlu1 %804  ;;  %973 = vrot.lane.b32.xlu1 %v5163_v15, %s4876_s25 }
 0x175   : > { %v801_v1 = vpop.permute.xlu0 %800  ;;  %898 = vst.msk [vmem:[#allocation2 + $0x118] sm:$0xff] %vm733_vm1, %v805_v0 }
 0x176   : > { %896 = vst.msk [vmem:[#allocation2 + $0x108] sm:$0xff] %vm733_vm1, %v801_v1  ;;  %979 = vrot.lane.b32.xlu0 %v5186_v35, %s4876_s25 }
 0x178   : > { %977 = vrot.lane.b32.xlu1 %v5233_v38, %s4876_s25 }
 0x179   : > { %v807_v4 = vpop.permute.xlu0 %806 }
 0x17a   : > { %899 = vst.msk [vmem:[#allocation2 + $0x120] sm:$0xff] %vm733_vm1, %v807_v4  ;;  %983 = vrot.lane.b32.xlu0 %v5255_v9, %s4876_s25 }
 0x17c   : > { %981 = vrot.lane.b32.xlu1 %v5219_v3, %s4876_s25 }
 0x17d   : > { %v809_v5 = vpop.permute.xlu1 %808  ;;  %v811_v7 = vpop.permute.xlu0 %810 }
 0x17e   : > { %900 = vst.msk [vmem:[#allocation2 + $0x128] sm:$0xff] %vm733_vm1, %v809_v5  ;;  %901 = vst.msk [vmem:[#allocation2 + $0x130] sm:$0xff] %vm733_vm1, %v811_v7  ;;  %987 = vrot.lane.b32.xlu0 %v5244_v48, %s4876_s25  ;;  %v1779_v7 = vld [vmem:[#allocation2 + $0x10] sm:$0xff] }
 0x180   : > { %985 = vrot.lane.b32.xlu1 %v5272_v31, %s4876_s25 }
 0x181   : > { %v813_v10 = vpop.permute.xlu1 %812  ;;  %v815_v12 = vpop.permute.xlu0 %814 }
 0x182   : > { %902 = vst.msk [vmem:[#allocation2 + $0x138] sm:$0xff] %vm733_vm1, %v813_v10  ;;  %903 = vst.msk [vmem:[#allocation2 + $0x140] sm:$0xff] %vm733_vm1, %v815_v12  ;;  %1056 = vrot.lane.b32.xlu0 %v5103_v19, %s4877_s29 }
 0x184   : > { %989 = vrot.lane.b32.xlu1 %v5267_v25, %s4876_s25 }
 0x185   : > { %v819_v14 = vpop.permute.xlu0 %818 }
 0x186   : > { %905 = vst.msk [vmem:[#allocation2 + $0x150] sm:$0xff] %vm733_vm1, %v819_v14  ;;  %1060 = vrot.lane.b32.xlu0 %v5096_v6, %s4877_s29 }
 0x187   : > { %v817_v16 = vpop.permute.xlu1 %816 }
 0x188   : > { %1058 = vrot.lane.b32.xlu1 %v5131_v43, %s4877_s29  ;;  %904 = vst.msk [vmem:[#allocation2 + $0x148] sm:$0xff] %vm733_vm1, %v817_v16 }
 0x18a   : > { %1064 = vrot.lane.b32.xlu0 %v5148_v61, %s4877_s29 }
 0x18b   : > { %v821_v18 = vpop.permute.xlu1 %820 }
 0x18c   : > { %1062 = vrot.lane.b32.xlu1 %v5126_v37, %s4877_s29  ;;  %906 = vst.msk [vmem:[#allocation2 + $0x158] sm:$0xff] %vm733_vm1, %v821_v18  ;;  %v823_v19 = vpop.permute.xlu0 %822  ;;  %v1777_v18 = vld [vmem:[#allocation2] sm:$0xff] }
 0x18d   : > { %907 = vst.msk [vmem:[#allocation2 + $0x160] sm:$0xff] %vm733_vm1, %v823_v19 }
 0x18e   : > { %1068 = vrot.lane.b32.xlu0 %v5135_v49, %s4877_s29 }
 0x190   : > { %1066 = vrot.lane.b32.xlu1 %v5169_v20, %s4877_s29  ;;  %v827_v6 = vpop.permute.xlu0 %826 }
 0x191   : > { %909 = vst.msk [vmem:[#allocation2 + $0x170] sm:$0xff] %vm733_vm1, %v827_v6 }
 0x192   : > { %v825_v43 = vpop.permute.xlu1 %824  ;;  %1072 = vrot.lane.b32.xlu0 %v5202_v56, %s4877_s29 }
 0x193   : > { %908 = vst.msk [vmem:[#allocation2 + $0x168] sm:$0xff] %vm733_vm1, %v825_v43 }
 0x194   : > { %1070 = vrot.lane.b32.xlu1 %v5158_v8, %s4877_s29  ;;  %v831_v37 = vpop.permute.xlu0 %830 }
 0x195   : > { %911 = vst.msk [vmem:[#allocation2 + $0x180] sm:$0xff] %vm733_vm1, %v831_v37 }
 0x196   : > { %v829_v61 = vpop.permute.xlu1 %828  ;;  %1076 = vrot.lane.b32.xlu0 %v5178_v29, %s4877_s29 }
 0x197   : > { %910 = vst.msk [vmem:[#allocation2 + $0x178] sm:$0xff] %vm733_vm1, %v829_v61  ;;  %v1780_v61 = vld [vmem:[#allocation2 + $0x18] sm:$0xff] }
 0x198   : > { %1074 = vrot.lane.b32.xlu1 %v5228_v30, %s4877_s29  ;;  %v835_v49 = vpop.permute.xlu0 %834 }
 0x199   : > { %913 = vst.msk [vmem:[#allocation2 + $0x190] sm:$0xff] %vm733_vm1, %v835_v49 }
 0x19a   : > { %v833_v20 = vpop.permute.xlu1 %832  ;;  %1080 = vrot.lane.b32.xlu0 %v5250_v63, %s4877_s29 }
 0x19b   : > { %912 = vst.msk [vmem:[#allocation2 + $0x188] sm:$0xff] %vm733_vm1, %v833_v20 }
 0x19c   : > { %1078 = vrot.lane.b32.xlu1 %v5211_v62, %s4877_s29  ;;  %v839_v8 = vpop.permute.xlu0 %838 }
 0x19d   : > { %915 = vst.msk [vmem:[#allocation2 + $0x1a0] sm:$0xff] %vm733_vm1, %v839_v8  ;;  %v1778_v8 = vld [vmem:[#allocation2 + $0x8] sm:$0xff] }
 0x19e   : > { %v837_v56 = vpop.permute.xlu1 %836  ;;  %1084 = vrot.lane.b32.xlu0 %v5237_v41, %s4877_s29 }
 0x19f   : > { %914 = vst.msk [vmem:[#allocation2 + $0x198] sm:$0xff] %vm733_vm1, %v837_v56  ;;  %v4835_v56 = vld [vmem:[%s4984_s20] sm:$0xff] }
 0x1a0   : > { %1086 = vrot.lane.b32.xlu1 %v5260_v17, %s4877_s29  ;;  %v843_v29 = vpop.permute.xlu0 %842 }
 0x1a1   : > { %917 = vst.msk [vmem:[#allocation2 + $0x1b0] sm:$0xff] %vm733_vm1, %v843_v29 }
 0x1a2   : > { %v841_v30 = vpop.permute.xlu1 %840  ;;  %1088 = vrot.lane.b32.xlu0 %v5109_v24, %s4877_s29 }
 0x1a3   : > { %916 = vst.msk [vmem:[#allocation2 + $0x1a8] sm:$0xff] %vm733_vm1, %v841_v30 }
 0x1a4   : > { %1090 = vrot.lane.b32.xlu1 %v5121_v32, %s4877_s29  ;;  %v847_v62 = vpop.permute.xlu0 %846 }
 0x1a5   : > { %919 = vst.msk [vmem:[#allocation2 + $0x1c0] sm:$0xff] %vm733_vm1, %v847_v62  ;;  %v4836_v62 = vld [vmem:[%s4984_s20 + $0x10] sm:$0xff] }
 0x1a6   : > { %v845_v63 = vpop.permute.xlu1 %844  ;;  %1092 = vrot.lane.b32.xlu0 %v5099_v13, %s4877_s29 }
 0x1a7   : > { %918 = vst.msk [vmem:[#allocation2 + $0x1b8] sm:$0xff] %vm733_vm1, %v845_v63 }
 0x1a8   : > { %1094 = vrot.lane.b32.xlu1 %v5114_v28, %s4877_s29  ;;  %v851_v41 = vpop.permute.xlu0 %850 }
 0x1a9   : > { %921 = vst.msk [vmem:[#allocation2 + $0x1d0] sm:$0xff] %vm733_vm1, %v851_v41  ;;  %v4837_v41 = vld [vmem:[%s4984_s20 + $0x18] sm:$0xff] }
 0x1aa   : > { %v849_v17 = vpop.permute.xlu1 %848  ;;  %1096 = vrot.lane.b32.xlu0 %v5153_v2, %s4877_s29 }
 0x1ab   : > { %920 = vst.msk [vmem:[#allocation2 + $0x1c8] sm:$0xff] %vm733_vm1, %v849_v17 }
 0x1ac   : > { %1098 = vrot.lane.b32.xlu1 %v5173_v23, %s4877_s29  ;;  %v855_v24 = vpop.permute.xlu0 %854 }
 0x1ad   : > { %923 = vst.msk [vmem:[#allocation2 + $0x1e0] sm:$0xff] %vm733_vm1, %v855_v24 }
 0x1ae   : > { %v853_v32 = vpop.permute.xlu1 %852  ;;  %1100 = vrot.lane.b32.xlu0 %v5141_v55, %s4877_s29  ;;  %v4743_v55 = vld [vmem:[%s6453_s3 + $0x40] sm:$0xff]  }
 0x1af   : > { %922 = vst.msk [vmem:[#allocation2 + $0x1d8] sm:$0xff] %vm733_vm1, %v853_v32  ;;  %4501 = vmatprep.subr.bf16.mxu0 %v4743_v55 }
 0x1b0   : > { %1102 = vrot.lane.b32.xlu1 %v5163_v15, %s4877_s29  ;;  %v859_v13 = vpop.permute.xlu0 %858  ;;  %v4744_v15 = vld [vmem:[%s6453_s3 + $0x48] sm:$0xff]   ;;  %4502 = vmatpush3.bf16.msra.mxu0 %v4743_v55 }
 0x1b1   : > { %925 = vst.msk [vmem:[#allocation2 + $0x1f0] sm:$0xff] %vm733_vm1, %v859_v13  ;;  %4503 = vmatprep.subr.bf16.mxu0 %v4744_v15  ;;  %v4838_v13 = vld [vmem:[%s4984_s20 + $0x8] sm:$0xff] }
 0x1b2   : > { %v857_v28 = vpop.permute.xlu1 %856  ;;  %1104 = vrot.lane.b32.xlu0 %v5206_v58, %s4877_s29 }
 0x1b3   : > { %924 = vst.msk [vmem:[#allocation2 + $0x1e8] sm:$0xff] %vm733_vm1, %v857_v28 }
 0x1b4   : > { %1106 = vrot.lane.b32.xlu1 %v5233_v38, %s4877_s29  ;;  %v928_v2 = vpop.permute.xlu0 %927  ;;  %4504 = vmatpush3.bf16.msra.mxu0 %v4744_v15 }
 0x1b5   : > { %1024 = vst.msk [vmem:[#allocation2 + $0x200] sm:$0xff] %vm733_vm1, %v928_v2 }
 0x1b6   : > { %v861_v23 = vpop.permute.xlu1 %860  ;;  %1108 = vrot.lane.b32.xlu0 %v5186_v35, %s4877_s29  ;;  %v4745_v35 = vld [vmem:[%s6453_s3 + $0x50] sm:$0xff]  }
 0x1b7   : > { %926 = vst.msk [vmem:[#allocation2 + $0x1f8] sm:$0xff] %vm733_vm1, %v861_v23  ;;  %4505 = vmatprep.subr.bf16.mxu0 %v4745_v35 }
 0x1b8   : > { %1110 = vrot.lane.b32.xlu1 %v5219_v3, %s4877_s29  ;;  %v932_v58 = vpop.permute.xlu0 %931  ;;  %4506 = vmatpush3.bf16.msra.mxu0 %v4745_v35  ;;  %v1783_v35 = vld [vmem:[#allocation2 + $0x30] sm:$0xff] }
 0x1b9   : > { %1026 = vst.msk [vmem:[#allocation2 + $0x210] sm:$0xff] %vm733_vm1, %v932_v58 }
 0x1ba   : > { %v930_v38 = vpop.permute.xlu1 %929  ;;  %1112 = vrot.lane.b32.xlu0 %v5255_v9, %s4877_s29  ;;  %v4746_v9 = vld [vmem:[%s6453_s3 + $0x58] sm:$0xff]  }
 0x1bb   : > { %1025 = vst.msk [vmem:[#allocation2 + $0x208] sm:$0xff] %vm733_vm1, %v930_v38  ;;  %4507 = vmatprep.subr.bf16.mxu0 %v4746_v9 }
 0x1bc   : > { %1082 = vrot.lane.b32.xlu1 %v5276_v36, %s4877_s29  ;;  %v936_v3 = vpop.permute.xlu0 %935  ;;  %4508 = vmatpush3.bf16.msra.mxu0 %v4746_v9 }
 0x1bd   : > { %1028 = vst.msk [vmem:[#allocation2 + $0x220] sm:$0xff] %vm733_vm1, %v936_v3 }
 0x1be   : > { %v934_v21 = vpop.permute.xlu1 %933  ;;  %1116 = vrot.lane.b32.xlu0 %v5244_v48, %s4877_s29  ;;  %v4747_v48 = vld [vmem:[%s6453_s3 + $0x60] sm:$0xff]  }
 0x1bf   : > { %1027 = vst.msk [vmem:[#allocation2 + $0x218] sm:$0xff] %vm733_vm1, %v934_v21  ;;  %4509 = vmatprep.subr.bf16.mxu0 %v4747_v48 }
 0x1c0   : > { %1114 = vrot.lane.b32.xlu1 %v5272_v31, %s4877_s29  ;;  %v940_v22 = vpop.permute.xlu0 %939  ;;  %v4748_v31 = vld [vmem:[%s6453_s3 + $0x68] sm:$0xff]   ;;  %4510 = vmatpush3.bf16.msra.mxu0 %v4747_v48  ;;  %v1781_v48 = vld [vmem:[#allocation2 + $0x20] sm:$0xff] }
 0x1c1   : > { %1030 = vst.msk [vmem:[#allocation2 + $0x230] sm:$0xff] %vm733_vm1, %v940_v22  ;;  %4511 = vmatprep.subr.bf16.mxu0 %v4748_v31 }
 0x1c2   : > { %v938_v36 = vpop.permute.xlu1 %937 }
 0x1c3   : > { %1029 = vst.msk [vmem:[#allocation2 + $0x228] sm:$0xff] %vm733_vm1, %v938_v36 }
 0x1c4   : > { %1118 = vrot.lane.b32.xlu1 %v5267_v25, %s4877_s29  ;;  %v944_v26 = vpop.permute.xlu0 %943  ;;  %v4749_v25 = vld [vmem:[%s6453_s3 + $0x70] sm:$0xff]   ;;  %4512 = vmatpush3.bf16.msra.mxu0 %v4748_v31 }
 0x1c5   : > { %1032 = vst.msk [vmem:[#allocation2 + $0x240] sm:$0xff] %vm733_vm1, %v944_v26  ;;  %4513 = vmatprep.subr.bf16.mxu0 %v4749_v25 }
 0x1c6   : > { %v942_v27 = vpop.permute.xlu1 %941 }
 0x1c7   : > { %1031 = vst.msk [vmem:[#allocation2 + $0x238] sm:$0xff] %vm733_vm1, %v942_v27 }
 0x1c8   : > { %v948_v33 = vpop.permute.xlu0 %947  ;;  %4514 = vmatpush3.bf16.msra.mxu0 %v4749_v25 }
 0x1c9   : > { %1034 = vst.msk [vmem:[#allocation2 + $0x250] sm:$0xff] %vm733_vm1, %v948_v33 }
 0x1ca   : > { %v946_v34 = vpop.permute.xlu1 %945 }
 0x1cb   : > { %1033 = vst.msk [vmem:[#allocation2 + $0x248] sm:$0xff] %vm733_vm1, %v946_v34  ;;  %v1784_v34 = vld [vmem:[#allocation2 + $0x38] sm:$0xff] }
 0x1cc   : > { %v952_v39 = vpop.permute.xlu0 %951 }
 0x1cd   : > { %1036 = vst.msk [vmem:[#allocation2 + $0x260] sm:$0xff] %vm733_vm1, %v952_v39 }
 0x1ce   : > { %v950_v40 = vpop.permute.xlu1 %949 }
 0x1cf   : > { %1035 = vst.msk [vmem:[#allocation2 + $0x258] sm:$0xff] %vm733_vm1, %v950_v40 }
 0x1d0   : > { %v956_v42 = vpop.permute.xlu0 %955 }
 0x1d1   : > { %1038 = vst.msk [vmem:[#allocation2 + $0x270] sm:$0xff] %vm733_vm1, %v956_v42 }
 0x1d2   : > { %v954_v44 = vpop.permute.xlu1 %953 }
 0x1d3   : > { %1037 = vst.msk [vmem:[#allocation2 + $0x268] sm:$0xff] %vm733_vm1, %v954_v44  ;;  %v1782_v44 = vld [vmem:[#allocation2 + $0x28] sm:$0xff] }
 0x1d4   : > { %v960_v45 = vpop.permute.xlu0 %959 }
 0x1d5   : > { %1040 = vst.msk [vmem:[#allocation2 + $0x280] sm:$0xff] %vm733_vm1, %v960_v45  ;;  %v4839_v45 = vld [vmem:[%s4984_s20 + $0x20] sm:$0xff] }
 0x1d6   : > { %v958_v46 = vpop.permute.xlu1 %957 }
 0x1d7   : > { %1039 = vst.msk [vmem:[#allocation2 + $0x278] sm:$0xff] %vm733_vm1, %v958_v46 }
 0x1d8   : > { %v964_v50 = vpop.permute.xlu0 %963 }
 0x1d9   : > { %1042 = vst.msk [vmem:[#allocation2 + $0x290] sm:$0xff] %vm733_vm1, %v964_v50 }
 0x1da   : > { %v962_v51 = vpop.permute.xlu1 %961 }
 0x1db   : > { %1041 = vst.msk [vmem:[#allocation2 + $0x288] sm:$0xff] %vm733_vm1, %v962_v51  ;;  %v4840_v51 = vld [vmem:[%s4984_s20 + $0x30] sm:$0xff] }
 0x1dc   : > { %v968_v52 = vpop.permute.xlu0 %967 }
 0x1dd   : > { %1044 = vst.msk [vmem:[#allocation2 + $0x2a0] sm:$0xff] %vm733_vm1, %v968_v52 }
 0x1de   : > { %v966_v53 = vpop.permute.xlu1 %965 }
 0x1df   : > { %1043 = vst.msk [vmem:[#allocation2 + $0x298] sm:$0xff] %vm733_vm1, %v966_v53  ;;  %v4841_v53 = vld [vmem:[%s4984_s20 + $0x38] sm:$0xff] }
 0x1e0   : > { %v972_v54 = vpop.permute.xlu0 %971 }
 0x1e1   : > { %1046 = vst.msk [vmem:[#allocation2 + $0x2b0] sm:$0xff] %vm733_vm1, %v972_v54 }
 0x1e2   : > { %v970_v57 = vpop.permute.xlu1 %969 }
 0x1e3   : > { %1045 = vst.msk [vmem:[#allocation2 + $0x2a8] sm:$0xff] %vm733_vm1, %v970_v57 }
 0x1e4   : > { %v976_v11 = vpop.permute.xlu0 %975 }
 0x1e5   : > { %1048 = vst.msk [vmem:[#allocation2 + $0x2c0] sm:$0xff] %vm733_vm1, %v976_v11 }
 0x1e6   : > { %v974_v47 = vpop.permute.xlu1 %973 }
 0x1e7   : > { %1047 = vst.msk [vmem:[#allocation2 + $0x2b8] sm:$0xff] %vm733_vm1, %v974_v47  ;;  %v4842_v47 = vld [vmem:[%s4984_s20 + $0x28] sm:$0xff] }
 0x1e8   : > { %v980_v60 = vpop.permute.xlu0 %979 }
 0x1e9   : > { %1050 = vst.msk [vmem:[#allocation2 + $0x2d0] sm:$0xff] %vm733_vm1, %v980_v60 }
 0x1ea   : > { %v978_v0 = vpop.permute.xlu1 %977  ;;  %v4435_v1 = vpop.f32.mrb[16].mxu0 }
 0x1eb   : > { %1049 = vst.msk [vmem:[#allocation2 + $0x2c8] sm:$0xff] %vm733_vm1, %v978_v0  ;;  %v1659_v4 = vadd.f32 %v4435_v1, %v5555_v59  ;;  %v1650_v5 = vpop.f32.mrb[17].mxu0 }
 0x1ec   : > { %v1651_v10 = vadd.f32 %v5555_v59, %v1650_v5  ;;  %v4436_v12 = vpop.f32.mrb[18].mxu0  ;;  %v984_v16 = vpop.permute.xlu0 %983 }
 0x1ed   : > { %v1811_v14 = vmul.f32 %v1779_v7, %v1659_v4  ;;  %v1662_v19 = vadd.f32 %v4436_v12, %v5555_v59  ;;  %v1653_v6 = vpop.f32.mrb[19].mxu0  ;;  %1052 = vst.msk [vmem:[#allocation2 + $0x2e0] sm:$0xff] %vm733_vm1, %v984_v16  ;;  %v1787_v12 = vld [vmem:[#allocation2 + $0x50] sm:$0xff] }
 0x1ee   : > { %v982_v43 = vpop.permute.xlu1 %981  ;;  %v1809_v37 = vmul.f32 %v1777_v18, %v1651_v10  ;;  %v1654_v49 = vadd.f32 %v5555_v59, %v1653_v6 }
 0x1ef   : > { %1051 = vst.msk [vmem:[#allocation2 + $0x2d8] sm:$0xff] %vm733_vm1, %v982_v43  ;;  %v1812_v20 = vmul.f32 %v1780_v61, %v1662_v19  ;;  %v5569_v63 = vadd.f32 %v4836_v62, %v1811_v14  ;;  %v1785_v43 = vld [vmem:[#allocation2 + $0x40] sm:$0xff] }
 0x1f0   : > { %v5566_v29 = vadd.f32 %v4835_v56, %v1809_v37  ;;  %v1810_v30 = vmul.f32 %v1778_v8, %v1654_v49  ;;  %v988_v24 = vpop.permute.xlu0 %987  ;;  %v1788_v8 = vld [vmem:[#allocation2 + $0x58] sm:$0xff] }
 0x1f1   : > { %v5572_v17 = vadd.f32 %v4837_v41, %v1812_v20  ;;  %1054 = vst.msk [vmem:[#allocation2 + $0x2f0] sm:$0xff] %vm733_vm1, %v988_v24  ;;  %v1875_v9 = vmax.f32 %v5569_v63, 0.0  ;;  %v1786_v41 = vld [vmem:[#allocation2 + $0x48] sm:$0xff] }
 0x1f2   : > { %v986_v32 = vpop.permute.xlu1 %985  ;;  %v5575_v28 = vadd.f32 %v4838_v13, %v1810_v30  ;;  %v4439_v2 = vpop.f32.mrb[20].mxu0  ;;  %v1873_v58 = vmax.f32 %v5566_v29, 0.0 }
 0x1f3   : > { %v1876_v23 = vmax.f32 %v5572_v17, 0.0  ;;  %1053 = vst.msk [vmem:[#allocation2 + $0x2e8] sm:$0xff] %vm733_vm1, %v986_v32  ;;  %v1675_v55 = vadd.f32 %v4439_v2, %v5555_v59  ;;  %v1666_v15 = vpop.f32.mrb[21].mxu0  ;;  %v4843_v32 = vld [vmem:[%s4984_s20 + $0x40] sm:$0xff] }
 0x1f4   : > { %v1874_v38 = vmax.f32 %v5575_v28, 0.0  ;;  %v1667_v3 = vadd.f32 %v5555_v59, %v1666_v15  ;;  %v4440_v21 = vpop.f32.mrb[22].mxu0  ;;  %v1057_v36 = vpop.permute.xlu0 %1056  ;;  %v4845_v15 = vld [vmem:[%s4984_s20 + $0x58] sm:$0xff] }
 0x1f5   : > { %v1815_v22 = vmul.f32 %v1783_v35, %v1675_v55  ;;  %v1678_v26 = vadd.f32 %v4440_v21, %v5555_v59  ;;  %v1669_v27 = vpop.f32.mrb[23].mxu0  ;;  %1153 = vst.msk [vmem:[#allocation2 + $0x300] sm:$0xff] %vm733_vm1, %v1057_v36  ;;  %v1906_v40 = vpack.c.bf16 %v1876_v23, %v1875_v9  ;;  %v4844_v23 = vld [vmem:[%s4984_s20 + $0x50] sm:$0xff] }
 0x1f6   : > { %v990_v31 = vpop.permute.xlu1 %989  ;;  %v1813_v33 = vmul.f32 %v1781_v48, %v1667_v3  ;;  %v1670_v25 = vadd.f32 %v5555_v59, %v1669_v27  ;;  %v1905_v39 = vpack.c.bf16 %v1874_v38, %v1873_v58  ;;  %v4846_v3 = vld [vmem:[%s4984_s20 + $0x48] sm:$0xff] }
 0x1f7   : > { %1055 = vst.msk [vmem:[#allocation2 + $0x2f8] sm:$0xff] %vm733_vm1, %v990_v31  ;;  %v1816_v42 = vmul.f32 %v1784_v34, %v1678_v26  ;;  %v5594_v52 = vadd.f32 %v4840_v51, %v1815_v22  ;;  %v1791_v31 = vld [vmem:[#allocation2 + $0x70] sm:$0xff] }
 0x1f8   : > { %v5590_v46 = vadd.f32 %v4839_v45, %v1813_v33  ;;  %v1814_v50 = vmul.f32 %v1782_v44, %v1670_v25  ;;  %4469 = vmatprep.mubr.msk.bf16.mxu1 %vm733_vm1, %v1905_v39  ;;  %v1061_v57 = vpop.permute.xlu0 %1060 }
 0x1f9   : > { %v5597_v54 = vadd.f32 %v4841_v53, %v1816_v42  ;;  %4470 = vmatmul.mubr.msk.bf16.vlgmr.msra.gmra.mrb[48].mxu1 %vm733_vm1, %v1906_v40  ;;  %1155 = vst.msk [vmem:[#allocation2 + $0x310] sm:$0xff] %vm733_vm1, %v1061_v57  ;;  %v1879_v18 = vmax.f32 %v5594_v52, 0.0  ;;  %v1789_v42 = vld [vmem:[#allocation2 + $0x60] sm:$0xff]  ;;  %v1792_v53 = vld [vmem:[#allocation2 + $0x78] sm:$0xff] }
 0x1fa   : > { %v1059_v11 = vpop.permute.xlu1 %1058  ;;  %v5601_v60 = vadd.f32 %v4842_v47, %v1814_v50  ;;  %v4443_v0 = vpop.f32.mrb[24].mxu0  ;;  %v1877_v7 = vmax.f32 %v5590_v46, 0.0 }
 0x1fb   : > { %v1880_v1 = vmax.f32 %v5597_v54, 0.0  ;;  %1154 = vst.msk [vmem:[#allocation2 + $0x308] sm:$0xff] %vm733_vm1, %v1059_v11  ;;  %v1691_v4 = vadd.f32 %v4443_v0, %v5555_v59  ;;  %v1682_v5 = vpop.f32.mrb[25].mxu0  ;;  %v1790_v0 = vld [vmem:[#allocation2 + $0x68] sm:$0xff] }
 0x1fc   : > { %v1878_v10 = vmax.f32 %v5601_v60, 0.0  ;;  %v1683_v14 = vadd.f32 %v5555_v59, %v1682_v5  ;;  %v4444_v16 = vpop.f32.mrb[26].mxu0  ;;  %v1065_v6 = vpop.permute.xlu0 %1064 }
 0x1fd   : > { %v1819_v19 = vmul.f32 %v1787_v12, %v1691_v4  ;;  %v1694_v37 = vadd.f32 %v4444_v16, %v5555_v59  ;;  %v1685_v61 = vpop.f32.mrb[27].mxu0  ;;  %1157 = vst.msk [vmem:[#allocation2 + $0x320] sm:$0xff] %vm733_vm1, %v1065_v6  ;;  %v1908_v24 = vpack.c.bf16 %v1880_v1, %v1879_v18  ;;  %v4847_v4 = vld [vmem:[%s4984_s20 + $0x60] sm:$0xff]  ;;  %v4850_v6 = vld [vmem:[%s4984_s20 + $0x68] sm:$0xff] }
 0x1fe   : > { %v1063_v49 = vpop.permute.xlu1 %1062  ;;  %v1817_v20 = vmul.f32 %v1785_v43, %v1683_v14  ;;  %v1686_v56 = vadd.f32 %v5555_v59, %v1685_v61  ;;  %v1907_v30 = vpack.c.bf16 %v1878_v10, %v1877_v7  ;;  %v4848_v10 = vld [vmem:[%s4984_s20 + $0x70] sm:$0xff]  ;;  %v4849_v14 = vld [vmem:[%s4984_s20 + $0x78] sm:$0xff] }
 0x1ff   : > { %1156 = vst.msk [vmem:[#allocation2 + $0x318] sm:$0xff] %vm733_vm1, %v1063_v49  ;;  %v1820_v62 = vmul.f32 %v1788_v8, %v1694_v37  ;;  %v5620_v55 = vadd.f32 %v4844_v23, %v1819_v19  ;;  %v1793_v23 = vld [vmem:[#allocation2 + $0x80] sm:$0xff] }
 0x200   : > { %v5616_v13 = vadd.f32 %v4843_v32, %v1817_v20  ;;  %v1818_v2 = vmul.f32 %v1786_v41, %v1686_v56  ;;  %4473 = vmatprep.mubr.msk.bf16.mxu1 %vm733_vm1, %v1907_v30  ;;  %v1069_v38 = vpop.permute.xlu0 %1068  ;;  %v1795_v30 = vld [vmem:[#allocation2 + $0x90] sm:$0xff] }
 0x201   : > { %v5623_v58 = vadd.f32 %v4845_v15, %v1820_v62  ;;  %4474 = vmatmul.mubr.msk.bf16.gmra.mrb[52].mxu1 %vm733_vm1, %v1908_v24  ;;  %1159 = vst.msk [vmem:[#allocation2 + $0x330] sm:$0xff] %vm733_vm1, %v1069_v38  ;;  %v1883_v25 = vmax.f32 %v5620_v55, 0.0 }
 0x202   : > { %v1067_v35 = vpop.permute.xlu1 %1066  ;;  %v5627_v21 = vadd.f32 %v4846_v3, %v1818_v2  ;;  %v4447_v9 = vpop.f32.mrb[28].mxu0  ;;  %v1881_v26 = vmax.f32 %v5616_v13, 0.0 }
 0x203   : > { %v1884_v22 = vmax.f32 %v5623_v58, 0.0  ;;  %1158 = vst.msk [vmem:[#allocation2 + $0x328] sm:$0xff] %vm733_vm1, %v1067_v35  ;;  %v1707_v36 = vadd.f32 %v4447_v9, %v5555_v59  ;;  %v1698_v48 = vpop.f32.mrb[29].mxu0  ;;  %v1796_v9 = vld [vmem:[#allocation2 + $0x98] sm:$0xff] }
 0x204   : > { %v1882_v27 = vmax.f32 %v5627_v21, 0.0  ;;  %v1699_v33 = vadd.f32 %v5555_v59, %v1698_v48  ;;  %v4448_v34 = vpop.f32.mrb[30].mxu0  ;;  %v1073_v40 = vpop.permute.xlu0 %1072 }
 0x205   : > { %v1823_v39 = vmul.f32 %v1791_v31, %v1707_v36  ;;  %v1710_v44 = vadd.f32 %v4448_v34, %v5555_v59  ;;  %v1701_v45 = vpop.f32.mrb[31].mxu0  ;;  %1161 = vst.msk [vmem:[#allocation2 + $0x340] sm:$0xff] %vm733_vm1, %v1073_v40  ;;  %v1910_v1 = vpack.c.bf16 %v1884_v22, %v1883_v25  ;;  %v4851_v31 = vld [vmem:[%s4984_s20 + $0x80] sm:$0xff]  ;;  %v4852_v25 = vld [vmem:[%s4984_s20 + $0x90] sm:$0xff]  ;;  %v4853_v40 = vld [vmem:[%s4984_s20 + $0x98] sm:$0xff] }
 0x206   : > { %v1071_v50 = vpop.permute.xlu1 %1070  ;;  %v1821_v51 = vmul.f32 %v1789_v42, %v1699_v33  ;;  %v1702_v57 = vadd.f32 %v5555_v59, %v1701_v45  ;;  %v1909_v11 = vpack.c.bf16 %v1882_v27, %v1881_v26  ;;  %v1794_v26 = vld [vmem:[#allocation2 + $0x88] sm:$0xff] }
 0x207   : > { %1160 = vst.msk [vmem:[#allocation2 + $0x338] sm:$0xff] %vm733_vm1, %v1071_v50  ;;  %v1824_v47 = vmul.f32 %v1792_v53, %v1710_v44  ;;  %v5646_v12 = vadd.f32 %v4848_v10, %v1823_v39  ;;  %v4854_v50 = vld [vmem:[%s4984_s20 + $0x88] sm:$0xff] }
 0x208   : > { %v5642_v5 = vadd.f32 %v4847_v4, %v1821_v51  ;;  %v1822_v7 = vmul.f32 %v1790_v0, %v1702_v57  ;;  %4477 = vmatprep.mubr.msk.bf16.mxu1 %vm733_vm1, %v1909_v11  ;;  %v1077_v18 = vpop.permute.xlu0 %1076  ;;  %v1799_v4 = vld [vmem:[#allocation2 + $0xb0] sm:$0xff] }
 0x209   : > { %v5649_v16 = vadd.f32 %v4849_v14, %v1824_v47  ;;  %4478 = vmatmul.mubr.msk.bf16.gmra.mrb[56].mxu1 %vm733_vm1, %v1910_v1  ;;  %1163 = vst.msk [vmem:[#allocation2 + $0x350] sm:$0xff] %vm733_vm1, %v1077_v18  ;;  %v1887_v24 = vmax.f32 %v5646_v12, 0.0 }
 0x20a   : > { %v1075_v19 = vpop.permute.xlu1 %1074  ;;  %v5653_v43 = vadd.f32 %v4850_v6, %v1822_v7  ;;  %v4451_v37 = vpop.f32.mrb[32].mxu0  ;;  %v1885_v8 = vmax.f32 %v5642_v5, 0.0  ;;  %v1797_v6 = vld [vmem:[#allocation2 + $0xa0] sm:$0xff] }
 0x20b   : > { %v1888_v61 = vmax.f32 %v5649_v16, 0.0  ;;  %1162 = vst.msk [vmem:[#allocation2 + $0x348] sm:$0xff] %vm733_vm1, %v1075_v19  ;;  %v1723_v49 = vadd.f32 %v4451_v37, %v5555_v59  ;;  %v1714_v20 = vpop.f32.mrb[33].mxu0 }
 0x20c   : > { %v1886_v56 = vmax.f32 %v5653_v43, 0.0  ;;  %v1715_v62 = vadd.f32 %v5555_v59, %v1714_v20  ;;  %v4452_v41 = vpop.f32.mrb[34].mxu0  ;;  %v1081_v2 = vpop.permute.xlu0 %1080 }
 0x20d   : > { %v1827_v32 = vmul.f32 %v1795_v30, %v1723_v49  ;;  %v1726_v15 = vadd.f32 %v4452_v41, %v5555_v59  ;;  %v1717_v38 = vpop.f32.mrb[35].mxu0  ;;  %1165 = vst.msk [vmem:[#allocation2 + $0x360] sm:$0xff] %vm733_vm1, %v1081_v2  ;;  %v1912_v27 = vpack.c.bf16 %v1888_v61, %v1887_v24  ;;  %v1798_v41 = vld [vmem:[#allocation2 + $0xa8] sm:$0xff] }
 0x20e   : > { %v1079_v35 = vpop.permute.xlu1 %1078  ;;  %v1825_v3 = vmul.f32 %v1793_v23, %v1715_v62  ;;  %v1718_v22 = vadd.f32 %v5555_v59, %v1717_v38  ;;  %v1911_v36 = vpack.c.bf16 %v1886_v56, %v1885_v8  ;;  %v1800_v8 = vld [vmem:[#allocation2 + $0xb8] sm:$0xff] }
 0x20f   : > { %1164 = vst.msk [vmem:[#allocation2 + $0x358] sm:$0xff] %vm733_vm1, %v1079_v35  ;;  %v1828_v48 = vmul.f32 %v1796_v9, %v1726_v15  ;;  %v5672_v39 = vadd.f32 %v4852_v25, %v1827_v32  ;;  %v4855_v32 = vld [vmem:[%s4984_s20 + $0xa0] sm:$0xff]  ;;  %v4856_v15 = vld [vmem:[%s4984_s20 + $0xb0] sm:$0xff]  ;;  %v4857_v35 = vld [vmem:[%s4984_s20 + $0xb8] sm:$0xff] }
 0x210   : > { %v5668_v33 = vadd.f32 %v4851_v31, %v1825_v3  ;;  %v1826_v34 = vmul.f32 %v1794_v26, %v1718_v22  ;;  %4481 = vmatprep.mubr.msk.bf16.mxu1 %vm733_vm1, %v1911_v36  ;;  %v1085_v44 = vpop.permute.xlu0 %1084  ;;  %v4858_v36 = vld [vmem:[%s4984_s20 + $0xa8] sm:$0xff] }
 0x211   : > { %v5675_v42 = vadd.f32 %v4853_v40, %v1828_v48  ;;  %4482 = vmatmul.mubr.msk.bf16.gmra.mrb[60].mxu1 %vm733_vm1, %v1912_v27  ;;  %1167 = vst.msk [vmem:[#allocation2 + $0x370] sm:$0xff] %vm733_vm1, %v1085_v44  ;;  %v1891_v14 = vmax.f32 %v5672_v39, 0.0  ;;  %v1803_v44 = vld [vmem:[#allocation2 + $0xd0] sm:$0xff] }
 0x212   : > { %v1087_v45 = vpop.permute.xlu1 %1086  ;;  %v5679_v51 = vadd.f32 %v4854_v50, %v1826_v34  ;;  %v4455_v53 = vpop.f32.mrb[36].mxu0  ;;  %v1889_v0 = vmax.f32 %v5668_v33, 0.0 }
 0x213   : > { %v1892_v57 = vmax.f32 %v5675_v42, 0.0  ;;  %1168 = vst.msk [vmem:[#allocation2 + $0x378] sm:$0xff] %vm733_vm1, %v1087_v45  ;;  %v1739_v11 = vadd.f32 %v4455_v53, %v5555_v59  ;;  %v1730_v47 = vpop.f32.mrb[37].mxu0 }
 0x214   : > { %v1890_v1 = vmax.f32 %v5679_v51, 0.0  ;;  %v1731_v7 = vadd.f32 %v5555_v59, %v1730_v47  ;;  %v4456_v10 = vpop.f32.mrb[38].mxu0  ;;  %v1089_v19 = vpop.permute.xlu0 %1088  ;;  %v1801_v47 = vld [vmem:[#allocation2 + $0xc0] sm:$0xff] }
 0x215   : > { %v1831_v18 = vmul.f32 %v1799_v4, %v1739_v11  ;;  %v1742_v37 = vadd.f32 %v4456_v10, %v5555_v59  ;;  %v1733_v61 = vpop.f32.mrb[39].mxu0  ;;  %1169 = vst.msk [vmem:[#allocation2 + $0x380] sm:$0xff] %vm733_vm1, %v1089_v19  ;;  %v1914_v24 = vpack.c.bf16 %v1892_v57, %v1891_v14  ;;  %v1804_v10 = vld [vmem:[#allocation2 + $0xd8] sm:$0xff] }
 0x216   : > { %v1091_v49 = vpop.permute.xlu1 %1090  ;;  %v1829_v20 = vmul.f32 %v1797_v6, %v1731_v7  ;;  %v1734_v56 = vadd.f32 %v5555_v59, %v1733_v61  ;;  %v1913_v30 = vpack.c.bf16 %v1890_v1, %v1889_v0  ;;  %v1802_v6 = vld [vmem:[#allocation2 + $0xc8] sm:$0xff]  ;;  %v4859_v61 = vld [vmem:[%s4984_s20 + $0xc0] sm:$0xff] }
 0x217   : > { %1170 = vst.msk [vmem:[#allocation2 + $0x388] sm:$0xff] %vm733_vm1, %v1091_v49  ;;  %v1832_v62 = vmul.f32 %v1800_v8, %v1742_v37  ;;  %v5698_v38 = vadd.f32 %v4856_v15, %v1831_v18  ;;  %v4860_v8 = vld [vmem:[%s4984_s20 + $0xd0] sm:$0xff] }
 0x218   : > { %v5694_v2 = vadd.f32 %v4855_v32, %v1829_v20  ;;  %v1830_v23 = vmul.f32 %v1798_v41, %v1734_v56  ;;  %4485 = vmatprep.mubr.msk.bf16.mxu1 %vm733_vm1, %v1913_v30  ;;  %v1093_v9 = vpop.permute.xlu0 %1092  ;;  %v4861_v30 = vld [vmem:[%s4984_s20 + $0xd8] sm:$0xff]  ;;  %v4862_v32 = vld [vmem:[%s4984_s20 + $0xc8] sm:$0xff] }
 0x219   : > { %v5701_v3 = vadd.f32 %v4857_v35, %v1832_v62  ;;  %4486 = vmatmul.mubr.msk.bf16.gmra.mrb[64].mxu1 %vm733_vm1, %v1914_v24  ;;  %1171 = vst.msk [vmem:[#allocation2 + $0x390] sm:$0xff] %vm733_vm1, %v1093_v9  ;;  %v1895_v53 = vmax.f32 %v5698_v38, 0.0 }
 0x21a   : > { %v1095_v22 = vpop.permute.xlu1 %1094  ;;  %v5705_v48 = vadd.f32 %v4858_v36, %v1830_v23  ;;  %v4459_v26 = vpop.f32.mrb[40].mxu0  ;;  %v1893_v25 = vmax.f32 %v5694_v2, 0.0 }
 0x21b   : > { %v1896_v27 = vmax.f32 %v5701_v3, 0.0  ;;  %1172 = vst.msk [vmem:[#allocation2 + $0x398] sm:$0xff] %vm733_vm1, %v1095_v22  ;;  %v1755_v31 = vadd.f32 %v4459_v26, %v5555_v59  ;;  %v1746_v34 = vpop.f32.mrb[41].mxu0 }
 0x21c   : > { %v1894_v40 = vmax.f32 %v5705_v48, 0.0  ;;  %v1747_v45 = vadd.f32 %v5555_v59, %v1746_v34  ;;  %v4460_v50 = vpop.f32.mrb[42].mxu0  ;;  %v1097_v11 = vpop.permute.xlu0 %1096 }
 0x21d   : > { %v1835_v57 = vmul.f32 %v1803_v44, %v1755_v31  ;;  %v1758_v0 = vadd.f32 %v4460_v50, %v5555_v59  ;;  %v1749_v1 = vpop.f32.mrb[43].mxu0  ;;  %1173 = vst.msk [vmem:[#allocation2 + $0x3a0] sm:$0xff] %vm733_vm1, %v1097_v11  ;;  %v1916_v37 = vpack.c.bf16 %v1896_v27, %v1895_v53  ;;  %v1807_v27 = vld [vmem:[#allocation2 + $0xf0] sm:$0xff] }
 0x21e   : > { %v1099_v4 = vpop.permute.xlu1 %1098  ;;  %v1833_v7 = vmul.f32 %v1801_v47, %v1747_v45  ;;  %v1750_v14 = vadd.f32 %v5555_v59, %v1749_v1  ;;  %v1915_v18 = vpack.c.bf16 %v1894_v40, %v1893_v25  ;;  %v1805_v45 = vld [vmem:[#allocation2 + $0xe0] sm:$0xff]  ;;  %v1808_v47 = vld [vmem:[#allocation2 + $0xf8] sm:$0xff] }
 0x21f   : > { %1174 = vst.msk [vmem:[#allocation2 + $0x3a8] sm:$0xff] %vm733_vm1, %v1099_v4  ;;  %v1836_v19 = vmul.f32 %v1804_v10, %v1758_v0  ;;  %v5724_v56 = vadd.f32 %v4860_v8, %v1835_v57 }
 0x220   : > { %v5720_v49 = vadd.f32 %v4859_v61, %v1833_v7  ;;  %v1834_v20 = vmul.f32 %v1802_v6, %v1750_v14  ;;  %4489 = vmatprep.mubr.msk.bf16.mxu1 %vm733_vm1, %v1915_v18  ;;  %v1101_v41 = vpop.permute.xlu0 %1100  ;;  %v1806_v7 = vld [vmem:[#allocation2 + $0xe8] sm:$0xff]  ;;  %v4863_v14 = vld [vmem:[%s4984_s20 + $0xe0] sm:$0xff]  ;;  %v4864_v6 = vld [vmem:[%s4984_s20 + $0xf0] sm:$0xff] }
 0x221   : > { %v5727_v62 = vadd.f32 %v4861_v30, %v1836_v19  ;;  %4490 = vmatmul.mubr.msk.bf16.gmra.mrb[68].mxu1 %vm733_vm1, %v1916_v37  ;;  %1175 = vst.msk [vmem:[#allocation2 + $0x3b0] sm:$0xff] %vm733_vm1, %v1101_v41  ;;  %v1899_v25 = vmax.f32 %v5724_v56, 0.0  ;;  %v4865_v61 = vld [vmem:[%s4984_s20 + $0xf8] sm:$0xff]  ;;  %v4866_v30 = vld [vmem:[%s4984_s20 + $0xe8] sm:$0xff] }
 0x222   : > { %v1103_v24 = vpop.permute.xlu1 %1102  ;;  %v5731_v23 = vadd.f32 %v4862_v32, %v1834_v20  ;;  %v4463_v15 = vpop.f32.mrb[44].mxu0  ;;  %v1897_v36 = vmax.f32 %v5720_v49, 0.0 }
 0x223   : > { %v1900_v35 = vmax.f32 %v5727_v62, 0.0  ;;  %1176 = vst.msk [vmem:[#allocation2 + $0x3b8] sm:$0xff] %vm733_vm1, %v1103_v24  ;;  %v1771_v9 = vadd.f32 %v4463_v15, %v5555_v59  ;;  %v1762_v22 = vpop.f32.mrb[45].mxu0 }
 0x224   : > { %v1898_v26 = vmax.f32 %v5731_v23, 0.0  ;;  %v1763_v31 = vadd.f32 %v5555_v59, %v1762_v22  ;;  %v4464_v34 = vpop.f32.mrb[46].mxu0  ;;  %v1105_v44 = vpop.permute.xlu0 %1104 }
 0x225   : > { %v1839_v40 = vmul.f32 %v1807_v27, %v1771_v9  ;;  %v1774_v50 = vadd.f32 %v4464_v34, %v5555_v59  ;;  %v1765_v53 = vpop.f32.mrb[47].mxu0  ;;  %1177 = vst.msk [vmem:[#allocation2 + $0x3c0] sm:$0xff] %vm733_vm1, %v1105_v44  ;;  %v1918_v10 = vpack.c.bf16 %v1900_v35, %v1899_v25  ;;  %v4750_v25 = vld [vmem:[%s6453_s3 + $0x78] sm:$0xff]   ;;  %v4752_v44 = vld [vmem:[%s6452_s2 + $0x28] sm:$0xff]  }
 0x226   : > { %v1107_v57 = vpop.permute.xlu1 %1106  ;;  %v1837_v11 = vmul.f32 %v1805_v45, %v1763_v31  ;;  %v1766_v0 = vadd.f32 %v5555_v59, %v1765_v53  ;;  %v1917_v1 = vpack.c.bf16 %v1898_v26, %v1897_v36  ;;  %4515 = vmatprep.subr.bf16.mxu0 %v4750_v25  ;;  %v5784_v45 = vld [vmem:[%s6455_s5 + $0x1] ss:$0 sm:$0xff] }
 0x227   : > { %1178 = vst.msk [vmem:[#allocation2 + $0x3c8] sm:$0xff] %vm733_vm1, %v1107_v57  ;;  %v1840_v4 = vmul.f32 %v1808_v47, %v1774_v50  ;;  %v5750_v37 = vadd.f32 %v4864_v6, %v1839_v40  ;;  %4516 = vmatpush3.bf16.msra.mxu0 %v4750_v25  ;;  %v4751_v40 = vld [vmem:[%s6452_s2 + $0x20] sm:$0xff]  }
 0x228   : > { %v5746_v18 = vadd.f32 %v4863_v14, %v1837_v11  ;;  %v1838_v19 = vmul.f32 %v1806_v7, %v1766_v0  ;;  %4493 = vmatprep.mubr.msk.bf16.mxu1 %vm733_vm1, %v1917_v1  ;;  %v1109_v59 = vpop.permute.xlu0 %1108  ;;  %4549 = vmatprep.subr.bf16.mxu1 %v4751_v40 }
 0x229   : > { %v5753_v20 = vadd.f32 %v4865_v61, %v1840_v4  ;;  %4494 = vmatmul.mubr.msk.bf16.gmra.mrb[72].mxu1 %vm733_vm1, %v1918_v10  ;;  %1179 = vst.msk [vmem:[#allocation2 + $0x3d0] sm:$0xff] %vm733_vm1, %v1109_v59  ;;  %v1903_v35 = vmax.f32 %v5750_v37, 0.0 }
 0x22a   : > { %v1111_v8 = vpop.permute.xlu1 %1110  ;;  %v5757_v41 = vadd.f32 %v4866_v30, %v1838_v19  ;;  %v1901_v32 = vmax.f32 %v5746_v18, 0.0  ;;  %4550 = vmatpush3.bf16.msra.mxu1 %v4751_v40 }
 0x22b   : > { %v1904_v24 = vmax.f32 %v5753_v20, 0.0  ;;  %1180 = vst.msk [vmem:[#allocation2 + $0x3d8] sm:$0xff] %vm733_vm1, %v1111_v8  ;;  %4551 = vmatprep.subr.bf16.mxu1 %v4752_v44 }
 0x22c   : > { %v1902_v15 = vmax.f32 %v5757_v41, 0.0  ;;  %v1113_v9 = vpop.permute.xlu0 %1112 }
 0x22d   : > { %1181 = vst.msk [vmem:[#allocation2 + $0x3e0] sm:$0xff] %vm733_vm1, %v1113_v9  ;;  %v1920_v26 = vpack.c.bf16 %v1904_v24, %v1903_v35 }
 0x22e   : > { %v1083_v22 = vpop.permute.xlu1 %1082  ;;  %v1919_v36 = vpack.c.bf16 %v1902_v15, %v1901_v32  ;;  %4552 = vmatpush3.bf16.msra.mxu1 %v4752_v44 }
 0x22f   : > { %1166 = vst.msk [vmem:[#allocation2 + $0x368] sm:$0xff] %vm733_vm1, %v1083_v22 }
 0x230   : > { %4497 = vmatprep.mubr.msk.bf16.mxu1 %vm733_vm1, %v1919_v36  ;;  %v1117_v27 = vpop.permute.xlu0 %1116 }
 0x231   : > { %4498 = vmatmul.mubr.msk.bf16.gmra.mrb[76].mxu1 %vm733_vm1, %v1920_v26  ;;  %1183 = vst.msk [vmem:[#allocation2 + $0x3f0] sm:$0xff] %vm733_vm1, %v1117_v27 }
 0x232   : > { %v1115_v31 = vpop.permute.xlu1 %1114 }
 0x233   : > { %1182 = vst.msk [vmem:[#allocation2 + $0x3e8] sm:$0xff] %vm733_vm1, %v1115_v31 }
 0x236   : > { %v1119_v34 = vpop.permute.xlu1 %1118 }
 0x237   : > { %1184 = vst.msk [vmem:[#allocation2 + $0x3f8] sm:$0xff] %vm733_vm1, %v1119_v34 }
 0x2cc   : > { %v4471_v50 = vpop.f32.mrb[48].mxu1 }
 0x2cd   : > { %v2037_v53 = vadd.f32 %v4471_v50, %v5784_v45  ;;  %v2028_v57 = vpop.f32.mrb[49].mxu1 }
 0x2ce   : > { %v2029_v11 = vadd.f32 %v5784_v45, %v2028_v57  ;;  %v4472_v47 = vpop.f32.mrb[50].mxu1 }
 0x2cf   : > { %v2040_v0 = vadd.f32 %v4472_v47, %v5784_v45  ;;  %v2031_v1 = vpop.f32.mrb[51].mxu1  ;;  %v2157_v7 = vmax.f32 %v2037_v53, 0.0 }
 0x2d0   : > { %v2032_v4 = vadd.f32 %v5784_v45, %v2031_v1  ;;  %v2155_v14 = vmax.f32 %v2029_v11, 0.0 }
 0x2d1   : > { %v2158_v10 = vmax.f32 %v2040_v0, 0.0 }
 0x2d2   : > { %v2156_v19 = vmax.f32 %v2032_v4, 0.0 }
 0x2d3   : > { %v2188_v6 = vpack.c.bf16 %v2158_v10, %v2157_v7 }
 0x2d4   : > { %v2187_v61 = vpack.c.bf16 %v2156_v19, %v2155_v14  ;;  %v4475_v59 = vpop.f32.mrb[52].mxu1 }
 0x2d5   : > { %v2053_v8 = vadd.f32 %v4475_v59, %v5784_v45  ;;  %v2044_v30 = vpop.f32.mrb[53].mxu1 }
 0x2d6   : > { %v2045_v24 = vadd.f32 %v5784_v45, %v2044_v30  ;;  %v4476_v32 = vpop.f32.mrb[54].mxu1  ;;  %4517 = vmatprep.mubr.bf16.mxu0 %v2187_v61 }
 0x2d7   : > { %v2056_v15 = vadd.f32 %v4476_v32, %v5784_v45  ;;  %v2047_v35 = vpop.f32.mrb[55].mxu1  ;;  %4518 = vmatmul.mubr.bf16.vlgmr.msra.gmra.mrb[48].mxu0 %v2188_v6  ;;  %v2161_v22 = vmax.f32 %v2053_v8, 0.0 }
 0x2d8   : > { %v2048_v9 = vadd.f32 %v5784_v45, %v2047_v35  ;;  %v2159_v26 = vmax.f32 %v2045_v24, 0.0 }
 0x2d9   : > { %v2162_v36 = vmax.f32 %v2056_v15, 0.0 }
 0x2da   : > { %v2160_v27 = vmax.f32 %v2048_v9, 0.0 }
 0x2db   : > { %v2190_v31 = vpack.c.bf16 %v2162_v36, %v2161_v22 }
 0x2dc   : > { %v2189_v34 = vpack.c.bf16 %v2160_v27, %v2159_v26  ;;  %v4479_v25 = vpop.f32.mrb[56].mxu1 }
 0x2dd   : > { %v2069_v40 = vadd.f32 %v4479_v25, %v5784_v45  ;;  %v2060_v44 = vpop.f32.mrb[57].mxu1 }
 0x2de   : > { %v2061_v50 = vadd.f32 %v5784_v45, %v2060_v44  ;;  %v4480_v53 = vpop.f32.mrb[58].mxu1  ;;  %4521 = vmatprep.mubr.bf16.mxu0 %v2189_v34 }
 0x2df   : > { %v2072_v57 = vadd.f32 %v4480_v53, %v5784_v45  ;;  %v2063_v11 = vpop.f32.mrb[59].mxu1  ;;  %4522 = vmatmul.mubr.bf16.gmra.mrb[52].mxu0 %v2190_v31  ;;  %v2165_v0 = vmax.f32 %v2069_v40, 0.0 }
 0x2e0   : > { %v2064_v47 = vadd.f32 %v5784_v45, %v2063_v11  ;;  %v2163_v4 = vmax.f32 %v2061_v50, 0.0 }
 0x2e1   : > { %v2166_v1 = vmax.f32 %v2072_v57, 0.0 }
 0x2e2   : > { %v2164_v7 = vmax.f32 %v2064_v47, 0.0 }
 0x2e3   : > { %v2192_v10 = vpack.c.bf16 %v2166_v1, %v2165_v0 }
 0x2e4   : > { %v2191_v14 = vpack.c.bf16 %v2164_v7, %v2163_v4  ;;  %v4483_v19 = vpop.f32.mrb[60].mxu1 }
 0x2e5   : > { %v2085_v6 = vadd.f32 %v4483_v19, %v5784_v45  ;;  %v2076_v61 = vpop.f32.mrb[61].mxu1 }
 0x2e6   : > { %v2077_v59 = vadd.f32 %v5784_v45, %v2076_v61  ;;  %v4484_v8 = vpop.f32.mrb[62].mxu1  ;;  %4525 = vmatprep.mubr.bf16.mxu0 %v2191_v14 }
 0x2e7   : > { %v2088_v30 = vadd.f32 %v4484_v8, %v5784_v45  ;;  %v2079_v24 = vpop.f32.mrb[63].mxu1  ;;  %4526 = vmatmul.mubr.bf16.gmra.mrb[56].mxu0 %v2192_v10  ;;  %v2169_v15 = vmax.f32 %v2085_v6, 0.0 }
 0x2e8   : > { %v2080_v32 = vadd.f32 %v5784_v45, %v2079_v24  ;;  %v2167_v9 = vmax.f32 %v2077_v59, 0.0 }
 0x2e9   : > { %v2170_v35 = vmax.f32 %v2088_v30, 0.0 }
 0x2ea   : > { %v2168_v22 = vmax.f32 %v2080_v32, 0.0 }
 0x2eb   : > { %v2194_v36 = vpack.c.bf16 %v2170_v35, %v2169_v15 }
 0x2ec   : > { %v2193_v26 = vpack.c.bf16 %v2168_v22, %v2167_v9  ;;  %v4487_v27 = vpop.f32.mrb[64].mxu1 }
 0x2ed   : > { %v2101_v31 = vadd.f32 %v4487_v27, %v5784_v45  ;;  %v2092_v34 = vpop.f32.mrb[65].mxu1 }
 0x2ee   : > { %v2093_v25 = vadd.f32 %v5784_v45, %v2092_v34  ;;  %v4488_v40 = vpop.f32.mrb[66].mxu1  ;;  %4529 = vmatprep.mubr.bf16.mxu0 %v2193_v26 }
 0x2ef   : > { %v2104_v44 = vadd.f32 %v4488_v40, %v5784_v45  ;;  %v2095_v50 = vpop.f32.mrb[67].mxu1  ;;  %4530 = vmatmul.mubr.bf16.gmra.mrb[60].mxu0 %v2194_v36  ;;  %v2173_v57 = vmax.f32 %v2101_v31, 0.0 }
 0x2f0   : > { %v2096_v53 = vadd.f32 %v5784_v45, %v2095_v50  ;;  %v2171_v47 = vmax.f32 %v2093_v25, 0.0 }
 0x2f1   : > { %v2174_v11 = vmax.f32 %v2104_v44, 0.0 }
 0x2f2   : > { %v2172_v0 = vmax.f32 %v2096_v53, 0.0 }
 0x2f3   : > { %v2196_v1 = vpack.c.bf16 %v2174_v11, %v2173_v57 }
 0x2f4   : > { %v2195_v4 = vpack.c.bf16 %v2172_v0, %v2171_v47  ;;  %v4491_v7 = vpop.f32.mrb[68].mxu1 }
 0x2f5   : > { %v2117_v10 = vadd.f32 %v4491_v7, %v5784_v45  ;;  %v2108_v14 = vpop.f32.mrb[69].mxu1 }
 0x2f6   : > { %v2109_v19 = vadd.f32 %v5784_v45, %v2108_v14  ;;  %v4492_v6 = vpop.f32.mrb[70].mxu1  ;;  %4533 = vmatprep.mubr.bf16.mxu0 %v2195_v4 }
 0x2f7   : > { %v2120_v61 = vadd.f32 %v4492_v6, %v5784_v45  ;;  %v2111_v59 = vpop.f32.mrb[71].mxu1  ;;  %4534 = vmatmul.mubr.bf16.gmra.mrb[64].mxu0 %v2196_v1  ;;  %v2177_v30 = vmax.f32 %v2117_v10, 0.0 }
 0x2f8   : > { %v2112_v8 = vadd.f32 %v5784_v45, %v2111_v59  ;;  %v2175_v32 = vmax.f32 %v2109_v19, 0.0 }
 0x2f9   : > { %v2178_v24 = vmax.f32 %v2120_v61, 0.0 }
 0x2fa   : > { %v2176_v15 = vmax.f32 %v2112_v8, 0.0 }
 0x2fb   : > { %v2198_v35 = vpack.c.bf16 %v2178_v24, %v2177_v30 }
 0x2fc   : > { %v2197_v9 = vpack.c.bf16 %v2176_v15, %v2175_v32  ;;  %v4495_v22 = vpop.f32.mrb[72].mxu1  ;;  %v4753_v15 = vld [vmem:[%s6453_s3 + $0x80] sm:$0xff]  }
 0x2fd   : > { %v2133_v36 = vadd.f32 %v4495_v22, %v5784_v45  ;;  %v2124_v26 = vpop.f32.mrb[73].mxu1  ;;  %4585 = vmatprep.subr.bf16.mxu0 %v4753_v15  ;;  %v4757_v22 = vld [vmem:[%s6453_s3 + $0xa0] sm:$0xff]  }
 0x2fe   : > { %v2125_v27 = vadd.f32 %v5784_v45, %v2124_v26  ;;  %v4496_v31 = vpop.f32.mrb[74].mxu1  ;;  %4537 = vmatprep.mubr.bf16.mxu0 %v2197_v9  ;;  %4586 = vmatpush3.bf16.msra.mxu0 %v4753_v15  ;;  %v4756_v9 = vld [vmem:[%s6453_s3 + $0x98] sm:$0xff]   ;;  %v4759_v26 = vld [vmem:[%s6453_s3 + $0xb0] sm:$0xff]  }
 0x2ff   : > { %v2136_v34 = vadd.f32 %v4496_v31, %v5784_v45  ;;  %v2127_v25 = vpop.f32.mrb[75].mxu1  ;;  %4538 = vmatmul.mubr.bf16.gmra.mrb[68].mxu0 %v2198_v35  ;;  %v2181_v44 = vmax.f32 %v2133_v36, 0.0  ;;  %v4754_v35 = vld [vmem:[%s6453_s3 + $0x88] sm:$0xff]  }
 0x300   : > { %v2128_v40 = vadd.f32 %v5784_v45, %v2127_v25  ;;  %v2179_v53 = vmax.f32 %v2125_v27, 0.0  ;;  %4587 = vmatprep.subr.bf16.mxu0 %v4754_v35  ;;  %v4758_v36 = vld [vmem:[%s6453_s3 + $0xa8] sm:$0xff]   ;;  %v5842_v27 = vld [vmem:[%s6456_s6 + $0x1] ss:$0 sm:$0xff] }
 0x301   : > { %v2182_v50 = vmax.f32 %v2136_v34, 0.0 }
 0x302   : > { %v2180_v57 = vmax.f32 %v2128_v40, 0.0  ;;  %4588 = vmatpush3.bf16.msra.mxu0 %v4754_v35  ;;  %v2439_v40 = vld [vmem:[#allocation2 + $0x110] sm:$0xff] }
 0x303   : > { %v2200_v11 = vpack.c.bf16 %v2182_v50, %v2181_v44  ;;  %v2443_v35 = vld [vmem:[#allocation2 + $0x130] sm:$0xff] }
 0x304   : > { %v2199_v47 = vpack.c.bf16 %v2180_v57, %v2179_v53  ;;  %v4499_v0 = vpop.f32.mrb[76].mxu1  ;;  %v2437_v57 = vld [vmem:[#allocation2 + $0x100] sm:$0xff] }
 0x305   : > { %v2149_v1 = vadd.f32 %v4499_v0, %v5784_v45  ;;  %v2140_v4 = vpop.f32.mrb[77].mxu1 }
 0x306   : > { %v2141_v7 = vadd.f32 %v5784_v45, %v2140_v4  ;;  %v4500_v10 = vpop.f32.mrb[78].mxu1  ;;  %4541 = vmatprep.mubr.bf16.mxu0 %v2199_v47 }
 0x307   : > { %v2152_v14 = vadd.f32 %v4500_v10, %v5784_v45  ;;  %v2143_v19 = vpop.f32.mrb[79].mxu1  ;;  %4542 = vmatmul.mubr.bf16.gmra.mrb[72].mxu0 %v2200_v11  ;;  %v2185_v61 = vmax.f32 %v2149_v1, 0.0  ;;  %v2440_v1 = vld [vmem:[#allocation2 + $0x118] sm:$0xff]  ;;  %v2438_v10 = vld [vmem:[#allocation2 + $0x108] sm:$0xff] }
 0x308   : > { %v2144_v6 = vadd.f32 %v5784_v45, %v2143_v19  ;;  %v2183_v8 = vmax.f32 %v2141_v7, 0.0  ;;  %v4755_v45 = vld [vmem:[%s6453_s3 + $0x90] sm:$0xff]  }
 0x309   : > { %v2186_v59 = vmax.f32 %v2152_v14, 0.0  ;;  %4589 = vmatprep.subr.bf16.mxu0 %v4755_v45 }
 0x30a   : > { %v2184_v30 = vmax.f32 %v2144_v6, 0.0  ;;  %4590 = vmatpush3.bf16.msra.mxu0 %v4755_v45 }
 0x30b   : > { %v2202_v24 = vpack.c.bf16 %v2186_v59, %v2185_v61  ;;  %4591 = vmatprep.subr.bf16.mxu0 %v4756_v9 }
 0x30c   : > { %v2201_v32 = vpack.c.bf16 %v2184_v30, %v2183_v8 }
 0x30e   : > { %4545 = vmatprep.mubr.bf16.mxu0 %v2201_v32  ;;  %4592 = vmatpush3.bf16.msra.mxu0 %v4756_v9 }
 0x30f   : > { %4546 = vmatmul.mubr.bf16.gmra.mrb[76].mxu0 %v2202_v24  ;;  %4593 = vmatprep.subr.bf16.mxu0 %v4757_v22 }
 0x312   : > { %4594 = vmatpush3.bf16.msra.mxu0 %v4757_v22  ;;  %v2441_v22 = vld [vmem:[#allocation2 + $0x120] sm:$0xff] }
 0x313   : > { %4595 = vmatprep.subr.bf16.mxu0 %v4758_v36 }
 0x316   : > { %4596 = vmatpush3.bf16.msra.mxu0 %v4758_v36 }
 0x317   : > { %4597 = vmatprep.subr.bf16.mxu0 %v4759_v26 }
 0x31a   : > { %4598 = vmatpush3.bf16.msra.mxu0 %v4759_v26 }
 0x3aa   : > { %v4519_v31 = vpop.f32.mrb[48].mxu0 }
 0x3ab   : > { %v2319_v34 = vadd.f32 %v4519_v31, %v5842_v27  ;;  %v2310_v25 = vpop.f32.mrb[49].mxu0  ;;  %v2444_v31 = vld [vmem:[#allocation2 + $0x138] sm:$0xff] }
 0x3ac   : > { %v2311_v44 = vadd.f32 %v5842_v27, %v2310_v25  ;;  %v4520_v50 = vpop.f32.mrb[50].mxu0 }
 0x3ad   : > { %v2471_v53 = vmul.f32 %v2439_v40, %v2319_v34  ;;  %v2322_v11 = vadd.f32 %v4520_v50, %v5842_v27  ;;  %v2313_v47 = vpop.f32.mrb[51].mxu0  ;;  %v2442_v50 = vld [vmem:[#allocation2 + $0x128] sm:$0xff] }
 0x3ae   : > { %v2469_v0 = vmul.f32 %v2437_v57, %v2311_v44  ;;  %v2314_v4 = vadd.f32 %v5842_v27, %v2313_v47 }
 0x3af   : > { %v2472_v7 = vmul.f32 %v2440_v1, %v2322_v11  ;;  %v5852_v6 = vadd.f32 %v2471_v53, %v5569_v63 }
 0x3b0   : > { %v5849_v14 = vadd.f32 %v2469_v0, %v5566_v29  ;;  %v2470_v19 = vmul.f32 %v2438_v10, %v2314_v4 }
 0x3b1   : > { %v5855_v61 = vadd.f32 %v2472_v7, %v5572_v17  ;;  %v2535_v17 = vmax.f32 %v5852_v6, 0.0 }
 0x3b2   : > { %v5858_v59 = vadd.f32 %v2470_v19, %v5575_v28  ;;  %v4523_v8 = vpop.f32.mrb[52].mxu0  ;;  %v2533_v15 = vmax.f32 %v5849_v14, 0.0 }
 0x3b3   : > { %v2536_v30 = vmax.f32 %v5855_v61, 0.0  ;;  %v2335_v24 = vadd.f32 %v4523_v8, %v5842_v27  ;;  %v2326_v32 = vpop.f32.mrb[53].mxu0 }
 0x3b4   : > { %v2534_v29 = vmax.f32 %v5858_v59, 0.0  ;;  %v2327_v63 = vadd.f32 %v5842_v27, %v2326_v32  ;;  %v4524_v45 = vpop.f32.mrb[54].mxu0  ;;  %v2445_v32 = vld [vmem:[#allocation2 + $0x140] sm:$0xff] }
 0x3b5   : > { %v2475_v9 = vmul.f32 %v2443_v35, %v2335_v24  ;;  %v2338_v28 = vadd.f32 %v4524_v45, %v5842_v27  ;;  %v2329_v36 = vpop.f32.mrb[55].mxu0  ;;  %v2566_v40 = vpack.c.bf16 %v2536_v30, %v2535_v17  ;;  %v2448_v35 = vld [vmem:[#allocation2 + $0x158] sm:$0xff] }
 0x3b6   : > { %v2473_v26 = vmul.f32 %v2441_v22, %v2327_v63  ;;  %v2330_v34 = vadd.f32 %v5842_v27, %v2329_v36  ;;  %v2565_v25 = vpack.c.bf16 %v2534_v29, %v2533_v15 }
 0x3b7   : > { %v2476_v44 = vmul.f32 %v2444_v31, %v2338_v28  ;;  %v5873_v11 = vadd.f32 %v2475_v9, %v5594_v52  ;;  %v2447_v52 = vld [vmem:[#allocation2 + $0x150] sm:$0xff]  ;;  %v2446_v9 = vld [vmem:[#allocation2 + $0x148] sm:$0xff] }
 0x3b8   : > { %v5869_v53 = vadd.f32 %v2473_v26, %v5590_v46  ;;  %v2474_v57 = vmul.f32 %v2442_v50, %v2330_v34  ;;  %4553 = vmatprep.mubr.msk.bf16.mxu1 %vm733_vm1, %v2565_v25 }
 0x3b9   : > { %v5876_v47 = vadd.f32 %v2476_v44, %v5597_v54  ;;  %4554 = vmatmul.mubr.msk.bf16.vlgmr.msra.gmra.mrb[80].mxu1 %vm733_vm1, %v2566_v40  ;;  %v2539_v30 = vmax.f32 %v5873_v11, 0.0 }
 0x3ba   : > { %v5880_v0 = vadd.f32 %v2474_v57, %v5601_v60  ;;  %v4527_v1 = vpop.f32.mrb[56].mxu0  ;;  %v2537_v10 = vmax.f32 %v5869_v53, 0.0 }
 0x3bb   : > { %v2540_v4 = vmax.f32 %v5876_v47, 0.0  ;;  %v2351_v46 = vadd.f32 %v4527_v1, %v5842_v27  ;;  %v2342_v7 = vpop.f32.mrb[57].mxu0 }
 0x3bc   : > { %v2538_v19 = vmax.f32 %v5880_v0, 0.0  ;;  %v2343_v8 = vadd.f32 %v5842_v27, %v2342_v7  ;;  %v4528_v54 = vpop.f32.mrb[58].mxu0  ;;  %v2449_v7 = vld [vmem:[#allocation2 + $0x160] sm:$0xff] }
 0x3bd   : > { %v2479_v24 = vmul.f32 %v2447_v52, %v2351_v46  ;;  %v2354_v60 = vadd.f32 %v4528_v54, %v5842_v27  ;;  %v2345_v15 = vpop.f32.mrb[59].mxu0  ;;  %v2568_v22 = vpack.c.bf16 %v2540_v4, %v2539_v30  ;;  %v2452_v52 = vld [vmem:[#allocation2 + $0x178] sm:$0xff] }
 0x3be   : > { %v2477_v29 = vmul.f32 %v2445_v32, %v2343_v8  ;;  %v2346_v63 = vadd.f32 %v5842_v27, %v2345_v15  ;;  %v2567_v45 = vpack.c.bf16 %v2538_v19, %v2537_v10 }
 0x3bf   : > { %v2480_v17 = vmul.f32 %v2448_v35, %v2354_v60  ;;  %v5895_v26 = vadd.f32 %v2479_v24, %v5620_v55  ;;  %v2451_v55 = vld [vmem:[#allocation2 + $0x170] sm:$0xff]  ;;  %v2450_v24 = vld [vmem:[#allocation2 + $0x168] sm:$0xff] }
 0x3c0   : > { %v5891_v28 = vadd.f32 %v2477_v29, %v5616_v13  ;;  %v2478_v36 = vmul.f32 %v2446_v9, %v2346_v63  ;;  %4557 = vmatprep.mubr.msk.bf16.mxu1 %vm733_vm1, %v2567_v45 }
 0x3c1   : > { %v5898_v31 = vadd.f32 %v2480_v17, %v5623_v58  ;;  %4558 = vmatmul.mubr.msk.bf16.gmra.mrb[84].mxu1 %vm733_vm1, %v2568_v22  ;;  %v2543_v4 = vmax.f32 %v5895_v26, 0.0 }
 0x3c2   : > { %v5902_v34 = vadd.f32 %v2478_v36, %v5627_v21  ;;  %v4531_v25 = vpop.f32.mrb[60].mxu0  ;;  %v2541_v50 = vmax.f32 %v5891_v28, 0.0 }
 0x3c3   : > { %v2544_v40 = vmax.f32 %v5898_v31, 0.0  ;;  %v2367_v13 = vadd.f32 %v4531_v25, %v5842_v27  ;;  %v2358_v44 = vpop.f32.mrb[61].mxu0 }
 0x3c4   : > { %v2542_v57 = vmax.f32 %v5902_v34, 0.0  ;;  %v2359_v1 = vadd.f32 %v5842_v27, %v2358_v44  ;;  %v4532_v58 = vpop.f32.mrb[62].mxu0  ;;  %v2453_v44 = vld [vmem:[#allocation2 + $0x180] sm:$0xff] }
 0x3c5   : > { %v2483_v46 = vmul.f32 %v2451_v55, %v2367_v13  ;;  %v2370_v21 = vadd.f32 %v4532_v58, %v5842_v27  ;;  %v2361_v10 = vpop.f32.mrb[63].mxu0  ;;  %v2570_v32 = vpack.c.bf16 %v2544_v40, %v2543_v4  ;;  %v2456_v55 = vld [vmem:[#allocation2 + $0x198] sm:$0xff] }
 0x3c6   : > { %v2481_v19 = vmul.f32 %v2449_v7, %v2359_v1  ;;  %v2362_v8 = vadd.f32 %v5842_v27, %v2361_v10  ;;  %v2569_v54 = vpack.c.bf16 %v2542_v57, %v2541_v50 }
 0x3c7   : > { %v2484_v30 = vmul.f32 %v2452_v52, %v2370_v21  ;;  %v5917_v29 = vadd.f32 %v2483_v46, %v5646_v12  ;;  %v2455_v12 = vld [vmem:[#allocation2 + $0x190] sm:$0xff]  ;;  %v2454_v46 = vld [vmem:[#allocation2 + $0x188] sm:$0xff] }
 0x3c8   : > { %v5913_v60 = vadd.f32 %v2481_v19, %v5642_v5  ;;  %v2482_v15 = vmul.f32 %v2450_v24, %v2362_v8  ;;  %4561 = vmatprep.mubr.msk.bf16.mxu1 %vm733_vm1, %v2569_v54 }
 0x3c9   : > { %v5920_v35 = vadd.f32 %v2484_v30, %v5649_v16  ;;  %4562 = vmatmul.mubr.msk.bf16.gmra.mrb[88].mxu1 %vm733_vm1, %v2570_v32  ;;  %v2547_v40 = vmax.f32 %v5917_v29, 0.0 }
 0x3ca   : > { %v5924_v63 = vadd.f32 %v2482_v15, %v5653_v43  ;;  %v4535_v45 = vpop.f32.mrb[64].mxu0  ;;  %v2545_v22 = vmax.f32 %v5913_v60, 0.0 }
 0x3cb   : > { %v2548_v17 = vmax.f32 %v5920_v35, 0.0  ;;  %v2383_v5 = vadd.f32 %v4535_v45, %v5842_v27  ;;  %v2374_v9 = vpop.f32.mrb[65].mxu0 }
 0x3cc   : > { %v2546_v36 = vmax.f32 %v5924_v63, 0.0  ;;  %v2375_v25 = vadd.f32 %v5842_v27, %v2374_v9  ;;  %v4536_v16 = vpop.f32.mrb[66].mxu0  ;;  %v2457_v9 = vld [vmem:[#allocation2 + $0x1a0] sm:$0xff] }
 0x3cd   : > { %v2487_v13 = vmul.f32 %v2455_v12, %v2383_v5  ;;  %v2386_v43 = vadd.f32 %v4536_v16, %v5842_v27  ;;  %v2377_v50 = vpop.f32.mrb[67].mxu0  ;;  %v2572_v7 = vpack.c.bf16 %v2548_v17, %v2547_v40  ;;  %v2460_v12 = vld [vmem:[#allocation2 + $0x1b8] sm:$0xff] }
 0x3ce   : > { %v2485_v57 = vmul.f32 %v2453_v44, %v2375_v25  ;;  %v2378_v1 = vadd.f32 %v5842_v27, %v2377_v50  ;;  %v2571_v58 = vpack.c.bf16 %v2546_v36, %v2545_v22 }
 0x3cf   : > { %v2488_v4 = vmul.f32 %v2456_v55, %v2386_v43  ;;  %v5939_v19 = vadd.f32 %v2487_v13, %v5672_v39  ;;  %v2459_v39 = vld [vmem:[#allocation2 + $0x1b0] sm:$0xff]  ;;  %v2458_v13 = vld [vmem:[#allocation2 + $0x1a8] sm:$0xff] }
 0x3d0   : > { %v5935_v21 = vadd.f32 %v2485_v57, %v5668_v33  ;;  %v2486_v10 = vmul.f32 %v2454_v46, %v2378_v1  ;;  %4565 = vmatprep.mubr.msk.bf16.mxu1 %vm733_vm1, %v2571_v58 }
 0x3d1   : > { %v5942_v52 = vadd.f32 %v2488_v4, %v5675_v42  ;;  %4566 = vmatmul.mubr.msk.bf16.gmra.mrb[92].mxu1 %vm733_vm1, %v2572_v7  ;;  %v2551_v17 = vmax.f32 %v5939_v19, 0.0 }
 0x3d2   : > { %v5946_v8 = vadd.f32 %v2486_v10, %v5679_v51  ;;  %v4539_v54 = vpop.f32.mrb[68].mxu0  ;;  %v2549_v32 = vmax.f32 %v5935_v21, 0.0 }
 0x3d3   : > { %v2552_v30 = vmax.f32 %v5942_v52, 0.0  ;;  %v2399_v33 = vadd.f32 %v4539_v54, %v5842_v27  ;;  %v2390_v24 = vpop.f32.mrb[69].mxu0 }
 0x3d4   : > { %v2550_v15 = vmax.f32 %v5946_v8, 0.0  ;;  %v2391_v45 = vadd.f32 %v5842_v27, %v2390_v24  ;;  %v4540_v42 = vpop.f32.mrb[70].mxu0  ;;  %v2461_v24 = vld [vmem:[#allocation2 + $0x1c0] sm:$0xff] }
 0x3d5   : > { %v2491_v5 = vmul.f32 %v2459_v39, %v2399_v33  ;;  %v2402_v51 = vadd.f32 %v4540_v42, %v5842_v27  ;;  %v2393_v22 = vpop.f32.mrb[71].mxu0  ;;  %v2574_v44 = vpack.c.bf16 %v2552_v30, %v2551_v17  ;;  %v2464_v39 = vld [vmem:[#allocation2 + $0x1d8] sm:$0xff] }
 0x3d6   : > { %v2489_v36 = vmul.f32 %v2457_v9, %v2391_v45  ;;  %v2394_v25 = vadd.f32 %v5842_v27, %v2393_v22  ;;  %v2573_v16 = vpack.c.bf16 %v2550_v15, %v2549_v32 }
 0x3d7   : > { %v2492_v40 = vmul.f32 %v2460_v12, %v2402_v51  ;;  %v5961_v57 = vadd.f32 %v2491_v5, %v5698_v38  ;;  %v2463_v38 = vld [vmem:[#allocation2 + $0x1d0] sm:$0xff]  ;;  %v2462_v5 = vld [vmem:[#allocation2 + $0x1c8] sm:$0xff] }
 0x3d8   : > { %v5957_v43 = vadd.f32 %v2489_v36, %v5694_v2  ;;  %v2490_v50 = vmul.f32 %v2458_v13, %v2394_v25  ;;  %4569 = vmatprep.mubr.msk.bf16.mxu1 %vm733_vm1, %v2573_v16 }
 0x3d9   : > { %v5964_v55 = vadd.f32 %v2492_v40, %v5701_v3  ;;  %4570 = vmatmul.mubr.msk.bf16.gmra.mrb[96].mxu1 %vm733_vm1, %v2574_v44  ;;  %v2555_v30 = vmax.f32 %v5961_v57, 0.0 }
 0x3da   : > { %v5968_v1 = vadd.f32 %v2490_v50, %v5705_v48  ;;  %v4543_v58 = vpop.f32.mrb[72].mxu0  ;;  %v2553_v7 = vmax.f32 %v5957_v43, 0.0 }
 0x3db   : > { %v2556_v4 = vmax.f32 %v5964_v55, 0.0  ;;  %v2415_v2 = vadd.f32 %v4543_v58, %v5842_v27  ;;  %v2406_v46 = vpop.f32.mrb[73].mxu0 }
 0x3dc   : > { %v2554_v10 = vmax.f32 %v5968_v1, 0.0  ;;  %v2407_v54 = vadd.f32 %v5842_v27, %v2406_v46  ;;  %v4544_v3 = vpop.f32.mrb[74].mxu0  ;;  %v2465_v46 = vld [vmem:[#allocation2 + $0x1e0] sm:$0xff] }
 0x3dd   : > { %v2495_v33 = vmul.f32 %v2463_v38, %v2415_v2  ;;  %v2418_v48 = vadd.f32 %v4544_v3, %v5842_v27  ;;  %v2409_v32 = vpop.f32.mrb[75].mxu0  ;;  %v2576_v9 = vpack.c.bf16 %v2556_v4, %v2555_v30  ;;  %v2468_v38 = vld [vmem:[#allocation2 + $0x1f8] sm:$0xff] }
 0x3de   : > { %v2493_v15 = vmul.f32 %v2461_v24, %v2407_v54  ;;  %v2410_v45 = vadd.f32 %v5842_v27, %v2409_v32  ;;  %v2575_v42 = vpack.c.bf16 %v2554_v10, %v2553_v7 }
 0x3df   : > { %v2496_v17 = vmul.f32 %v2464_v39, %v2418_v48  ;;  %v5983_v36 = vadd.f32 %v2495_v33, %v5724_v56  ;;  %v2467_v56 = vld [vmem:[#allocation2 + $0x1f0] sm:$0xff]  ;;  %v2466_v33 = vld [vmem:[#allocation2 + $0x1e8] sm:$0xff] }
 0x3e0   : > { %v5979_v51 = vadd.f32 %v2493_v15, %v5720_v49  ;;  %v2494_v22 = vmul.f32 %v2462_v5, %v2410_v45  ;;  %4573 = vmatprep.mubr.msk.bf16.mxu1 %vm733_vm1, %v2575_v42 }
 0x3e1   : > { %v5986_v12 = vadd.f32 %v2496_v17, %v5727_v62  ;;  %4574 = vmatmul.mubr.msk.bf16.gmra.mrb[100].mxu1 %vm733_vm1, %v2576_v9  ;;  %v2559_v4 = vmax.f32 %v5983_v36, 0.0 }
 0x3e2   : > { %v5990_v25 = vadd.f32 %v2494_v22, %v5731_v23  ;;  %v4547_v16 = vpop.f32.mrb[76].mxu0  ;;  %v2557_v44 = vmax.f32 %v5979_v51, 0.0  ;;  %v6032_v22 = vld [vmem:[%s6455_s5 + $0x2] ss:$0 sm:$0xff] }
 0x3e3   : > { %v2560_v40 = vmax.f32 %v5986_v12, 0.0  ;;  %v2431_v49 = vadd.f32 %v4547_v16, %v5842_v27  ;;  %v2422_v13 = vpop.f32.mrb[77].mxu0 }
 0x3e4   : > { %v2558_v50 = vmax.f32 %v5990_v25, 0.0  ;;  %v2423_v58 = vadd.f32 %v5842_v27, %v2422_v13  ;;  %v4548_v62 = vpop.f32.mrb[78].mxu0 }
 0x3e5   : > { %v2499_v2 = vmul.f32 %v2467_v56, %v2431_v49  ;;  %v2434_v23 = vadd.f32 %v4548_v62, %v5842_v27  ;;  %v2425_v7 = vpop.f32.mrb[79].mxu0  ;;  %v2578_v24 = vpack.c.bf16 %v2560_v40, %v2559_v4 }
 0x3e6   : > { %v2497_v10 = vmul.f32 %v2465_v46, %v2423_v58  ;;  %v2426_v54 = vadd.f32 %v5842_v27, %v2425_v7  ;;  %v2577_v3 = vpack.c.bf16 %v2558_v50, %v2557_v44 }
 0x3e7   : > { %v2500_v30 = vmul.f32 %v2468_v38, %v2434_v23  ;;  %v6005_v15 = vadd.f32 %v2499_v2, %v5750_v37  ;;  %v4760_v37 = vld [vmem:[%s6453_s3 + $0xb8] sm:$0xff]  }
 0x3e8   : > { %v6001_v48 = vadd.f32 %v2497_v10, %v5746_v18  ;;  %v2498_v32 = vmul.f32 %v2466_v33, %v2426_v54  ;;  %4577 = vmatprep.mubr.msk.bf16.mxu1 %vm733_vm1, %v2577_v3  ;;  %4599 = vmatprep.subr.bf16.mxu0 %v4760_v37 }
 0x3e9   : > { %v6008_v39 = vadd.f32 %v2500_v30, %v5753_v20  ;;  %4578 = vmatmul.mubr.msk.bf16.gmra.mrb[104].mxu1 %vm733_vm1, %v2578_v24  ;;  %v2563_v17 = vmax.f32 %v6005_v15, 0.0  ;;  %4600 = vmatpush3.bf16.msra.mxu0 %v4760_v37  ;;  %v4761_v20 = vld [vmem:[%s6452_s2 + $0x30] sm:$0xff]  }
 0x3ea   : > { %v6012_v27 = vadd.f32 %v2498_v32, %v5757_v41  ;;  %v2561_v42 = vmax.f32 %v6001_v48, 0.0  ;;  %v4762_v41 = vld [vmem:[%s6452_s2 + $0x38] sm:$0xff]   ;;  %4633 = vmatprep.subr.bf16.mxu1 %v4761_v20 }
 0x3eb   : > { %v2564_v45 = vmax.f32 %v6008_v39, 0.0  ;;  %4634 = vmatpush3.bf16.msra.mxu1 %v4761_v20 }
 0x3ec   : > { %v2562_v18 = vmax.f32 %v6012_v27, 0.0  ;;  %4635 = vmatprep.subr.bf16.mxu1 %v4762_v41 }
 0x3ed   : > { %v2580_v9 = vpack.c.bf16 %v2564_v45, %v2563_v17 }
 0x3ee   : > { %v2579_v5 = vpack.c.bf16 %v2562_v18, %v2561_v42 }
 0x3ef   : > { %4636 = vmatpush3.bf16.msra.mxu1 %v4762_v41 }
 0x3f0   : > { %4581 = vmatprep.mubr.msk.bf16.mxu1 %vm733_vm1, %v2579_v5 }
 0x3f1   : > { %4582 = vmatmul.mubr.msk.bf16.gmra.mrb[108].mxu1 %vm733_vm1, %v2580_v9 }
 0x48c   : > { %v4555_v16 = vpop.f32.mrb[80].mxu1 }
 0x48d   : > { %v2697_v40 = vadd.f32 %v4555_v16, %v6032_v22  ;;  %v2688_v49 = vpop.f32.mrb[81].mxu1 }
 0x48e   : > { %v2689_v13 = vadd.f32 %v6032_v22, %v2688_v49  ;;  %v4556_v44 = vpop.f32.mrb[82].mxu1 }
 0x48f   : > { %v2700_v50 = vadd.f32 %v4556_v44, %v6032_v22  ;;  %v2691_v56 = vpop.f32.mrb[83].mxu1  ;;  %v2817_v62 = vmax.f32 %v2697_v40, 0.0 }
 0x490   : > { %v2692_v58 = vadd.f32 %v6032_v22, %v2691_v56  ;;  %v2815_v2 = vmax.f32 %v2689_v13, 0.0 }
 0x491   : > { %v2818_v4 = vmax.f32 %v2700_v50, 0.0 }
 0x492   : > { %v2816_v46 = vmax.f32 %v2692_v58, 0.0 }
 0x493   : > { %v2848_v23 = vpack.c.bf16 %v2818_v4, %v2817_v62 }
 0x494   : > { %v2847_v7 = vpack.c.bf16 %v2816_v46, %v2815_v2  ;;  %v4559_v10 = vpop.f32.mrb[84].mxu1 }
 0x495   : > { %v2713_v38 = vadd.f32 %v4559_v10, %v6032_v22  ;;  %v2704_v54 = vpop.f32.mrb[85].mxu1 }
 0x496   : > { %v2705_v3 = vadd.f32 %v6032_v22, %v2704_v54  ;;  %v4560_v30 = vpop.f32.mrb[86].mxu1  ;;  %4601 = vmatprep.mubr.bf16.mxu0 %v2847_v7 }
 0x497   : > { %v2716_v33 = vadd.f32 %v4560_v30, %v6032_v22  ;;  %v2707_v24 = vpop.f32.mrb[87].mxu1  ;;  %4602 = vmatmul.mubr.bf16.vlgmr.msra.gmra.mrb[80].mxu0 %v2848_v23  ;;  %v2821_v45 = vmax.f32 %v2713_v38, 0.0 }
 0x498   : > { %v2708_v32 = vadd.f32 %v6032_v22, %v2707_v24  ;;  %v2819_v18 = vmax.f32 %v2705_v3, 0.0 }
 0x499   : > { %v2822_v42 = vmax.f32 %v2716_v33, 0.0 }
 0x49a   : > { %v2820_v17 = vmax.f32 %v2708_v32, 0.0 }
 0x49b   : > { %v2850_v5 = vpack.c.bf16 %v2822_v42, %v2821_v45 }
 0x49c   : > { %v2849_v9 = vpack.c.bf16 %v2820_v17, %v2819_v18  ;;  %v4563_v37 = vpop.f32.mrb[88].mxu1 }
 0x49d   : > { %v2729_v20 = vadd.f32 %v4563_v37, %v6032_v22  ;;  %v2720_v41 = vpop.f32.mrb[89].mxu1 }
 0x49e   : > { %v2721_v16 = vadd.f32 %v6032_v22, %v2720_v41  ;;  %v4564_v40 = vpop.f32.mrb[90].mxu1  ;;  %4605 = vmatprep.mubr.bf16.mxu0 %v2849_v9 }
 0x49f   : > { %v2732_v49 = vadd.f32 %v4564_v40, %v6032_v22  ;;  %v2723_v13 = vpop.f32.mrb[91].mxu1  ;;  %4606 = vmatmul.mubr.bf16.gmra.mrb[84].mxu0 %v2850_v5  ;;  %v2825_v50 = vmax.f32 %v2729_v20, 0.0 }
 0x4a0   : > { %v2724_v44 = vadd.f32 %v6032_v22, %v2723_v13  ;;  %v2823_v58 = vmax.f32 %v2721_v16, 0.0 }
 0x4a1   : > { %v2826_v56 = vmax.f32 %v2732_v49, 0.0 }
 0x4a2   : > { %v2824_v62 = vmax.f32 %v2724_v44, 0.0 }
 0x4a3   : > { %v2852_v4 = vpack.c.bf16 %v2826_v56, %v2825_v50 }
 0x4a4   : > { %v2851_v2 = vpack.c.bf16 %v2824_v62, %v2823_v58  ;;  %v4567_v46 = vpop.f32.mrb[92].mxu1 }
 0x4a5   : > { %v2745_v23 = vadd.f32 %v4567_v46, %v6032_v22  ;;  %v2736_v7 = vpop.f32.mrb[93].mxu1 }
 0x4a6   : > { %v2737_v10 = vadd.f32 %v6032_v22, %v2736_v7  ;;  %v4568_v38 = vpop.f32.mrb[94].mxu1  ;;  %4609 = vmatprep.mubr.bf16.mxu0 %v2851_v2 }
 0x4a7   : > { %v2748_v54 = vadd.f32 %v4568_v38, %v6032_v22  ;;  %v2739_v3 = vpop.f32.mrb[95].mxu1  ;;  %4610 = vmatmul.mubr.bf16.gmra.mrb[88].mxu0 %v2852_v4  ;;  %v2829_v33 = vmax.f32 %v2745_v23, 0.0 }
 0x4a8   : > { %v2740_v30 = vadd.f32 %v6032_v22, %v2739_v3  ;;  %v2827_v32 = vmax.f32 %v2737_v10, 0.0 }
 0x4a9   : > { %v2830_v24 = vmax.f32 %v2748_v54, 0.0 }
 0x4aa   : > { %v2828_v45 = vmax.f32 %v2740_v30, 0.0 }
 0x4ab   : > { %v2854_v42 = vpack.c.bf16 %v2830_v24, %v2829_v33 }
 0x4ac   : > { %v2853_v18 = vpack.c.bf16 %v2828_v45, %v2827_v32  ;;  %v4571_v17 = vpop.f32.mrb[96].mxu1 }
 0x4ad   : > { %v2761_v5 = vadd.f32 %v4571_v17, %v6032_v22  ;;  %v2752_v9 = vpop.f32.mrb[97].mxu1 }
 0x4ae   : > { %v2753_v37 = vadd.f32 %v6032_v22, %v2752_v9  ;;  %v4572_v20 = vpop.f32.mrb[98].mxu1  ;;  %4613 = vmatprep.mubr.bf16.mxu0 %v2853_v18 }
 0x4af   : > { %v2764_v41 = vadd.f32 %v4572_v20, %v6032_v22  ;;  %v2755_v16 = vpop.f32.mrb[99].mxu1  ;;  %4614 = vmatmul.mubr.bf16.gmra.mrb[92].mxu0 %v2854_v42  ;;  %v2833_v49 = vmax.f32 %v2761_v5, 0.0 }
 0x4b0   : > { %v2756_v40 = vadd.f32 %v6032_v22, %v2755_v16  ;;  %v2831_v44 = vmax.f32 %v2753_v37, 0.0 }
 0x4b1   : > { %v2834_v13 = vmax.f32 %v2764_v41, 0.0 }
 0x4b2   : > { %v2832_v50 = vmax.f32 %v2756_v40, 0.0 }
 0x4b3   : > { %v2856_v56 = vpack.c.bf16 %v2834_v13, %v2833_v49 }
 0x4b4   : > { %v2855_v58 = vpack.c.bf16 %v2832_v50, %v2831_v44  ;;  %v4575_v62 = vpop.f32.mrb[100].mxu1 }
 0x4b5   : > { %v2777_v4 = vadd.f32 %v4575_v62, %v6032_v22  ;;  %v2768_v2 = vpop.f32.mrb[101].mxu1 }
 0x4b6   : > { %v2769_v46 = vadd.f32 %v6032_v22, %v2768_v2  ;;  %v4576_v23 = vpop.f32.mrb[102].mxu1  ;;  %4617 = vmatprep.mubr.bf16.mxu0 %v2855_v58 }
 0x4b7   : > { %v2780_v7 = vadd.f32 %v4576_v23, %v6032_v22  ;;  %v2771_v10 = vpop.f32.mrb[103].mxu1  ;;  %4618 = vmatmul.mubr.bf16.gmra.mrb[96].mxu0 %v2856_v56  ;;  %v2837_v54 = vmax.f32 %v2777_v4, 0.0 }
 0x4b8   : > { %v2772_v38 = vadd.f32 %v6032_v22, %v2771_v10  ;;  %v2835_v30 = vmax.f32 %v2769_v46, 0.0 }
 0x4b9   : > { %v2838_v3 = vmax.f32 %v2780_v7, 0.0 }
 0x4ba   : > { %v2836_v33 = vmax.f32 %v2772_v38, 0.0 }
 0x4bb   : > { %v2858_v24 = vpack.c.bf16 %v2838_v3, %v2837_v54 }
 0x4bc   : > { %v2857_v32 = vpack.c.bf16 %v2836_v33, %v2835_v30  ;;  %v4579_v45 = vpop.f32.mrb[104].mxu1  ;;  %v4763_v33 = vld [vmem:[%s6453_s3 + $0xc0] sm:$0xff]  }
 0x4bd   : > { %v2793_v42 = vadd.f32 %v4579_v45, %v6032_v22  ;;  %v2784_v18 = vpop.f32.mrb[105].mxu1  ;;  %4669 = vmatprep.subr.bf16.mxu0 %v4763_v33  ;;  %v4767_v45 = vld [vmem:[%s6453_s3 + $0xe0] sm:$0xff]  }
 0x4be   : > { %v2785_v17 = vadd.f32 %v6032_v22, %v2784_v18  ;;  %v4580_v5 = vpop.f32.mrb[106].mxu1  ;;  %4621 = vmatprep.mubr.bf16.mxu0 %v2857_v32  ;;  %4670 = vmatpush3.bf16.msra.mxu0 %v4763_v33  ;;  %v4766_v32 = vld [vmem:[%s6453_s3 + $0xd8] sm:$0xff]   ;;  %v4769_v18 = vld [vmem:[%s6453_s3 + $0xf0] sm:$0xff]  }
 0x4bf   : > { %v2796_v9 = vadd.f32 %v4580_v5, %v6032_v22  ;;  %v2787_v37 = vpop.f32.mrb[107].mxu1  ;;  %4622 = vmatmul.mubr.bf16.gmra.mrb[100].mxu0 %v2858_v24  ;;  %v2841_v41 = vmax.f32 %v2793_v42, 0.0  ;;  %v4764_v24 = vld [vmem:[%s6453_s3 + $0xc8] sm:$0xff]  }
 0x4c0   : > { %v2788_v20 = vadd.f32 %v6032_v22, %v2787_v37  ;;  %v2839_v40 = vmax.f32 %v2785_v17, 0.0  ;;  %4671 = vmatprep.subr.bf16.mxu0 %v4764_v24  ;;  %v4768_v42 = vld [vmem:[%s6453_s3 + $0xe8] sm:$0xff]   ;;  %v6090_v17 = vld [vmem:[%s6456_s6 + $0x2] ss:$0 sm:$0xff] }
 0x4c1   : > { %v2842_v16 = vmax.f32 %v2796_v9, 0.0 }
 0x4c2   : > { %v2840_v49 = vmax.f32 %v2788_v20, 0.0  ;;  %4672 = vmatpush3.bf16.msra.mxu0 %v4764_v24  ;;  %v3099_v20 = vld [vmem:[#allocation2 + $0x210] sm:$0xff] }
 0x4c3   : > { %v2860_v13 = vpack.c.bf16 %v2842_v16, %v2841_v41  ;;  %v3103_v24 = vld [vmem:[#allocation2 + $0x230] sm:$0xff] }
 0x4c4   : > { %v2859_v44 = vpack.c.bf16 %v2840_v49, %v2839_v40  ;;  %v4583_v50 = vpop.f32.mrb[108].mxu1  ;;  %v3097_v49 = vld [vmem:[#allocation2 + $0x200] sm:$0xff] }
 0x4c5   : > { %v2809_v56 = vadd.f32 %v4583_v50, %v6032_v22  ;;  %v2800_v58 = vpop.f32.mrb[109].mxu1 }
 0x4c6   : > { %v2801_v62 = vadd.f32 %v6032_v22, %v2800_v58  ;;  %v4584_v4 = vpop.f32.mrb[110].mxu1  ;;  %4625 = vmatprep.mubr.bf16.mxu0 %v2859_v44 }
 0x4c7   : > { %v2812_v2 = vadd.f32 %v4584_v4, %v6032_v22  ;;  %v2803_v46 = vpop.f32.mrb[111].mxu1  ;;  %4626 = vmatmul.mubr.bf16.gmra.mrb[104].mxu0 %v2860_v13  ;;  %v2845_v7 = vmax.f32 %v2809_v56, 0.0  ;;  %v3100_v56 = vld [vmem:[#allocation2 + $0x218] sm:$0xff]  ;;  %v3098_v4 = vld [vmem:[#allocation2 + $0x208] sm:$0xff] }
 0x4c8   : > { %v2804_v23 = vadd.f32 %v6032_v22, %v2803_v46  ;;  %v2843_v38 = vmax.f32 %v2801_v62, 0.0  ;;  %v4765_v22 = vld [vmem:[%s6453_s3 + $0xd0] sm:$0xff]  }
 0x4c9   : > { %v2846_v10 = vmax.f32 %v2812_v2, 0.0  ;;  %4673 = vmatprep.subr.bf16.mxu0 %v4765_v22 }
 0x4ca   : > { %v2844_v54 = vmax.f32 %v2804_v23, 0.0  ;;  %4674 = vmatpush3.bf16.msra.mxu0 %v4765_v22 }
 0x4cb   : > { %v2862_v3 = vpack.c.bf16 %v2846_v10, %v2845_v7  ;;  %4675 = vmatprep.subr.bf16.mxu0 %v4766_v32 }
 0x4cc   : > { %v2861_v30 = vpack.c.bf16 %v2844_v54, %v2843_v38 }
 0x4ce   : > { %4629 = vmatprep.mubr.bf16.mxu0 %v2861_v30  ;;  %4676 = vmatpush3.bf16.msra.mxu0 %v4766_v32 }
 0x4cf   : > { %4630 = vmatmul.mubr.bf16.gmra.mrb[108].mxu0 %v2862_v3  ;;  %4677 = vmatprep.subr.bf16.mxu0 %v4767_v45 }
 0x4d2   : > { %4678 = vmatpush3.bf16.msra.mxu0 %v4767_v45  ;;  %v3101_v45 = vld [vmem:[#allocation2 + $0x220] sm:$0xff] }
 0x4d3   : > { %4679 = vmatprep.subr.bf16.mxu0 %v4768_v42 }
 0x4d6   : > { %4680 = vmatpush3.bf16.msra.mxu0 %v4768_v42 }
 0x4d7   : > { %4681 = vmatprep.subr.bf16.mxu0 %v4769_v18 }
 0x4da   : > { %4682 = vmatpush3.bf16.msra.mxu0 %v4769_v18 }
 0x56a   : > { %v4603_v5 = vpop.f32.mrb[80].mxu0 }
 0x56b   : > { %v2979_v9 = vadd.f32 %v4603_v5, %v6090_v17  ;;  %v2970_v37 = vpop.f32.mrb[81].mxu0  ;;  %v3104_v5 = vld [vmem:[#allocation2 + $0x238] sm:$0xff] }
 0x56c   : > { %v2971_v41 = vadd.f32 %v6090_v17, %v2970_v37  ;;  %v4604_v16 = vpop.f32.mrb[82].mxu0 }
 0x56d   : > { %v3131_v40 = vmul.f32 %v3099_v20, %v2979_v9  ;;  %v2982_v13 = vadd.f32 %v4604_v16, %v6090_v17  ;;  %v2973_v44 = vpop.f32.mrb[83].mxu0  ;;  %v3102_v16 = vld [vmem:[#allocation2 + $0x228] sm:$0xff] }
 0x56e   : > { %v3129_v50 = vmul.f32 %v3097_v49, %v2971_v41  ;;  %v2974_v58 = vadd.f32 %v6090_v17, %v2973_v44 }
 0x56f   : > { %v3132_v62 = vmul.f32 %v3100_v56, %v2982_v13  ;;  %v6100_v23 = vadd.f32 %v3131_v40, %v5852_v6 }
 0x570   : > { %v6097_v2 = vadd.f32 %v3129_v50, %v5849_v14  ;;  %v3130_v46 = vmul.f32 %v3098_v4, %v2974_v58 }
 0x571   : > { %v6103_v7 = vadd.f32 %v3132_v62, %v5855_v61  ;;  %v3195_v61 = vmax.f32 %v6100_v23, 0.0 }
 0x572   : > { %v6106_v10 = vadd.f32 %v3130_v46, %v5858_v59  ;;  %v4607_v38 = vpop.f32.mrb[84].mxu0  ;;  %v3193_v33 = vmax.f32 %v6097_v2, 0.0 }
 0x573   : > { %v3196_v54 = vmax.f32 %v6103_v7, 0.0  ;;  %v2995_v3 = vadd.f32 %v4607_v38, %v6090_v17  ;;  %v2986_v30 = vpop.f32.mrb[85].mxu0 }
 0x574   : > { %v3194_v14 = vmax.f32 %v6106_v10, 0.0  ;;  %v2987_v6 = vadd.f32 %v6090_v17, %v2986_v30  ;;  %v4608_v22 = vpop.f32.mrb[86].mxu0  ;;  %v3105_v30 = vld [vmem:[#allocation2 + $0x240] sm:$0xff] }
 0x575   : > { %v3135_v32 = vmul.f32 %v3103_v24, %v2995_v3  ;;  %v2998_v59 = vadd.f32 %v4608_v22, %v6090_v17  ;;  %v2989_v42 = vpop.f32.mrb[87].mxu0  ;;  %v3226_v20 = vpack.c.bf16 %v3196_v54, %v3195_v61  ;;  %v3108_v24 = vld [vmem:[#allocation2 + $0x258] sm:$0xff] }
 0x576   : > { %v3133_v18 = vmul.f32 %v3101_v45, %v2987_v6  ;;  %v2990_v9 = vadd.f32 %v6090_v17, %v2989_v42  ;;  %v3225_v37 = vpack.c.bf16 %v3194_v14, %v3193_v33 }
 0x577   : > { %v3136_v41 = vmul.f32 %v3104_v5, %v2998_v59  ;;  %v6121_v13 = vadd.f32 %v3135_v32, %v5873_v11  ;;  %v3107_v11 = vld [vmem:[#allocation2 + $0x250] sm:$0xff]  ;;  %v3106_v32 = vld [vmem:[#allocation2 + $0x248] sm:$0xff] }
 0x578   : > { %v6117_v40 = vadd.f32 %v3133_v18, %v5869_v53  ;;  %v3134_v49 = vmul.f32 %v3102_v16, %v2990_v9  ;;  %4637 = vmatprep.mubr.msk.bf16.mxu1 %vm733_vm1, %v3225_v37 }
 0x579   : > { %v6124_v44 = vadd.f32 %v3136_v41, %v5876_v47  ;;  %4638 = vmatmul.mubr.msk.bf16.vlgmr.msra.gmra.mrb[112].mxu1 %vm733_vm1, %v3226_v20  ;;  %v3199_v54 = vmax.f32 %v6121_v13, 0.0 }
 0x57a   : > { %v6128_v50 = vadd.f32 %v3134_v49, %v5880_v0  ;;  %v4611_v56 = vpop.f32.mrb[88].mxu0  ;;  %v3197_v4 = vmax.f32 %v6117_v40, 0.0 }
 0x57b   : > { %v3200_v58 = vmax.f32 %v6124_v44, 0.0  ;;  %v3011_v53 = vadd.f32 %v4611_v56, %v6090_v17  ;;  %v3002_v62 = vpop.f32.mrb[89].mxu0 }
 0x57c   : > { %v3198_v46 = vmax.f32 %v6128_v50, 0.0  ;;  %v3003_v38 = vadd.f32 %v6090_v17, %v3002_v62  ;;  %v4612_v47 = vpop.f32.mrb[90].mxu0  ;;  %v3109_v62 = vld [vmem:[#allocation2 + $0x260] sm:$0xff] }
 0x57d   : > { %v3139_v3 = vmul.f32 %v3107_v11, %v3011_v53  ;;  %v3014_v0 = vadd.f32 %v4612_v47, %v6090_v17  ;;  %v3005_v33 = vpop.f32.mrb[91].mxu0  ;;  %v3228_v45 = vpack.c.bf16 %v3200_v58, %v3199_v54  ;;  %v3112_v11 = vld [vmem:[#allocation2 + $0x278] sm:$0xff] }
 0x57e   : > { %v3137_v14 = vmul.f32 %v3105_v30, %v3003_v38  ;;  %v3006_v6 = vadd.f32 %v6090_v17, %v3005_v33  ;;  %v3227_v22 = vpack.c.bf16 %v3198_v46, %v3197_v4 }
 0x57f   : > { %v3140_v61 = vmul.f32 %v3108_v24, %v3014_v0  ;;  %v6143_v18 = vadd.f32 %v3139_v3, %v5895_v26  ;;  %v3111_v26 = vld [vmem:[#allocation2 + $0x270] sm:$0xff]  ;;  %v3110_v3 = vld [vmem:[#allocation2 + $0x268] sm:$0xff] }
 0x580   : > { %v6139_v59 = vadd.f32 %v3137_v14, %v5891_v28  ;;  %v3138_v42 = vmul.f32 %v3106_v32, %v3006_v6  ;;  %4641 = vmatprep.mubr.msk.bf16.mxu1 %vm733_vm1, %v3227_v22 }
 0x581   : > { %v6146_v5 = vadd.f32 %v3140_v61, %v5898_v31  ;;  %4642 = vmatmul.mubr.msk.bf16.gmra.mrb[116].mxu1 %vm733_vm1, %v3228_v45  ;;  %v3203_v58 = vmax.f32 %v6143_v18, 0.0 }
 0x582   : > { %v6150_v9 = vadd.f32 %v3138_v42, %v5902_v34  ;;  %v4615_v37 = vpop.f32.mrb[92].mxu0  ;;  %v3201_v16 = vmax.f32 %v6139_v59, 0.0 }
 0x583   : > { %v3204_v20 = vmax.f32 %v6146_v5, 0.0  ;;  %v3027_v28 = vadd.f32 %v4615_v37, %v6090_v17  ;;  %v3018_v41 = vpop.f32.mrb[93].mxu0 }
 0x584   : > { %v3202_v49 = vmax.f32 %v6150_v9, 0.0  ;;  %v3019_v56 = vadd.f32 %v6090_v17, %v3018_v41  ;;  %v4616_v31 = vpop.f32.mrb[94].mxu0  ;;  %v3113_v41 = vld [vmem:[#allocation2 + $0x280] sm:$0xff] }
 0x585   : > { %v3143_v53 = vmul.f32 %v3111_v26, %v3027_v28  ;;  %v3030_v34 = vadd.f32 %v4616_v31, %v6090_v17  ;;  %v3021_v4 = vpop.f32.mrb[95].mxu0  ;;  %v3230_v30 = vpack.c.bf16 %v3204_v20, %v3203_v58  ;;  %v3116_v26 = vld [vmem:[#allocation2 + $0x298] sm:$0xff] }
 0x586   : > { %v3141_v46 = vmul.f32 %v3109_v62, %v3019_v56  ;;  %v3022_v38 = vadd.f32 %v6090_v17, %v3021_v4  ;;  %v3229_v47 = vpack.c.bf16 %v3202_v49, %v3201_v16 }
 0x587   : > { %v3144_v54 = vmul.f32 %v3112_v11, %v3030_v34  ;;  %v6165_v14 = vadd.f32 %v3143_v53, %v5917_v29  ;;  %v3115_v29 = vld [vmem:[#allocation2 + $0x290] sm:$0xff]  ;;  %v3114_v53 = vld [vmem:[#allocation2 + $0x288] sm:$0xff] }
 0x588   : > { %v6161_v0 = vadd.f32 %v3141_v46, %v5913_v60  ;;  %v3142_v33 = vmul.f32 %v3110_v3, %v3022_v38  ;;  %4645 = vmatprep.mubr.msk.bf16.mxu1 %vm733_vm1, %v3229_v47 }
 0x589   : > { %v6168_v24 = vadd.f32 %v3144_v54, %v5920_v35  ;;  %4646 = vmatmul.mubr.msk.bf16.gmra.mrb[120].mxu1 %vm733_vm1, %v3230_v30  ;;  %v3207_v20 = vmax.f32 %v6165_v14, 0.0 }
 0x58a   : > { %v6172_v6 = vadd.f32 %v3142_v33, %v5924_v63  ;;  %v4619_v22 = vpop.f32.mrb[96].mxu0  ;;  %v3205_v45 = vmax.f32 %v6161_v0, 0.0 }
 0x58b   : > { %v3208_v61 = vmax.f32 %v6168_v24, 0.0  ;;  %v3043_v60 = vadd.f32 %v4619_v22, %v6090_v17  ;;  %v3034_v32 = vpop.f32.mrb[97].mxu0 }
 0x58c   : > { %v3206_v42 = vmax.f32 %v6172_v6, 0.0  ;;  %v3035_v37 = vadd.f32 %v6090_v17, %v3034_v32  ;;  %v4620_v35 = vpop.f32.mrb[98].mxu0  ;;  %v3117_v32 = vld [vmem:[#allocation2 + $0x2a0] sm:$0xff] }
 0x58d   : > { %v3147_v28 = vmul.f32 %v3115_v29, %v3043_v60  ;;  %v3046_v63 = vadd.f32 %v4620_v35, %v6090_v17  ;;  %v3037_v16 = vpop.f32.mrb[99].mxu0  ;;  %v3232_v62 = vpack.c.bf16 %v3208_v61, %v3207_v20  ;;  %v3120_v29 = vld [vmem:[#allocation2 + $0x2b8] sm:$0xff] }
 0x58e   : > { %v3145_v49 = vmul.f32 %v3113_v41, %v3035_v37  ;;  %v3038_v56 = vadd.f32 %v6090_v17, %v3037_v16  ;;  %v3231_v31 = vpack.c.bf16 %v3206_v42, %v3205_v45 }
 0x58f   : > { %v3148_v58 = vmul.f32 %v3116_v26, %v3046_v63  ;;  %v6187_v46 = vadd.f32 %v3147_v28, %v5939_v19  ;;  %v3119_v19 = vld [vmem:[#allocation2 + $0x2b0] sm:$0xff]  ;;  %v3118_v28 = vld [vmem:[#allocation2 + $0x2a8] sm:$0xff] }
 0x590   : > { %v6183_v34 = vadd.f32 %v3145_v49, %v5935_v21  ;;  %v3146_v4 = vmul.f32 %v3114_v53, %v3038_v56  ;;  %4649 = vmatprep.mubr.msk.bf16.mxu1 %vm733_vm1, %v3231_v31 }
 0x591   : > { %v6190_v11 = vadd.f32 %v3148_v58, %v5942_v52  ;;  %4650 = vmatmul.mubr.msk.bf16.gmra.mrb[124].mxu1 %vm733_vm1, %v3232_v62  ;;  %v3211_v61 = vmax.f32 %v6187_v46, 0.0 }
 0x592   : > { %v6194_v38 = vadd.f32 %v3146_v4, %v5946_v8  ;;  %v4623_v47 = vpop.f32.mrb[100].mxu0  ;;  %v3209_v30 = vmax.f32 %v6183_v34, 0.0 }
 0x593   : > { %v3212_v54 = vmax.f32 %v6190_v11, 0.0  ;;  %v3059_v21 = vadd.f32 %v4623_v47, %v6090_v17  ;;  %v3050_v3 = vpop.f32.mrb[101].mxu0 }
 0x594   : > { %v3210_v33 = vmax.f32 %v6194_v38, 0.0  ;;  %v3051_v22 = vadd.f32 %v6090_v17, %v3050_v3  ;;  %v4624_v52 = vpop.f32.mrb[102].mxu0  ;;  %v3121_v3 = vld [vmem:[#allocation2 + $0x2c0] sm:$0xff] }
 0x595   : > { %v3151_v60 = vmul.f32 %v3119_v19, %v3059_v21  ;;  %v3062_v8 = vadd.f32 %v4624_v52, %v6090_v17  ;;  %v3053_v45 = vpop.f32.mrb[103].mxu0  ;;  %v3234_v41 = vpack.c.bf16 %v3212_v54, %v3211_v61  ;;  %v3124_v19 = vld [vmem:[#allocation2 + $0x2d8] sm:$0xff] }
 0x596   : > { %v3149_v42 = vmul.f32 %v3117_v32, %v3051_v22  ;;  %v3054_v37 = vadd.f32 %v6090_v17, %v3053_v45  ;;  %v3233_v35 = vpack.c.bf16 %v3210_v33, %v3209_v30 }
 0x597   : > { %v3152_v20 = vmul.f32 %v3120_v29, %v3062_v8  ;;  %v6209_v49 = vadd.f32 %v3151_v60, %v5961_v57  ;;  %v3123_v57 = vld [vmem:[#allocation2 + $0x2d0] sm:$0xff]  ;;  %v3122_v60 = vld [vmem:[#allocation2 + $0x2c8] sm:$0xff] }
 0x598   : > { %v6205_v63 = vadd.f32 %v3149_v42, %v5957_v43  ;;  %v3150_v16 = vmul.f32 %v3118_v28, %v3054_v37  ;;  %4653 = vmatprep.mubr.msk.bf16.mxu1 %vm733_vm1, %v3233_v35 }
 0x599   : > { %v6212_v26 = vadd.f32 %v3152_v20, %v5964_v55  ;;  %4654 = vmatmul.mubr.msk.bf16.gmra.mrb[128].mxu1 %vm733_vm1, %v3234_v41  ;;  %v3215_v54 = vmax.f32 %v6209_v49, 0.0 }
 0x59a   : > { %v6216_v56 = vadd.f32 %v3150_v16, %v5968_v1  ;;  %v4627_v31 = vpop.f32.mrb[104].mxu0  ;;  %v3213_v62 = vmax.f32 %v6205_v63, 0.0 }
 0x59b   : > { %v3216_v58 = vmax.f32 %v6212_v26, 0.0  ;;  %v3075_v43 = vadd.f32 %v4627_v31, %v6090_v17  ;;  %v3066_v53 = vpop.f32.mrb[105].mxu0 }
 0x59c   : > { %v3214_v4 = vmax.f32 %v6216_v56, 0.0  ;;  %v3067_v47 = vadd.f32 %v6090_v17, %v3066_v53  ;;  %v4628_v55 = vpop.f32.mrb[106].mxu0  ;;  %v3125_v53 = vld [vmem:[#allocation2 + $0x2e0] sm:$0xff] }
 0x59d   : > { %v3155_v21 = vmul.f32 %v3123_v57, %v3075_v43  ;;  %v3078_v1 = vadd.f32 %v4628_v55, %v6090_v17  ;;  %v3069_v30 = vpop.f32.mrb[107].mxu0  ;;  %v3236_v32 = vpack.c.bf16 %v3216_v58, %v3215_v54  ;;  %v3128_v57 = vld [vmem:[#allocation2 + $0x2f8] sm:$0xff] }
 0x59e   : > { %v3153_v33 = vmul.f32 %v3121_v3, %v3067_v47  ;;  %v3070_v22 = vadd.f32 %v6090_v17, %v3069_v30  ;;  %v3235_v52 = vpack.c.bf16 %v3214_v4, %v3213_v62 }
 0x59f   : > { %v3156_v61 = vmul.f32 %v3124_v19, %v3078_v1  ;;  %v6231_v42 = vadd.f32 %v3155_v21, %v5983_v36  ;;  %v3127_v36 = vld [vmem:[#allocation2 + $0x2f0] sm:$0xff]  ;;  %v3126_v21 = vld [vmem:[#allocation2 + $0x2e8] sm:$0xff] }
 0x5a0   : > { %v6227_v8 = vadd.f32 %v3153_v33, %v5979_v51  ;;  %v3154_v45 = vmul.f32 %v3122_v60, %v3070_v22  ;;  %4657 = vmatprep.mubr.msk.bf16.mxu1 %vm733_vm1, %v3235_v52 }
 0x5a1   : > { %v6234_v29 = vadd.f32 %v3156_v61, %v5986_v12  ;;  %4658 = vmatmul.mubr.msk.bf16.gmra.mrb[132].mxu1 %vm733_vm1, %v3236_v32  ;;  %v3219_v58 = vmax.f32 %v6231_v42, 0.0 }
 0x5a2   : > { %v6238_v37 = vadd.f32 %v3154_v45, %v5990_v25  ;;  %v4631_v35 = vpop.f32.mrb[108].mxu0  ;;  %v3217_v41 = vmax.f32 %v6227_v8, 0.0 }
 0x5a3   : > { %v3220_v20 = vmax.f32 %v6234_v29, 0.0  ;;  %v3091_v51 = vadd.f32 %v4631_v35, %v6090_v17  ;;  %v3082_v28 = vpop.f32.mrb[109].mxu0 }
 0x5a4   : > { %v3218_v16 = vmax.f32 %v6238_v37, 0.0  ;;  %v3083_v31 = vadd.f32 %v6090_v17, %v3082_v28  ;;  %v4632_v12 = vpop.f32.mrb[110].mxu0 }
 0x5a5   : > { %v3159_v43 = vmul.f32 %v3127_v36, %v3091_v51  ;;  %v3094_v25 = vadd.f32 %v4632_v12, %v6090_v17  ;;  %v3085_v62 = vpop.f32.mrb[111].mxu0  ;;  %v3238_v3 = vpack.c.bf16 %v3220_v20, %v3219_v58 }
 0x5a6   : > { %v3157_v4 = vmul.f32 %v3125_v53, %v3083_v31  ;;  %v3086_v47 = vadd.f32 %v6090_v17, %v3085_v62  ;;  %v3237_v55 = vpack.c.bf16 %v3218_v16, %v3217_v41 }
 0x5a7   : > { %v3160_v54 = vmul.f32 %v3128_v57, %v3094_v25  ;;  %v6253_v33 = vadd.f32 %v3159_v43, %v6005_v15  ;;  %v4770_v15 = vld [vmem:[%s6453_s3 + $0xf8] sm:$0xff]  }
 0x5a8   : > { %v6249_v1 = vadd.f32 %v3157_v4, %v6001_v48  ;;  %v3158_v30 = vmul.f32 %v3126_v21, %v3086_v47  ;;  %4661 = vmatprep.mubr.msk.bf16.mxu1 %vm733_vm1, %v3237_v55  ;;  %4683 = vmatprep.subr.bf16.mxu0 %v4770_v15 }
 0x5a9   : > { %v6256_v19 = vadd.f32 %v3160_v54, %v6008_v39  ;;  %4662 = vmatmul.mubr.msk.bf16.gmra.mrb[136].mxu1 %vm733_vm1, %v3238_v3  ;;  %v3223_v61 = vmax.f32 %v6253_v33, 0.0  ;;  %4684 = vmatpush3.bf16.msra.mxu0 %v4770_v15  ;;  %v6274_v39 = vld [vmem:[%s6455_s5 + $0x3] ss:$0 sm:$0xff] }
 0x5aa   : > { %v6260_v17 = vadd.f32 %v3158_v30, %v6012_v27  ;;  %v3221_v52 = vmax.f32 %v6249_v1, 0.0 }
 0x5ab   : > { %v3224_v22 = vmax.f32 %v6256_v19, 0.0 }
 0x5ac   : > { %v3222_v48 = vmax.f32 %v6260_v17, 0.0 }
 0x5ad   : > { %v3240_v32 = vpack.c.bf16 %v3224_v22, %v3223_v61 }
 0x5ae   : > { %v3239_v60 = vpack.c.bf16 %v3222_v48, %v3221_v52 }
 0x5b0   : > { %4665 = vmatprep.mubr.msk.bf16.mxu1 %vm733_vm1, %v3239_v60 }
 0x5b1   : > { %4666 = vmatmul.mubr.msk.bf16.gmra.mrb[140].mxu1 %vm733_vm1, %v3240_v32 }
 0x64c   : > { %v4639_v27 = vpop.f32.mrb[112].mxu1 }
 0x64d   : > { %v3357_v45 = vadd.f32 %v4639_v27, %v6274_v39  ;;  %v3348_v35 = vpop.f32.mrb[113].mxu1 }
 0x64e   : > { %v3349_v20 = vadd.f32 %v6274_v39, %v3348_v35  ;;  %v4640_v51 = vpop.f32.mrb[114].mxu1 }
 0x64f   : > { %v3360_v28 = vadd.f32 %v4640_v51, %v6274_v39  ;;  %v3351_v41 = vpop.f32.mrb[115].mxu1  ;;  %v3477_v36 = vmax.f32 %v3357_v45, 0.0 }
 0x650   : > { %v3352_v16 = vadd.f32 %v6274_v39, %v3351_v41  ;;  %v3475_v12 = vmax.f32 %v3349_v20, 0.0 }
 0x651   : > { %v3478_v31 = vmax.f32 %v3360_v28, 0.0 }
 0x652   : > { %v3476_v58 = vmax.f32 %v3352_v16, 0.0 }
 0x653   : > { %v3508_v43 = vpack.c.bf16 %v3478_v31, %v3477_v36 }
 0x654   : > { %v3507_v53 = vpack.c.bf16 %v3476_v58, %v3475_v12  ;;  %v4643_v25 = vpop.f32.mrb[116].mxu1 }
 0x655   : > { %v3373_v62 = vadd.f32 %v4643_v25, %v6274_v39  ;;  %v3364_v4 = vpop.f32.mrb[117].mxu1 }
 0x656   : > { %v3365_v57 = vadd.f32 %v6274_v39, %v3364_v4  ;;  %v4644_v47 = vpop.f32.mrb[118].mxu1  ;;  %4685 = vmatprep.mubr.bf16.mxu0 %v3507_v53 }
 0x657   : > { %v3376_v55 = vadd.f32 %v4644_v47, %v6274_v39  ;;  %v3367_v54 = vpop.f32.mrb[119].mxu1  ;;  %4686 = vmatmul.mubr.bf16.vlgmr.msra.gmra.mrb[112].mxu0 %v3508_v43  ;;  %v3481_v3 = vmax.f32 %v3373_v62, 0.0 }
 0x658   : > { %v3368_v21 = vadd.f32 %v6274_v39, %v3367_v54  ;;  %v3479_v22 = vmax.f32 %v3365_v57, 0.0 }
 0x659   : > { %v3482_v30 = vmax.f32 %v3376_v55, 0.0 }
 0x65a   : > { %v3480_v52 = vmax.f32 %v3368_v21, 0.0 }
 0x65b   : > { %v3510_v48 = vpack.c.bf16 %v3482_v30, %v3481_v3 }
 0x65c   : > { %v3509_v61 = vpack.c.bf16 %v3480_v52, %v3479_v22  ;;  %v4647_v60 = vpop.f32.mrb[120].mxu1 }
 0x65d   : > { %v3389_v32 = vadd.f32 %v4647_v60, %v6274_v39  ;;  %v3380_v15 = vpop.f32.mrb[121].mxu1 }
 0x65e   : > { %v3381_v27 = vadd.f32 %v6274_v39, %v3380_v15  ;;  %v4648_v45 = vpop.f32.mrb[122].mxu1  ;;  %4689 = vmatprep.mubr.bf16.mxu0 %v3509_v61 }
 0x65f   : > { %v3392_v35 = vadd.f32 %v4648_v45, %v6274_v39  ;;  %v3383_v20 = vpop.f32.mrb[123].mxu1  ;;  %4690 = vmatmul.mubr.bf16.gmra.mrb[116].mxu0 %v3510_v48  ;;  %v3485_v28 = vmax.f32 %v3389_v32, 0.0 }
 0x660   : > { %v3384_v51 = vadd.f32 %v6274_v39, %v3383_v20  ;;  %v3483_v16 = vmax.f32 %v3381_v27, 0.0 }
 0x661   : > { %v3486_v41 = vmax.f32 %v3392_v35, 0.0 }
 0x662   : > { %v3484_v36 = vmax.f32 %v3384_v51, 0.0 }
 0x663   : > { %v3512_v31 = vpack.c.bf16 %v3486_v41, %v3485_v28 }
 0x664   : > { %v3511_v12 = vpack.c.bf16 %v3484_v36, %v3483_v16  ;;  %v4651_v58 = vpop.f32.mrb[124].mxu1 }
 0x665   : > { %v3405_v43 = vadd.f32 %v4651_v58, %v6274_v39  ;;  %v3396_v53 = vpop.f32.mrb[125].mxu1 }
 0x666   : > { %v3397_v25 = vadd.f32 %v6274_v39, %v3396_v53  ;;  %v4652_v62 = vpop.f32.mrb[126].mxu1  ;;  %4693 = vmatprep.mubr.bf16.mxu0 %v3511_v12 }
 0x667   : > { %v3408_v4 = vadd.f32 %v4652_v62, %v6274_v39  ;;  %v3399_v57 = vpop.f32.mrb[127].mxu1  ;;  %4694 = vmatmul.mubr.bf16.gmra.mrb[120].mxu0 %v3512_v31  ;;  %v3489_v55 = vmax.f32 %v3405_v43, 0.0 }
 0x668   : > { %v3400_v47 = vadd.f32 %v6274_v39, %v3399_v57  ;;  %v3487_v21 = vmax.f32 %v3397_v25, 0.0 }
 0x669   : > { %v3490_v54 = vmax.f32 %v3408_v4, 0.0 }
 0x66a   : > { %v3488_v3 = vmax.f32 %v3400_v47, 0.0 }
 0x66b   : > { %v3514_v30 = vpack.c.bf16 %v3490_v54, %v3489_v55 }
 0x66c   : > { %v3513_v22 = vpack.c.bf16 %v3488_v3, %v3487_v21  ;;  %v4655_v52 = vpop.f32.mrb[128].mxu1 }
 0x66d   : > { %v3421_v48 = vadd.f32 %v4655_v52, %v6274_v39  ;;  %v3412_v61 = vpop.f32.mrb[129].mxu1 }
 0x66e   : > { %v3413_v60 = vadd.f32 %v6274_v39, %v3412_v61  ;;  %v4656_v32 = vpop.f32.mrb[130].mxu1  ;;  %4697 = vmatprep.mubr.bf16.mxu0 %v3513_v22 }
 0x66f   : > { %v3424_v15 = vadd.f32 %v4656_v32, %v6274_v39  ;;  %v3415_v27 = vpop.f32.mrb[131].mxu1  ;;  %4698 = vmatmul.mubr.bf16.gmra.mrb[124].mxu0 %v3514_v30  ;;  %v3493_v35 = vmax.f32 %v3421_v48, 0.0 }
 0x670   : > { %v3416_v45 = vadd.f32 %v6274_v39, %v3415_v27  ;;  %v3491_v51 = vmax.f32 %v3413_v60, 0.0 }
 0x671   : > { %v3494_v20 = vmax.f32 %v3424_v15, 0.0 }
 0x672   : > { %v3492_v28 = vmax.f32 %v3416_v45, 0.0 }
 0x673   : > { %v3516_v41 = vpack.c.bf16 %v3494_v20, %v3493_v35 }
 0x674   : > { %v3515_v16 = vpack.c.bf16 %v3492_v28, %v3491_v51  ;;  %v4659_v36 = vpop.f32.mrb[132].mxu1 }
 0x675   : > { %v3437_v31 = vadd.f32 %v4659_v36, %v6274_v39  ;;  %v3428_v12 = vpop.f32.mrb[133].mxu1 }
 0x676   : > { %v3429_v58 = vadd.f32 %v6274_v39, %v3428_v12  ;;  %v4660_v43 = vpop.f32.mrb[134].mxu1  ;;  %4701 = vmatprep.mubr.bf16.mxu0 %v3515_v16 }
 0x677   : > { %v3440_v53 = vadd.f32 %v4660_v43, %v6274_v39  ;;  %v3431_v25 = vpop.f32.mrb[135].mxu1  ;;  %4702 = vmatmul.mubr.bf16.gmra.mrb[128].mxu0 %v3516_v41  ;;  %v3497_v4 = vmax.f32 %v3437_v31, 0.0 }
 0x678   : > { %v3432_v62 = vadd.f32 %v6274_v39, %v3431_v25  ;;  %v3495_v47 = vmax.f32 %v3429_v58, 0.0 }
 0x679   : > { %v3498_v57 = vmax.f32 %v3440_v53, 0.0 }
 0x67a   : > { %v3496_v55 = vmax.f32 %v3432_v62, 0.0 }
 0x67b   : > { %v3518_v54 = vpack.c.bf16 %v3498_v57, %v3497_v4 }
 0x67c   : > { %v3517_v21 = vpack.c.bf16 %v3496_v55, %v3495_v47  ;;  %v4663_v3 = vpop.f32.mrb[136].mxu1  ;;  %v6311_v55 = vld [vmem:[%s6456_s6 + $0x3] ss:$0 sm:$0xff] }
 0x67d   : > { %v3453_v30 = vadd.f32 %v4663_v3, %v6274_v39  ;;  %v3444_v22 = vpop.f32.mrb[137].mxu1 }
 0x67e   : > { %v3445_v52 = vadd.f32 %v6274_v39, %v3444_v22  ;;  %v4664_v48 = vpop.f32.mrb[138].mxu1  ;;  %4705 = vmatprep.mubr.bf16.mxu0 %v3517_v21 }
 0x67f   : > { %v3456_v61 = vadd.f32 %v4664_v48, %v6274_v39  ;;  %v3447_v60 = vpop.f32.mrb[139].mxu1  ;;  %4706 = vmatmul.mubr.bf16.gmra.mrb[132].mxu0 %v3518_v54  ;;  %v3501_v15 = vmax.f32 %v3453_v30, 0.0  ;;  %v3759_v30 = vld [vmem:[#allocation2 + $0x310] sm:$0xff]  ;;  %v3757_v48 = vld [vmem:[#allocation2 + $0x300] sm:$0xff] }
 0x680   : > { %v3448_v32 = vadd.f32 %v6274_v39, %v3447_v60  ;;  %v3499_v45 = vmax.f32 %v3445_v52, 0.0 }
 0x681   : > { %v3502_v27 = vmax.f32 %v3456_v61, 0.0 }
 0x682   : > { %v3500_v35 = vmax.f32 %v3448_v32, 0.0 }
 0x683   : > { %v3520_v20 = vpack.c.bf16 %v3502_v27, %v3501_v15  ;;  %v3760_v15 = vld [vmem:[#allocation2 + $0x318] sm:$0xff] }
 0x684   : > { %v3519_v51 = vpack.c.bf16 %v3500_v35, %v3499_v45  ;;  %v4667_v28 = vpop.f32.mrb[140].mxu1 }
 0x685   : > { %v3469_v41 = vadd.f32 %v4667_v28, %v6274_v39  ;;  %v3460_v16 = vpop.f32.mrb[141].mxu1 }
 0x686   : > { %v3461_v36 = vadd.f32 %v6274_v39, %v3460_v16  ;;  %v4668_v31 = vpop.f32.mrb[142].mxu1  ;;  %4709 = vmatprep.mubr.bf16.mxu0 %v3519_v51 }
 0x687   : > { %v3472_v12 = vadd.f32 %v4668_v31, %v6274_v39  ;;  %v3463_v58 = vpop.f32.mrb[143].mxu1  ;;  %4710 = vmatmul.mubr.bf16.gmra.mrb[136].mxu0 %v3520_v20  ;;  %v3505_v53 = vmax.f32 %v3469_v41, 0.0  ;;  %v3758_v20 = vld [vmem:[#allocation2 + $0x308] sm:$0xff] }
 0x688   : > { %v3464_v43 = vadd.f32 %v6274_v39, %v3463_v58  ;;  %v3503_v62 = vmax.f32 %v3461_v36, 0.0 }
 0x689   : > { %v3506_v25 = vmax.f32 %v3472_v12, 0.0 }
 0x68a   : > { %v3504_v4 = vmax.f32 %v3464_v43, 0.0 }
 0x68b   : > { %v3522_v57 = vpack.c.bf16 %v3506_v25, %v3505_v53 }
 0x68c   : > { %v3521_v47 = vpack.c.bf16 %v3504_v4, %v3503_v62  ;;  %v3764_v62 = vld [vmem:[#allocation2 + $0x338] sm:$0xff] }
 0x68e   : > { %4713 = vmatprep.mubr.bf16.mxu0 %v3521_v47 }
 0x68f   : > { %4714 = vmatmul.mubr.bf16.gmra.mrb[140].mxu0 %v3522_v57 }
 0x72a   : > { %v4687_v54 = vpop.f32.mrb[112].mxu0 }
 0x72b   : > { %v3639_v21 = vadd.f32 %v4687_v54, %v6311_v55  ;;  %v3630_v3 = vpop.f32.mrb[113].mxu0  ;;  %v3762_v54 = vld [vmem:[#allocation2 + $0x328] sm:$0xff] }
 0x72c   : > { %v3631_v39 = vadd.f32 %v6311_v55, %v3630_v3  ;;  %v4688_v22 = vpop.f32.mrb[114].mxu0 }
 0x72d   : > { %v3791_v52 = vmul.f32 %v3759_v30, %v3639_v21  ;;  %v3642_v61 = vadd.f32 %v4688_v22, %v6311_v55  ;;  %v3633_v60 = vpop.f32.mrb[115].mxu0 }
 0x72e   : > { %v3789_v32 = vmul.f32 %v3757_v48, %v3631_v39  ;;  %v3634_v27 = vadd.f32 %v6311_v55, %v3633_v60 }
 0x72f   : > { %v3823_v45 = vadd.f32 %v3791_v52, %v6100_v23  ;;  %v3792_v35 = vmul.f32 %v3760_v15, %v3642_v61  ;;  %v3763_v23 = vld [vmem:[#allocation2 + $0x330] sm:$0xff] }
 0x730   : > { %v3821_v51 = vadd.f32 %v3789_v32, %v6097_v2  ;;  %v3790_v28 = vmul.f32 %v3758_v20, %v3634_v27  ;;  %v3768_v27 = vld [vmem:[#allocation2 + $0x358] sm:$0xff] }
 0x731   : > { %3855 = vst.msk [vmem:[%s6320_s22 + $0x10] sm:$0xff] %vm733_vm1, %v3823_v45  ;;  %v3824_v41 = vadd.f32 %v3792_v35, %v6103_v7  ;;  %v3761_v7 = vld [vmem:[#allocation2 + $0x320] sm:$0xff] }
 0x732   : > { %3853 = vst.msk [vmem:[%s6320_s22] sm:$0xff] %vm733_vm1, %v3821_v51  ;;  %v3822_v16 = vadd.f32 %v3790_v28, %v6106_v10  ;;  %v4691_v36 = vpop.f32.mrb[116].mxu0  ;;  %v3766_v51 = vld [vmem:[#allocation2 + $0x348] sm:$0xff] }
 0x733   : > { %3856 = vst.msk [vmem:[%s6320_s22 + $0x18] sm:$0xff] %vm733_vm1, %v3824_v41  ;;  %v3655_v31 = vadd.f32 %v4691_v36, %v6311_v55  ;;  %v3646_v12 = vpop.f32.mrb[117].mxu0 }
 0x734   : > { %3854 = vst.msk [vmem:[%s6320_s22 + $0x8] sm:$0xff] %vm733_vm1, %v3822_v16  ;;  %v3647_v2 = vadd.f32 %v6311_v55, %v3646_v12  ;;  %v4692_v58 = vpop.f32.mrb[118].mxu0 }
 0x735   : > { %v3795_v43 = vmul.f32 %v3763_v23, %v3655_v31  ;;  %v3658_v53 = vadd.f32 %v4692_v58, %v6311_v55  ;;  %v3649_v10 = vpop.f32.mrb[119].mxu0 }
 0x736   : > { %v3793_v25 = vmul.f32 %v3761_v7, %v3647_v2  ;;  %v3650_v4 = vadd.f32 %v6311_v55, %v3649_v10 }
 0x737   : > { %v3827_v57 = vadd.f32 %v3795_v43, %v6121_v13  ;;  %v3796_v47 = vmul.f32 %v3764_v62, %v3658_v53  ;;  %v3767_v13 = vld [vmem:[#allocation2 + $0x350] sm:$0xff]  ;;  %v3772_v53 = vld [vmem:[#allocation2 + $0x378] sm:$0xff] }
 0x738   : > { %v3825_v21 = vadd.f32 %v3793_v25, %v6117_v40  ;;  %v3794_v3 = vmul.f32 %v3762_v54, %v3650_v4  ;;  %v3770_v4 = vld [vmem:[#allocation2 + $0x368] sm:$0xff] }
 0x739   : > { %3859 = vst.msk [vmem:[%s6320_s22 + $0x30] sm:$0xff] %vm733_vm1, %v3827_v57  ;;  %v3828_v30 = vadd.f32 %v3796_v47, %v6124_v44  ;;  %v3765_v44 = vld [vmem:[#allocation2 + $0x340] sm:$0xff] }
 0x73a   : > { %3857 = vst.msk [vmem:[%s6320_s22 + $0x20] sm:$0xff] %vm733_vm1, %v3825_v21  ;;  %v3826_v39 = vadd.f32 %v3794_v3, %v6128_v50  ;;  %v4695_v22 = vpop.f32.mrb[120].mxu0 }
 0x73b   : > { %3860 = vst.msk [vmem:[%s6320_s22 + $0x38] sm:$0xff] %vm733_vm1, %v3828_v30  ;;  %v3671_v52 = vadd.f32 %v4695_v22, %v6311_v55  ;;  %v3662_v48 = vpop.f32.mrb[121].mxu0 }
 0x73c   : > { %3858 = vst.msk [vmem:[%s6320_s22 + $0x28] sm:$0xff] %vm733_vm1, %v3826_v39  ;;  %v3663_v40 = vadd.f32 %v6311_v55, %v3662_v48  ;;  %v4696_v61 = vpop.f32.mrb[122].mxu0 }
 0x73d   : > { %v3799_v60 = vmul.f32 %v3767_v13, %v3671_v52  ;;  %v3674_v32 = vadd.f32 %v4696_v61, %v6311_v55  ;;  %v3665_v50 = vpop.f32.mrb[123].mxu0 }
 0x73e   : > { %v3797_v15 = vmul.f32 %v3765_v44, %v3663_v40  ;;  %v3666_v45 = vadd.f32 %v6311_v55, %v3665_v50  ;;  %v3776_v40 = vld [vmem:[#allocation2 + $0x398] sm:$0xff] }
 0x73f   : > { %v3831_v35 = vadd.f32 %v3799_v60, %v6143_v18  ;;  %v3800_v20 = vmul.f32 %v3768_v27, %v3674_v32  ;;  %v3771_v18 = vld [vmem:[#allocation2 + $0x370] sm:$0xff]  ;;  %v3774_v32 = vld [vmem:[#allocation2 + $0x388] sm:$0xff] }
 0x740   : > { %v3829_v28 = vadd.f32 %v3797_v15, %v6139_v59  ;;  %v3798_v41 = vmul.f32 %v3766_v51, %v3666_v45 }
 0x741   : > { %3863 = vst.msk [vmem:[%s6320_s22 + $0x50] sm:$0xff] %vm733_vm1, %v3831_v35  ;;  %v3832_v16 = vadd.f32 %v3800_v20, %v6146_v5  ;;  %v3769_v5 = vld [vmem:[#allocation2 + $0x360] sm:$0xff] }
 0x742   : > { %3861 = vst.msk [vmem:[%s6320_s22 + $0x40] sm:$0xff] %vm733_vm1, %v3829_v28  ;;  %v3830_v36 = vadd.f32 %v3798_v41, %v6150_v9  ;;  %v4699_v31 = vpop.f32.mrb[124].mxu0 }
 0x743   : > { %3864 = vst.msk [vmem:[%s6320_s22 + $0x58] sm:$0xff] %vm733_vm1, %v3832_v16  ;;  %v3687_v12 = vadd.f32 %v4699_v31, %v6311_v55  ;;  %v3678_v23 = vpop.f32.mrb[125].mxu0  ;;  %v3780_v31 = vld [vmem:[#allocation2 + $0x3b8] sm:$0xff] }
 0x744   : > { %3862 = vst.msk [vmem:[%s6320_s22 + $0x48] sm:$0xff] %vm733_vm1, %v3830_v36  ;;  %v3679_v59 = vadd.f32 %v6311_v55, %v3678_v23  ;;  %v4700_v2 = vpop.f32.mrb[126].mxu0 }
 0x745   : > { %v3803_v58 = vmul.f32 %v3771_v18, %v3687_v12  ;;  %v3690_v43 = vadd.f32 %v4700_v2, %v6311_v55  ;;  %v3681_v9 = vpop.f32.mrb[127].mxu0 }
 0x746   : > { %v3801_v7 = vmul.f32 %v3769_v5, %v3679_v59  ;;  %v3682_v10 = vadd.f32 %v6311_v55, %v3681_v9  ;;  %v3778_v59 = vld [vmem:[#allocation2 + $0x3a8] sm:$0xff] }
 0x747   : > { %v3835_v25 = vadd.f32 %v3803_v58, %v6165_v14  ;;  %v3804_v62 = vmul.f32 %v3772_v53, %v3690_v43  ;;  %v3775_v14 = vld [vmem:[#allocation2 + $0x390] sm:$0xff] }
 0x748   : > { %v3833_v57 = vadd.f32 %v3801_v7, %v6161_v0  ;;  %v3802_v47 = vmul.f32 %v3770_v4, %v3682_v10 }
 0x749   : > { %3867 = vst.msk [vmem:[%s6320_s22 + $0x70] sm:$0xff] %vm733_vm1, %v3835_v25  ;;  %v3836_v54 = vadd.f32 %v3804_v62, %v6168_v24  ;;  %v3773_v24 = vld [vmem:[#allocation2 + $0x380] sm:$0xff] }
 0x74a   : > { %3865 = vst.msk [vmem:[%s6320_s22 + $0x60] sm:$0xff] %vm733_vm1, %v3833_v57  ;;  %v3834_v21 = vadd.f32 %v3802_v47, %v6172_v6  ;;  %v4703_v3 = vpop.f32.mrb[128].mxu0  ;;  %v3784_v57 = vld [vmem:[#allocation2 + $0x3d8] sm:$0xff] }
 0x74b   : > { %3868 = vst.msk [vmem:[%s6320_s22 + $0x78] sm:$0xff] %vm733_vm1, %v3836_v54  ;;  %v3703_v30 = vadd.f32 %v4703_v3, %v6311_v55  ;;  %v3694_v39 = vpop.f32.mrb[129].mxu0  ;;  %v3782_v3 = vld [vmem:[#allocation2 + $0x3c8] sm:$0xff] }
 0x74c   : > { %3866 = vst.msk [vmem:[%s6320_s22 + $0x68] sm:$0xff] %vm733_vm1, %v3834_v21  ;;  %v3695_v0 = vadd.f32 %v6311_v55, %v3694_v39  ;;  %v4704_v22 = vpop.f32.mrb[130].mxu0 }
 0x74d   : > { %v3807_v52 = vmul.f32 %v3775_v14, %v3703_v30  ;;  %v3706_v48 = vadd.f32 %v4704_v22, %v6311_v55  ;;  %v3697_v6 = vpop.f32.mrb[131].mxu0 }
 0x74e   : > { %v3805_v13 = vmul.f32 %v3773_v24, %v3695_v0  ;;  %v3698_v61 = vadd.f32 %v6311_v55, %v3697_v6 }
 0x74f   : > { %v3839_v60 = vadd.f32 %v3807_v52, %v6187_v46  ;;  %v3808_v44 = vmul.f32 %v3776_v40, %v3706_v48  ;;  %v3779_v46 = vld [vmem:[#allocation2 + $0x3b0] sm:$0xff] }
 0x750   : > { %v3837_v50 = vadd.f32 %v3805_v13, %v6183_v34  ;;  %v3806_v15 = vmul.f32 %v3774_v32, %v3698_v61  ;;  %v3788_v61 = vld [vmem:[#allocation2 + $0x3f8] sm:$0xff] }
 0x751   : > { %3871 = vst.msk [vmem:[%s6320_s22 + $0x90] sm:$0xff] %vm733_vm1, %v3839_v60  ;;  %v3840_v27 = vadd.f32 %v3808_v44, %v6190_v11  ;;  %v3777_v11 = vld [vmem:[#allocation2 + $0x3a0] sm:$0xff] }
 0x752   : > { %3869 = vst.msk [vmem:[%s6320_s22 + $0x80] sm:$0xff] %vm733_vm1, %v3837_v50  ;;  %v3838_v45 = vadd.f32 %v3806_v15, %v6194_v38  ;;  %v4707_v35 = vpop.f32.mrb[132].mxu0  ;;  %v3786_v50 = vld [vmem:[#allocation2 + $0x3e8] sm:$0xff] }
 0x753   : > { %3872 = vst.msk [vmem:[%s6320_s22 + $0x98] sm:$0xff] %vm733_vm1, %v3840_v27  ;;  %v3719_v20 = vadd.f32 %v4707_v35, %v6311_v55  ;;  %v3710_v51 = vpop.f32.mrb[133].mxu0 }
 0x754   : > { %3870 = vst.msk [vmem:[%s6320_s22 + $0x88] sm:$0xff] %vm733_vm1, %v3838_v45  ;;  %v3711_v34 = vadd.f32 %v6311_v55, %v3710_v51  ;;  %v4708_v28 = vpop.f32.mrb[134].mxu0 }
 0x755   : > { %v3811_v41 = vmul.f32 %v3779_v46, %v3719_v20  ;;  %v3722_v16 = vadd.f32 %v4708_v28, %v6311_v55  ;;  %v3713_v38 = vpop.f32.mrb[135].mxu0 }
 0x756   : > { %v3809_v36 = vmul.f32 %v3777_v11, %v3711_v34  ;;  %v3714_v12 = vadd.f32 %v6311_v55, %v3713_v38 }
 0x757   : > { %v3843_v23 = vadd.f32 %v3811_v41, %v6209_v49  ;;  %v3812_v18 = vmul.f32 %v3780_v31, %v3722_v16  ;;  %v3783_v49 = vld [vmem:[#allocation2 + $0x3d0] sm:$0xff] }
 0x758   : > { %v3841_v2 = vadd.f32 %v3809_v36, %v6205_v63  ;;  %v3810_v58 = vmul.f32 %v3778_v59, %v3714_v12 }
 0x759   : > { %3875 = vst.msk [vmem:[%s6320_s22 + $0xb0] sm:$0xff] %vm733_vm1, %v3843_v23  ;;  %v3844_v5 = vadd.f32 %v3812_v18, %v6212_v26  ;;  %v3781_v26 = vld [vmem:[#allocation2 + $0x3c0] sm:$0xff] }
 0x75a   : > { %3873 = vst.msk [vmem:[%s6320_s22 + $0xa0] sm:$0xff] %vm733_vm1, %v3841_v2  ;;  %v3842_v43 = vadd.f32 %v3810_v58, %v6216_v56  ;;  %v4711_v9 = vpop.f32.mrb[136].mxu0 }
 0x75b   : > { %3876 = vst.msk [vmem:[%s6320_s22 + $0xb8] sm:$0xff] %vm733_vm1, %v3844_v5  ;;  %v3735_v7 = vadd.f32 %v4711_v9, %v6311_v55  ;;  %v3726_v53 = vpop.f32.mrb[137].mxu0 }
 0x75c   : > { %3874 = vst.msk [vmem:[%s6320_s22 + $0xa8] sm:$0xff] %vm733_vm1, %v3842_v43  ;;  %v3727_v63 = vadd.f32 %v6311_v55, %v3726_v53  ;;  %v4712_v10 = vpop.f32.mrb[138].mxu0 }
 0x75d   : > { %v3815_v25 = vmul.f32 %v3783_v49, %v3735_v7  ;;  %v3738_v62 = vadd.f32 %v4712_v10, %v6311_v55  ;;  %v3729_v56 = vpop.f32.mrb[139].mxu0 }
 0x75e   : > { %v3813_v4 = vmul.f32 %v3781_v26, %v3727_v63  ;;  %v3730_v47 = vadd.f32 %v6311_v55, %v3729_v56 }
 0x75f   : > { %v3847_v54 = vadd.f32 %v3815_v25, %v6231_v42  ;;  %v3816_v21 = vmul.f32 %v3784_v57, %v3738_v62  ;;  %v3787_v42 = vld [vmem:[#allocation2 + $0x3f0] sm:$0xff] }
 0x760   : > { %v3845_v30 = vadd.f32 %v3813_v4, %v6227_v8  ;;  %v3814_v39 = vmul.f32 %v3782_v3, %v3730_v47 }
 0x761   : > { %3879 = vst.msk [vmem:[%s6320_s22 + $0xd0] sm:$0xff] %vm733_vm1, %v3847_v54  ;;  %v3848_v14 = vadd.f32 %v3816_v21, %v6234_v29  ;;  %v3785_v29 = vld [vmem:[#allocation2 + $0x3e0] sm:$0xff] }
 0x762   : > { %3877 = vst.msk [vmem:[%s6320_s22 + $0xc0] sm:$0xff] %vm733_vm1, %v3845_v30  ;;  %v3846_v0 = vadd.f32 %v3814_v39, %v6238_v37  ;;  %v4715_v22 = vpop.f32.mrb[140].mxu0 }
 0x763   : > { %3880 = vst.msk [vmem:[%s6320_s22 + $0xd8] sm:$0xff] %vm733_vm1, %v3848_v14  ;;  %v3751_v52 = vadd.f32 %v4715_v22, %v6311_v55  ;;  %v3742_v24 = vpop.f32.mrb[141].mxu0 }
 0x764   : > { %3878 = vst.msk [vmem:[%s6320_s22 + $0xc8] sm:$0xff] %vm733_vm1, %v3846_v0  ;;  %v3743_v8 = vadd.f32 %v6311_v55, %v3742_v24  ;;  %v4716_v48 = vpop.f32.mrb[142].mxu0 }
 0x765   : > { %v3819_v6 = vmul.f32 %v3787_v42, %v3751_v52  ;;  %v3754_v37 = vadd.f32 %v4716_v48, %v6311_v55  ;;  %v3745_v13 = vpop.f32.mrb[143].mxu0 }
 0x766   : > { %v3817_v40 = vmul.f32 %v3785_v29, %v3743_v8  ;;  %v3746_v60 = vadd.f32 %v6311_v55, %v3745_v13 }
 0x767   : > { %v3851_v44 = vadd.f32 %v3819_v6, %v6253_v33  ;;  %v3820_v32 = vmul.f32 %v3788_v61, %v3754_v37 }
 0x768   : > { %v3849_v15 = vadd.f32 %v3817_v40, %v6249_v1  ;;  %v3818_v27 = vmul.f32 %v3786_v50, %v3746_v60 }
 0x769   : > { %3883 = vst.msk [vmem:[%s6320_s22 + $0xf0] sm:$0xff] %vm733_vm1, %v3851_v44  ;;  %v3852_v45 = vadd.f32 %v3820_v32, %v6256_v19 }
 0x76a   : > { %3881 = vst.msk [vmem:[%s6320_s22 + $0xe0] sm:$0xff] %vm733_vm1, %v3849_v15  ;;  %v3850_v35 = vadd.f32 %v3818_v27, %v6260_v17 }
 0x76b   : > { %3884 = vst.msk [vmem:[%s6320_s22 + $0xf8] sm:$0xff] %vm733_vm1, %v3852_v45 }
 0x76c   : > { %3882 = vst.msk [vmem:[%s6320_s22 + $0xe8] sm:$0xff] %vm733_vm1, %v3850_v35 }
 0x76d PF: > { %s18_s27 = sadd.s32 1, %s4873_s27  }
 0x76e   : > { %p15_p4 = scmp.ge.s32.totalorder %s18_s27, 4  }
 0x770   :  { %17 = sbr.rel (!%p15_p4) target bundleno = 1 (0x1), region = 100 }

</bundles_post_ra>
